<compile_context>
chip_gen: v6e
topology: v6e:2x2x1
jax: 0.10.0
libtpu: 0.0.40
codegen_flags: <defaults>
</compile_context>

<pallas_src>
import functools

import jax
import jax.numpy as jnp
from jax.experimental import pallas as pl
from jax.experimental.pallas import tpu as pltpu


def _round_up(x, m):
    return ((x + m - 1) // m) * m


def _vocab_tiling(V, max_tile=2048):
    """Pad V to a lane multiple and pick a tile <= max_tile that divides it."""
    vp0 = _round_up(V, 128)
    nv = max(1, -(-vp0 // max_tile))
    tile = _round_up(-(-vp0 // nv), 128)
    nv = -(-vp0 // tile)
    return tile * nv, tile, nv


# ----------------------------------------------------------------------------
# Kernel 1: eta path (vocab-tiled q_eta_map + LSTM + mu_q_eta recurrence)
# ----------------------------------------------------------------------------

def eta_kernel(rnn_ref, wq_ref, bq_ref,
               wih0_ref, whh0_ref, bg0_ref,
               wih1_ref, whh1_ref, bg1_ref,
               wih2_ref, whh2_ref, bg2_ref,
               wmh_ref, wme_ref, bme_ref, onehot_ref,
               eta_td_ref, x_acc):
    v = pl.program_id(0)
    nv = pl.num_programs(0)
    T = rnn_ref.shape[0]
    H = wq_ref.shape[1]
    K = wmh_ref.shape[1]

    @pl.when(v == 0)
    def _init():
        x_acc[...] = jnp.zeros_like(x_acc)

    # q_eta_map, accumulated over vocab tiles (bf16 streams, f32 accumulation)
    x_acc[...] += jnp.dot(rnn_ref[...], wq_ref[...],
                          preferred_element_type=jnp.float32)

    @pl.when(v == nv - 1)
    def _finish():
        def sigmoid(z):
            return 1.0 / (1.0 + jnp.exp(-z))

        x = x_acc[...] + bq_ref[...]                            # (T, H)

        # 3-layer LSTM, batch=1, zero init state, eval (no dropout).
        # Gates are concatenated (i|f|g|o) along the output dim:
        # per step only ONE (1,H)@(H,4H) matmul sits on the recurrent chain;
        # the input projection is hoisted to a single (T,H)@(H,4H) matmul.
        for wih_ref, whh_ref, bg_ref in ((wih0_ref, whh0_ref, bg0_ref),
                                         (wih1_ref, whh1_ref, bg1_ref),
                                         (wih2_ref, whh2_ref, bg2_ref)):
            xp = (jnp.dot(x, wih_ref[...], preferred_element_type=jnp.float32)
                  + bg_ref[...])                                # (T, 4H)
            whh = whh_ref[...]
            h = jnp.zeros((1, H), jnp.float32)
            c = jnp.zeros((1, H), jnp.float32)
            outs = []
            for t in range(T):                                  # T small, static unroll
                g = xp[t:t + 1, :] + jnp.dot(h, whh,
                                             preferred_element_type=jnp.float32)
                i = sigmoid(g[:, 0:H])
                f = sigmoid(g[:, H:2 * H])
                gg = jnp.tanh(g[:, 2 * H:3 * H])
                o = sigmoid(g[:, 3 * H:4 * H])
                c = f * c + i * gg
                h = o * jnp.tanh(c)
                outs.append(h)
            x = jnp.concatenate(outs, axis=0)                   # (T, H)

        # eta recurrence (eval): eta_t = mu_q_eta([out_t, eta_{t-1}]), eta_{-1}=0.
        # Input projection hoisted; only the (1,K)@(K,K) chain stays serial.
        xh = (jnp.dot(x, wmh_ref[...], preferred_element_type=jnp.float32)
              + bme_ref[...])                                   # (T, K)
        wme = wme_ref[...]
        prev = jnp.zeros((1, K), jnp.float32)
        mus = []
        for t in range(T):
            mu = xh[t:t + 1, :] + jnp.dot(prev, wme,
                                          preferred_element_type=jnp.float32)
            mus.append(mu)
            prev = mu
        etas = jnp.concatenate(mus, axis=0)                     # (T, K)

        # per-document window gather eta[times] as a single small matmul
        eta_td_ref[...] = jnp.dot(onehot_ref[...], etas,
                                  preferred_element_type=jnp.float32)


def eta_forward(rnn_inp_bf, onehot, prep):
    B, T = onehot.shape
    tile, nv = prep["v_tile"], prep["nv"]
    H = prep["w_qeta_map"].shape[1]
    K = prep["w_mu_eta_h"].shape[1]

    def small(a):
        return pl.BlockSpec(a.shape, lambda v: (0, 0))

    args = [rnn_inp_bf, prep["w_qeta_map"], prep["b_qeta_map"]]
    specs = [pl.BlockSpec((T, tile), lambda v: (0, v)),
             pl.BlockSpec((tile, H), lambda v: (v, 0)),
             small(prep["b_qeta_map"])]
    for layer in prep["lstm"]:
        for w in layer:
            args.append(w)
            specs.append(small(w))
    for name in ("w_mu_eta_h", "w_mu_eta_e", "b_mu_eta"):
        args.append(prep[name])
        specs.append(small(prep[name]))
    args.append(onehot)
    specs.append(small(onehot))

    return pl.pallas_call(
        eta_kernel,
        out_shape=jax.ShapeDtypeStruct((B, K), jnp.float32),
        grid=(nv,),
        in_specs=specs,
        out_specs=pl.BlockSpec((B, K), lambda v: (0, 0)),
        scratch_shapes=[pltpu.VMEM((T, H), jnp.float32)],
        compiler_params=pltpu.CompilerParams(
            dimension_semantics=("arbitrary",),
            vmem_limit_bytes=32 * 1024 * 1024),
    )(*args)


# ----------------------------------------------------------------------------
# Kernel 2: fused theta + beta + NLL
#   grid = (batch_chunk, pass, vocab_tile); pass/vocab sequential, chunk parallel.
#   pass 0: accumulate nbows@W1, online max/sum stats for the beta row-softmax;
#           on the last V tile fold logZ = m + log(l), finalize theta, build
#           theta_mix (bf16, onehot ⊗ theta) from `times` in-kernel.
#   pass 1: recompute logits per tile, beta = exp(logit - logZ) (bf16),
#           lik = theta_mix @ beta, accumulate per-doc NLL; emit chunk sum.
# ----------------------------------------------------------------------------

def fused_kernel(nbows_ref, rhoT_ref, w1v_ref, alpha_ref, eta_ref, times_ref,
                 w1e_ref, b1_ref, w2_ref, b2_ref, wm_ref, bm_ref,
                 out_ref,
                 h1_acc, theta_mix, m_row, l_row, nll_acc,
                 *, vocab_size):
    p = pl.program_id(1)            # 0: stats/theta pass, 1: likelihood pass
    v = pl.program_id(2)            # vocab tile index
    nv = pl.num_programs(2)
    Bc, K = eta_ref.shape
    TK = alpha_ref.shape[0]
    tv = rhoT_ref.shape[1]
    T = TK // K

    # mask for zero-padded vocab columns of this tile
    col = v * tv + jax.lax.broadcasted_iota(jnp.int32, (1, tv), 1)
    valid = col < vocab_size                                     # (1, tv)

    def beta_logits():
        logit = jnp.dot(alpha_ref[...], rhoT_ref[...],
                        preferred_element_type=jnp.float32)      # (TK, tv)
        return jnp.where(valid, logit, -1e30)

    @pl.when((p == 0) & (v == 0))
    def _init():
        h1_acc[...] = jnp.zeros_like(h1_acc)
        m_row[...] = jnp.full_like(m_row, -jnp.inf)
        l_row[...] = jnp.zeros_like(l_row)
        nll_acc[...] = jnp.zeros_like(nll_acc)

    @pl.when(p == 0)
    def _pass_stats():
        # bows part of the q_theta first layer, accumulated over vocab tiles
        h1_acc[...] += jnp.dot(nbows_ref[...], w1v_ref[...],
                               preferred_element_type=jnp.float32)
        # online softmax stats for beta rows (T*K rows)
        logit = beta_logits()
        m_tile = jnp.max(logit, axis=-1, keepdims=True)
        m_new = jnp.maximum(m_row[...], m_tile)
        l_row[...] = (l_row[...] * jnp.exp(m_row[...] - m_new)
                      + jnp.sum(jnp.exp(logit - m_new), axis=-1, keepdims=True))
        m_row[...] = m_new

        @pl.when(v == nv - 1)
        def _finalize():
            # fold normalizer once: m_row <- logZ = m + log(sum exp(logit - m))
            m_row[...] = m_row[...] + jnp.log(l_row[...])

            # q_theta MLP tail + mu_q_theta + softmax (eval path)
            h = (h1_acc[...]
                 + jnp.dot(eta_ref[...], w1e_ref[...],
                           preferred_element_type=jnp.float32)
                 + b1_ref[...])
            h = jnp.maximum(h, 0.0)
            h = jnp.dot(h, w2_ref[...], preferred_element_type=jnp.float32) + b2_ref[...]
            h = jnp.maximum(h, 0.0)
            mu = jnp.dot(h, wm_ref[...], preferred_element_type=jnp.float32) + bm_ref[...]
            mu = mu - jnp.max(mu, axis=-1, keepdims=True)
            e = jnp.exp(mu)
            theta = e / jnp.sum(e, axis=-1, keepdims=True)       # (Bc, K)

            # theta_mix[b, t*K + k] = (times[b] == t) * theta[b, k]  (bf16 scratch)
            theta_rep = jnp.concatenate([theta] * T, axis=1)     # (Bc, T*K)
            cols = jax.lax.broadcasted_iota(jnp.int32, (Bc, TK), 1)
            start = times_ref[...] * K                           # (Bc, 1)
            tmask = (cols >= start) & (cols < start + K)
            theta_mix[...] = jnp.where(tmask, theta_rep, 0.0).astype(theta_mix.dtype)

    @pl.when(p == 1)
    def _pass_nll():
        logit = beta_logits()
        # beta = exp(logit - logZ); bf16 exp feeds the bf16 likelihood matmul
        beta = jnp.exp((logit - m_row[...]).astype(jnp.bfloat16))   # (TK, tv)
        lik = jnp.dot(theta_mix[...], beta,
                      preferred_element_type=jnp.float32)           # (Bc, tv)
        nll_acc[...] += -jnp.sum(jnp.log(lik + 1e-6) * nbows_ref[...],
                                 axis=-1, keepdims=True)

        @pl.when(v == nv - 1)
        def _final():
            out_ref[...] = jnp.broadcast_to(jnp.sum(nll_acc[...]), out_ref.shape)


def fused_theta_beta_nll(nbows_bf, eta_td, times_col, prep):
    B = nbows_bf.shape[0]
    tv, nv, V = prep["v_tile"], prep["nv"], prep["V"]
    K = eta_td.shape[1]
    TK, L = prep["alpha_bf"].shape
    Ht = prep["w2"].shape[0]

    # Batch chunking: 2 chunks when cleanly splittable -> second TensorCore on
    # v7x via the "parallel" grid axis, and smaller per-core VMEM everywhere.
    NB = 2 if (B % 16 == 0 and B >= 32) else 1
    Bc = B // NB

    c0 = lambda nb, p, v: (0, 0)
    kern = functools.partial(fused_kernel, vocab_size=V)
    out = pl.pallas_call(
        kern,
        out_shape=jax.ShapeDtypeStruct((NB, 8, 128), jnp.float32),
        grid=(NB, 2, nv),
        in_specs=[
            pl.BlockSpec((Bc, tv), lambda nb, p, v: (nb, v)),           # nbows (bf16)
            pl.BlockSpec((L, tv), lambda nb, p, v: (0, v)),             # rho^T (bf16)
            pl.BlockSpec((tv, Ht), lambda nb, p, v: (v * (1 - p), 0)),  # w1_bows (bf16, pinned in pass 1)
            pl.BlockSpec((TK, L), c0),                                  # alpha (bf16)
            pl.BlockSpec((Bc, K), lambda nb, p, v: (nb, 0)),            # eta_td
            pl.BlockSpec((Bc, 1), lambda nb, p, v: (nb, 0)),            # times (int32 column)
            pl.BlockSpec((K, Ht), c0),                                  # w1_eta
            pl.BlockSpec((1, Ht), c0),                                  # b1
            pl.BlockSpec((Ht, Ht), c0),                                 # w2
            pl.BlockSpec((1, Ht), c0),                                  # b2
            pl.BlockSpec((Ht, K), c0),                                  # w_mu_theta
            pl.BlockSpec((1, K), c0),                                   # b_mu_theta
        ],
        out_specs=pl.BlockSpec((1, 8, 128), lambda nb, p, v: (nb, 0, 0)),
        scratch_shapes=[
            pltpu.VMEM((Bc, Ht), jnp.float32),     # h1_acc (bows @ W1 partial)
            pltpu.VMEM((Bc, TK), jnp.bfloat16),    # theta_mix (onehot ⊗ theta)
            pltpu.VMEM((TK, 1), jnp.float32),      # running max -> logZ per beta row
            pltpu.VMEM((TK, 1), jnp.float32),      # running sum-exp per beta row
            pltpu.VMEM((Bc, 1), jnp.float32),      # per-doc NLL partial
        ],
        compiler_params=pltpu.CompilerParams(
            dimension_semantics=("parallel", "arbitrary", "arbitrary"),
            # <=48 MB keeps v7x (64 MiB physical) safe; raise on v5e/v6e if desired.
            vmem_limit_bytes=48 * 1024 * 1024),
    )(nbows_bf, prep["rhoT_bf"], prep["w1_bows_bf"], prep["alpha_bf"], eta_td,
      times_col, prep["w1_eta"], prep["b1"], prep["w2"], prep["b2"],
      prep["w_mu_theta"], prep["b_mu_theta"])
    return jnp.sum(out[:, 0, 0]) / B


# ------------------------------ forward glue --------------------------------

def detm_forward_eval(prep, bows, normalized_bows, times, rnn_inp, num_docs):
    # eval path: raw bows and num_docs/coeff are unused (loss = nll.mean()).
    del bows, num_docs
    T, V, Vp = prep["T"], prep["V"], prep["Vp"]

    pad = Vp - V
    nbows_bf = jnp.pad(normalized_bows, ((0, 0), (0, pad))).astype(jnp.bfloat16)
    rnn_bf = jnp.pad(rnn_inp, ((0, 0), (0, pad))).astype(jnp.bfloat16)

    times_i = times.astype(jnp.int32)
    onehot = (times_i[:, None]
              == jnp.arange(T, dtype=jnp.int32)[None, :]).astype(jnp.float32)   # (B, T)

    # --- get_eta (eval): returns eta[times] directly ---
    eta_td = eta_forward(rnn_bf, onehot, prep)                                  # (B, K)

    # --- get_theta + get_beta + get_nll, fused ---
    return fused_theta_beta_nll(nbows_bf, eta_td, times_i[:, None], prep)


# ------------------------------ params --------------------------------------

def init_params(key, V, L, K, T, t_hidden, eta_hidden, eta_nlayers=3):
    assert eta_nlayers == 3, "eta_kernel is specialized to the module default (3 layers)"
    keys = jax.random.split(key, 32)
    ki = iter(keys)
    n = lambda shape, s=0.1: (s * jax.random.normal(next(ki), shape)).astype(jnp.float32)

    # LSTM weights with gates concatenated (i|f|g|o) along output dim, shapes
    # (in, 4H); per-gate bias is (b_ih + b_hh) folded, shape (1, 4H).
    lstm = []
    for _ in range(eta_nlayers):
        lstm.append((n((eta_hidden, 4 * eta_hidden)),
                     n((eta_hidden, 4 * eta_hidden)),
                     n((1, 4 * eta_hidden))))

    return dict(
        K=K, T=T, V=V,
        rho=n((V, L), 1.0),
        mu_q_alpha=n((K, T, L), 1.0),
        # q_theta MLP, weights stored (in, out); first layer split bows/eta
        # (matching torch.cat([bows, eta_td], dim=1)).
        w1_bows=n((V, t_hidden)), w1_eta=n((K, t_hidden)), b1=n((1, t_hidden)),
        w2=n((t_hidden, t_hidden)), b2=n((1, t_hidden)),
        w_mu_theta=n((t_hidden, K)), b_mu_theta=n((1, K)),
        # q_eta_map + mu_q_eta (mu_q_eta weight split: [output | prev_eta])
        w_qeta_map=n((V, eta_hidden)), b_qeta_map=n((1, eta_hidden)),
        w_mu_eta_h=n((eta_hidden, K)), w_mu_eta_e=n((K, K)), b_mu_eta=n((1, K)),
        lstm=lstm,
    )


def prepare_params(params, max_vocab_tile=2048):
    """One-time layout/dtype plumbing hoisted out of the per-call path:
    vocab padding, bf16 casts of the big streams, alpha (T*K, L) re-layout."""
    V, K, T = params["V"], params["K"], params["T"]
    Vp, tile, nv = _vocab_tiling(V, max_vocab_tile)
    pad = Vp - V
    prep = dict(params)
    prep.update(
        Vp=Vp, v_tile=tile, nv=nv,
        rhoT_bf=jnp.transpose(
            jnp.pad(params["rho"], ((0, pad), (0, 0)))).astype(jnp.bfloat16),   # (L, Vp)
        w1_bows_bf=jnp.pad(params["w1_bows"], ((0, pad), (0, 0))).astype(jnp.bfloat16),
        alpha_bf=jnp.transpose(params["mu_q_alpha"], (1, 0, 2))
                 .reshape(T * K, -1).astype(jnp.bfloat16),                      # (T*K, L)
        w_qeta_map=jnp.pad(params["w_qeta_map"], ((0, pad), (0, 0))).astype(jnp.bfloat16),
    )
    return prep


# ------------------------------ reference -----------------------------------

def _ref_forward(params, nbows, times, rnn_inp):
    """Pure-JAX f32 reference of the torch eval forward (loss = nll.mean())."""
    K, T = params["K"], params["T"]
    H = params["w_qeta_map"].shape[1]
    x = rnn_inp @ params["w_qeta_map"] + params["b_qeta_map"]
    for (wih, whh, b) in params["lstm"]:
        xp = x @ wih + b
        h = jnp.zeros((1, H)); c = jnp.zeros((1, H))
        outs = []
        for t in range(T):
            g = xp[t:t + 1] + h @ whh
            i = jax.nn.sigmoid(g[:, :H]); f = jax.nn.sigmoid(g[:, H:2 * H])
            gg = jnp.tanh(g[:, 2 * H:3 * H]); o = jax.nn.sigmoid(g[:, 3 * H:])
            c = f * c + i * gg
            h = o * jnp.tanh(c)
            outs.append(h)
        x = jnp.concatenate(outs, 0)
    xh = x @ params["w_mu_eta_h"] + params["b_mu_eta"]
    prev = jnp.zeros((1, K)); mus = []
    for t in range(T):
        mu = xh[t:t + 1] + prev @ params["w_mu_eta_e"]
        mus.append(mu); prev = mu
    etas = jnp.concatenate(mus, 0)
    eta_td = etas[times]
    h1 = jax.nn.relu(nbows @ params["w1_bows"] + eta_td @ params["w1_eta"] + params["b1"])
    h2 = jax.nn.relu(h1 @ params["w2"] + params["b2"])
    theta = jax.nn.softmax(h2 @ params["w_mu_theta"] + params["b_mu_theta"], axis=-1)
    alpha = jnp.transpose(params["mu_q_alpha"], (1, 0, 2))            # (T, K, L)
    logit = jnp.einsum("tkl,vl->tkv", alpha, params["rho"])
    beta = jax.nn.softmax(logit, axis=-1)[times]                      # (B, K, V)
    lik = jnp.einsum("bk,bkv->bv", theta, beta)
    nll = -(jnp.log(lik + 1e-6) * nbows).sum(-1)
    return nll.mean()


# ------------------------------ main -----------------------------------------

if __name__ == "__main__":
    # Small shapes consistent with the module; V deliberately non-128-divisible
    # to exercise the padded / masked vocab-tiling path, B=32 exercises the
    # 2-chunk "parallel" batch axis.
    B, V, L, K, T = 32, 2500, 64, 8, 4
    t_hidden, eta_hidden, eta_nlayers = 64, 32, 3

    key = jax.random.PRNGKey(0)
    kp, kb, kt, kr = jax.random.split(key, 4)

    params = init_params(kp, V, L, K, T, t_hidden, eta_hidden, eta_nlayers)
    prep = prepare_params(params)          # hoisted padding + bf16 casts (once)

    bows = jax.random.randint(kb, (B, V), 0, 5).astype(jnp.float32)
    normalized_bows = bows / jnp.maximum(bows.sum(axis=1, keepdims=True), 1.0)
    times = jax.random.randint(kt, (B,), 0, T).astype(jnp.int32)
    rnn_inp = jax.random.uniform(kr, (T, V), dtype=jnp.float32)
    num_docs = 1000

    fwd = jax.jit(functools.partial(detm_forward_eval, prep))
    loss = fwd(bows, normalized_bows, times, rnn_inp, num_docs)
    jax.block_until_ready(loss)

    ref = _ref_forward(params, normalized_bows, times, rnn_inp)
    assert jnp.isfinite(loss), loss
    assert abs(float(loss) - float(ref)) <= 0.03 * abs(float(ref)) + 1e-3, (float(loss), float(ref))
    print("KERNEL_OK")
</pallas_src>

<mosaic_0001>
module attributes {stable_mosaic.version = 11 : i64} {
  func.func @fused_kernel(%arg0: i32, %arg1: i32, %arg2: i32, %arg3: memref<16x1280xbf16, #tpu.memory_space<vmem>>, %arg4: memref<64x1280xbf16, #tpu.memory_space<vmem>>, %arg5: memref<1280x64xbf16, #tpu.memory_space<vmem>>, %arg6: memref<32x64xbf16, #tpu.memory_space<vmem>>, %arg7: memref<16x8xf32, #tpu.memory_space<vmem>>, %arg8: memref<16x1xi32, #tpu.memory_space<vmem>>, %arg9: memref<8x64xf32, #tpu.memory_space<vmem>>, %arg10: memref<1x64xf32, #tpu.memory_space<vmem>>, %arg11: memref<64x64xf32, #tpu.memory_space<vmem>>, %arg12: memref<1x64xf32, #tpu.memory_space<vmem>>, %arg13: memref<64x8xf32, #tpu.memory_space<vmem>>, %arg14: memref<1x8xf32, #tpu.memory_space<vmem>>, %arg15: memref<1x8x128xf32, #tpu.memory_space<vmem>>, %arg16: memref<16x64xf32, #tpu.memory_space<vmem>>, %arg17: memref<16x32xbf16, #tpu.memory_space<vmem>>, %arg18: memref<32x1xf32, #tpu.memory_space<vmem>>, %arg19: memref<32x1xf32, #tpu.memory_space<vmem>>, %arg20: memref<16x1xf32, #tpu.memory_space<vmem>>) attributes {dimension_semantics = [#tpu.dimension_semantics<parallel>, #tpu.dimension_semantics<arbitrary>, #tpu.dimension_semantics<arbitrary>], iteration_bounds = array<i64: 2, 2, 2>, scalar_prefetch = 0 : i64, scratch_operands = 5 : i64, tpu.core_type = #tpu.core_type<tc>, window_params = [{transform_indices = @transform_0, window_bounds = array<i64: 16, 1280>}, {transform_indices = @transform_1, window_bounds = array<i64: 64, 1280>}, {transform_indices = @transform_2, window_bounds = array<i64: 1280, 64>}, {pipeline_mode = #tpu.pipeline_mode<synchronous>, transform_indices = @transform_3, window_bounds = array<i64: 32, 64>}, {transform_indices = @transform_4, window_bounds = array<i64: 16, 8>}, {transform_indices = @transform_5, window_bounds = array<i64: 16, 1>}, {pipeline_mode = #tpu.pipeline_mode<synchronous>, transform_indices = @transform_6, window_bounds = array<i64: 8, 64>}, {pipeline_mode = #tpu.pipeline_mode<synchronous>, transform_indices = @transform_7, window_bounds = array<i64: 1, 64>}, {pipeline_mode = #tpu.pipeline_mode<synchronous>, transform_indices = @transform_8, window_bounds = array<i64: 64, 64>}, {pipeline_mode = #tpu.pipeline_mode<synchronous>, transform_indices = @transform_9, window_bounds = array<i64: 1, 64>}, {pipeline_mode = #tpu.pipeline_mode<synchronous>, transform_indices = @transform_10, window_bounds = array<i64: 64, 8>}, {pipeline_mode = #tpu.pipeline_mode<synchronous>, transform_indices = @transform_11, window_bounds = array<i64: 1, 8>}, {transform_indices = @transform_12, window_bounds = array<i64: 1, 8, 128>}]} {
    %c1280_i32 = arith.constant 1280 : i32
    %0 = arith.muli %arg2, %c1280_i32 : i32
    %1 = tpu.iota {dimensions = array<i32: 1>} : vector<1x1280xi32>
    %2 = vector.broadcast %0 : i32 to vector<1x1280xi32>
    %3 = arith.addi %2, %1 : vector<1x1280xi32>
    %c2500_i32 = arith.constant 2500 : i32
    %4 = vector.broadcast %c2500_i32 : i32 to vector<1x1280xi32>
    %5 = arith.cmpi slt, %3, %4 : vector<1x1280xi32>
    %c0_i32 = arith.constant 0 : i32
    %6 = arith.cmpi eq, %arg1, %c0_i32 : i32
    %c0_i32_0 = arith.constant 0 : i32
    %7 = arith.cmpi eq, %arg2, %c0_i32_0 : i32
    %8 = arith.andi %6, %7 : i1
    %9 = arith.extui %8 : i1 to i32
    %c0_i32_1 = arith.constant 0 : i32
    %10 = arith.cmpi ne, %9, %c0_i32_1 : i32
    scf.if %10 {
      %cst = arith.constant 0.000000e+00 : f32
      %17 = vector.broadcast %cst : f32 to vector<16x64xf32>
      %c0 = arith.constant 0 : index
      %c0_5 = arith.constant 0 : index
      %18 = vector.load %arg16[%c0, %c0_5] : memref<16x64xf32, #tpu.memory_space<vmem>>, vector<16x64xf32>
      tpu.vector_store %arg16[%c0, %c0_5], %17 {strides = array<i32>} : memref<16x64xf32, #tpu.memory_space<vmem>>, vector<16x64xf32>,
      %cst_6 = arith.constant 0xFF800000 : f32
      %19 = vector.broadcast %cst_6 : f32 to vector<32x1xf32>
      %c0_7 = arith.constant 0 : index
      %c0_8 = arith.constant 0 : index
      %20 = vector.load %arg18[%c0_7, %c0_8] : memref<32x1xf32, #tpu.memory_space<vmem>>, vector<32x1xf32>
      tpu.vector_store %arg18[%c0_7, %c0_8], %19 {strides = array<i32>} : memref<32x1xf32, #tpu.memory_space<vmem>>, vector<32x1xf32>,
      %cst_9 = arith.constant 0.000000e+00 : f32
      %21 = vector.broadcast %cst_9 : f32 to vector<32x1xf32>
      %c0_10 = arith.constant 0 : index
      %c0_11 = arith.constant 0 : index
      %22 = vector.load %arg19[%c0_10, %c0_11] : memref<32x1xf32, #tpu.memory_space<vmem>>, vector<32x1xf32>
      tpu.vector_store %arg19[%c0_10, %c0_11], %21 {strides = array<i32>} : memref<32x1xf32, #tpu.memory_space<vmem>>, vector<32x1xf32>,
      %cst_12 = arith.constant 0.000000e+00 : f32
      %23 = vector.broadcast %cst_12 : f32 to vector<16x1xf32>
      %c0_13 = arith.constant 0 : index
      %c0_14 = arith.constant 0 : index
      %24 = vector.load %arg20[%c0_13, %c0_14] : memref<16x1xf32, #tpu.memory_space<vmem>>, vector<16x1xf32>
      tpu.vector_store %arg20[%c0_13, %c0_14], %23 {strides = array<i32>} : memref<16x1xf32, #tpu.memory_space<vmem>>, vector<16x1xf32>,
    } else {
    }
    %c0_i32_2 = arith.constant 0 : i32
    %11 = arith.cmpi eq, %arg1, %c0_i32_2 : i32
    %12 = arith.extui %11 : i1 to i32
    %c0_i32_3 = arith.constant 0 : i32
    %13 = arith.cmpi ne, %12, %c0_i32_3 : i32
    scf.if %13 {
      %c0 = arith.constant 0 : index
      %c0_5 = arith.constant 0 : index
      %17 = vector.load %arg16[%c0, %c0_5] : memref<16x64xf32, #tpu.memory_space<vmem>>, vector<16x64xf32>
      %c0_6 = arith.constant 0 : index
      %c0_7 = arith.constant 0 : index
      %18 = vector.load %arg3[%c0_6, %c0_7] : memref<16x1280xbf16, #tpu.memory_space<vmem>>, vector<16x1280xbf16>
      %c0_8 = arith.constant 0 : index
      %c0_9 = arith.constant 0 : index
      %19 = vector.load %arg5[%c0_8, %c0_9] : memref<1280x64xbf16, #tpu.memory_space<vmem>>, vector<1280x64xbf16>
      %cst = arith.constant dense<0.000000e+00> : vector<16x64xf32>
      %20 = tpu.matmul %18, %19, %cst {dimension_numbers = #tpu.dot_dimension_numbers<[1], [0], [0], [1], [0, 0, 1, 1], [], []>} : vector<16x1280xbf16>, vector<1280x64xbf16>, vector<16x64xf32> -> vector<16x64xf32>
      %21 = arith.addf %17, %20 : vector<16x64xf32>
      %c0_10 = arith.constant 0 : index
      %c0_11 = arith.constant 0 : index
      %22 = vector.load %arg16[%c0_10, %c0_11] : memref<16x64xf32, #tpu.memory_space<vmem>>, vector<16x64xf32>
      tpu.vector_store %arg16[%c0_10, %c0_11], %21 {strides = array<i32>} : memref<16x64xf32, #tpu.memory_space<vmem>>, vector<16x64xf32>,
      %c0_12 = arith.constant 0 : index
      %c0_13 = arith.constant 0 : index
      %23 = vector.load %arg6[%c0_12, %c0_13] : memref<32x64xbf16, #tpu.memory_space<vmem>>, vector<32x64xbf16>
      %c0_14 = arith.constant 0 : index
      %c0_15 = arith.constant 0 : index
      %24 = vector.load %arg4[%c0_14, %c0_15] : memref<64x1280xbf16, #tpu.memory_space<vmem>>, vector<64x1280xbf16>
      %cst_16 = arith.constant dense<0.000000e+00> : vector<32x1280xf32>
      %25 = tpu.matmul %23, %24, %cst_16 {dimension_numbers = #tpu.dot_dimension_numbers<[1], [0], [0], [1], [0, 0, 1, 1], [], []>} : vector<32x64xbf16>, vector<64x1280xbf16>, vector<32x1280xf32> -> vector<32x1280xf32>
      %cst_17 = arith.constant -1.000000e+30 : f32
      %26 = vector.shape_cast %5 : vector<1x1280xi1> to vector<1x1280xi1>
      %27 = vector.broadcast %26 : vector<1x1280xi1> to vector<32x1280xi1>
      %28 = vector.broadcast %cst_17 : f32 to vector<32x1280xf32>
      %29 = arith.select %27, %25, %28 : vector<32x1280xi1>, vector<32x1280xf32>
      %cst_18 = arith.constant dense<0xFF800000> : vector<32xf32>
      %30 = vector.multi_reduction <maximumf>, %29, %cst_18 [1] : vector<32x1280xf32> to vector<32xf32>
      %31 = vector.shape_cast %30 : vector<32xf32> to vector<32x1xf32>
      %c0_19 = arith.constant 0 : index
      %c0_20 = arith.constant 0 : index
      %32 = vector.load %arg18[%c0_19, %c0_20] : memref<32x1xf32, #tpu.memory_space<vmem>>, vector<32x1xf32>
      %33 = arith.maximumf %32, %31 : vector<32x1xf32>
      %c0_21 = arith.constant 0 : index
      %c0_22 = arith.constant 0 : index
      %34 = vector.load %arg19[%c0_21, %c0_22] : memref<32x1xf32, #tpu.memory_space<vmem>>, vector<32x1xf32>
      %c0_23 = arith.constant 0 : index
      %c0_24 = arith.constant 0 : index
      %35 = vector.load %arg18[%c0_23, %c0_24] : memref<32x1xf32, #tpu.memory_space<vmem>>, vector<32x1xf32>
      %36 = arith.subf %35, %33 : vector<32x1xf32>
      %37 = math.exp %36 : vector<32x1xf32>
      %38 = arith.mulf %34, %37 : vector<32x1xf32>
      %39 = vector.broadcast %33 : vector<32x1xf32> to vector<32x1280xf32>
      %40 = arith.subf %29, %39 : vector<32x1280xf32>
      %41 = math.exp %40 : vector<32x1280xf32>
      %cst_25 = arith.constant dense<0.000000e+00> : vector<32xf32>
      %42 = vector.multi_reduction <add>, %41, %cst_25 [1] : vector<32x1280xf32> to vector<32xf32>
      %43 = vector.shape_cast %42 : vector<32xf32> to vector<32x1xf32>
      %44 = arith.addf %38, %43 : vector<32x1xf32>
      %c0_26 = arith.constant 0 : index
      %c0_27 = arith.constant 0 : index
      %45 = vector.load %arg19[%c0_26, %c0_27] : memref<32x1xf32, #tpu.memory_space<vmem>>, vector<32x1xf32>
      tpu.vector_store %arg19[%c0_26, %c0_27], %44 {strides = array<i32>} : memref<32x1xf32, #tpu.memory_space<vmem>>, vector<32x1xf32>,
      %c0_28 = arith.constant 0 : index
      %c0_29 = arith.constant 0 : index
      %46 = vector.load %arg18[%c0_28, %c0_29] : memref<32x1xf32, #tpu.memory_space<vmem>>, vector<32x1xf32>
      tpu.vector_store %arg18[%c0_28, %c0_29], %33 {strides = array<i32>} : memref<32x1xf32, #tpu.memory_space<vmem>>, vector<32x1xf32>,
      %c1_i32_30 = arith.constant 1 : i32
      %47 = arith.cmpi eq, %arg2, %c1_i32_30 : i32
      %48 = arith.extui %47 : i1 to i32
      %c0_i32_31 = arith.constant 0 : i32
      %49 = arith.cmpi ne, %48, %c0_i32_31 : i32
      scf.if %49 {
        %c0_32 = arith.constant 0 : index
        %c0_33 = arith.constant 0 : index
        %50 = vector.load %arg18[%c0_32, %c0_33] : memref<32x1xf32, #tpu.memory_space<vmem>>, vector<32x1xf32>
        %c0_34 = arith.constant 0 : index
        %c0_35 = arith.constant 0 : index
        %51 = vector.load %arg19[%c0_34, %c0_35] : memref<32x1xf32, #tpu.memory_space<vmem>>, vector<32x1xf32>
        %52 = math.log %51 : vector<32x1xf32>
        %53 = arith.addf %50, %52 : vector<32x1xf32>
        %c0_36 = arith.constant 0 : index
        %c0_37 = arith.constant 0 : index
        %54 = vector.load %arg18[%c0_36, %c0_37] : memref<32x1xf32, #tpu.memory_space<vmem>>, vector<32x1xf32>
        tpu.vector_store %arg18[%c0_36, %c0_37], %53 {strides = array<i32>} : memref<32x1xf32, #tpu.memory_space<vmem>>, vector<32x1xf32>,
        %c0_38 = arith.constant 0 : index
        %c0_39 = arith.constant 0 : index
        %55 = vector.load %arg16[%c0_38, %c0_39] : memref<16x64xf32, #tpu.memory_space<vmem>>, vector<16x64xf32>
        %c0_40 = arith.constant 0 : index
        %c0_41 = arith.constant 0 : index
        %56 = vector.load %arg7[%c0_40, %c0_41] : memref<16x8xf32, #tpu.memory_space<vmem>>, vector<16x8xf32>
        %c0_42 = arith.constant 0 : index
        %c0_43 = arith.constant 0 : index
        %57 = vector.load %arg9[%c0_42, %c0_43] : memref<8x64xf32, #tpu.memory_space<vmem>>, vector<8x64xf32>
        %cst_44 = arith.constant dense<0.000000e+00> : vector<16x64xf32>
        %58 = tpu.matmul %56, %57, %cst_44 {dimension_numbers = #tpu.dot_dimension_numbers<[1], [0], [0], [1], [0, 0, 1, 1], [], []>} : vector<16x8xf32>, vector<8x64xf32>, vector<16x64xf32> -> vector<16x64xf32>
        %59 = arith.addf %55, %58 : vector<16x64xf32>
        %c0_45 = arith.constant 0 : index
        %c0_46 = arith.constant 0 : index
        %60 = vector.load %arg10[%c0_45, %c0_46] : memref<1x64xf32, #tpu.memory_space<vmem>>, vector<1x64xf32>
        %61 = vector.broadcast %60 : vector<1x64xf32> to vector<16x64xf32>
        %62 = arith.addf %59, %61 : vector<16x64xf32>
        %cst_47 = arith.constant 0.000000e+00 : f32
        %63 = vector.broadcast %cst_47 : f32 to vector<16x64xf32>
        %64 = arith.maximumf %62, %63 : vector<16x64xf32>
        %c0_48 = arith.constant 0 : index
        %c0_49 = arith.constant 0 : index
        %65 = vector.load %arg11[%c0_48, %c0_49] : memref<64x64xf32, #tpu.memory_space<vmem>>, vector<64x64xf32>
        %cst_50 = arith.constant dense<0.000000e+00> : vector<16x64xf32>
        %66 = tpu.matmul %64, %65, %cst_50 {dimension_numbers = #tpu.dot_dimension_numbers<[1], [0], [0], [1], [0, 0, 1, 1], [], []>} : vector<16x64xf32>, vector<64x64xf32>, vector<16x64xf32> -> vector<16x64xf32>
        %c0_51 = arith.constant 0 : index
        %c0_52 = arith.constant 0 : index
        %67 = vector.load %arg12[%c0_51, %c0_52] : memref<1x64xf32, #tpu.memory_space<vmem>>, vector<1x64xf32>
        %68 = vector.broadcast %67 : vector<1x64xf32> to vector<16x64xf32>
        %69 = arith.addf %66, %68 : vector<16x64xf32>
        %cst_53 = arith.constant 0.000000e+00 : f32
        %70 = vector.broadcast %cst_53 : f32 to vector<16x64xf32>
        %71 = arith.maximumf %69, %70 : vector<16x64xf32>
        %c0_54 = arith.constant 0 : index
        %c0_55 = arith.constant 0 : index
        %72 = vector.load %arg13[%c0_54, %c0_55] : memref<64x8xf32, #tpu.memory_space<vmem>>, vector<64x8xf32>
        %cst_56 = arith.constant dense<0.000000e+00> : vector<16x8xf32>
        %73 = tpu.matmul %71, %72, %cst_56 {dimension_numbers = #tpu.dot_dimension_numbers<[1], [0], [0], [1], [0, 0, 1, 1], [], []>} : vector<16x64xf32>, vector<64x8xf32>, vector<16x8xf32> -> vector<16x8xf32>
        %c0_57 = arith.constant 0 : index
        %c0_58 = arith.constant 0 : index
        %74 = vector.load %arg14[%c0_57, %c0_58] : memref<1x8xf32, #tpu.memory_space<vmem>>, vector<1x8xf32>
        %75 = vector.broadcast %74 : vector<1x8xf32> to vector<16x8xf32>
        %76 = arith.addf %73, %75 : vector<16x8xf32>
        %cst_59 = arith.constant dense<0xFF800000> : vector<16xf32>
        %77 = vector.multi_reduction <maximumf>, %76, %cst_59 [1] : vector<16x8xf32> to vector<16xf32>
        %78 = vector.shape_cast %77 : vector<16xf32> to vector<16x1xf32>
        %79 = vector.broadcast %78 : vector<16x1xf32> to vector<16x8xf32>
        %80 = arith.subf %76, %79 : vector<16x8xf32>
        %81 = math.exp %80 : vector<16x8xf32>
        %cst_60 = arith.constant dense<0.000000e+00> : vector<16xf32>
        %82 = vector.multi_reduction <add>, %81, %cst_60 [1] : vector<16x8xf32> to vector<16xf32>
        %83 = vector.shape_cast %82 : vector<16xf32> to vector<16x1xf32>
        %84 = vector.broadcast %83 : vector<16x1xf32> to vector<16x8xf32>
        %85 = arith.divf %81, %84 : vector<16x8xf32>
        %86 = tpu.concatenate %85, %85, %85, %85 in 1 : vector<16x8xf32>, vector<16x8xf32>, vector<16x8xf32>, vector<16x8xf32> -> vector<16x32xf32>
        %87 = tpu.iota {dimensions = array<i32: 1>} : vector<16x32xi32>
        %c0_61 = arith.constant 0 : index
        %c0_62 = arith.constant 0 : index
        %88 = vector.load %arg8[%c0_61, %c0_62] : memref<16x1xi32, #tpu.memory_space<vmem>>, vector<16x1xi32>
        %c8_i32 = arith.constant 8 : i32
        %89 = vector.broadcast %c8_i32 : i32 to vector<16x1xi32>
        %90 = arith.muli %88, %89 : vector<16x1xi32>
        %91 = vector.broadcast %90 : vector<16x1xi32> to vector<16x32xi32>
        %92 = arith.cmpi sge, %87, %91 : vector<16x32xi32>
        %c8_i32_63 = arith.constant 8 : i32
        %93 = vector.broadcast %c8_i32_63 : i32 to vector<16x1xi32>
        %94 = arith.addi %90, %93 : vector<16x1xi32>
        %95 = vector.broadcast %94 : vector<16x1xi32> to vector<16x32xi32>
        %96 = arith.cmpi slt, %87, %95 : vector<16x32xi32>
        %97 = arith.andi %92, %96 : vector<16x32xi1>
        %cst_64 = arith.constant 0.000000e+00 : f32
        %98 = vector.broadcast %cst_64 : f32 to vector<16x32xf32>
        %99 = arith.select %97, %86, %98 : vector<16x32xi1>, vector<16x32xf32>
        %100 = arith.truncf %99 : vector<16x32xf32> to vector<16x32xbf16>
        %c0_65 = arith.constant 0 : index
        %c0_66 = arith.constant 0 : index
        %101 = vector.load %arg17[%c0_65, %c0_66] : memref<16x32xbf16, #tpu.memory_space<vmem>>, vector<16x32xbf16>
        tpu.vector_store %arg17[%c0_65, %c0_66], %100 {strides = array<i32>} : memref<16x32xbf16, #tpu.memory_space<vmem>>, vector<16x32xbf16>,
      } else {
      }
    } else {
    }
    %c1_i32 = arith.constant 1 : i32
    %14 = arith.cmpi eq, %arg1, %c1_i32 : i32
    %15 = arith.extui %14 : i1 to i32
    %c0_i32_4 = arith.constant 0 : i32
    %16 = arith.cmpi ne, %15, %c0_i32_4 : i32
    scf.if %16 {
      %c0 = arith.constant 0 : index
      %c0_5 = arith.constant 0 : index
      %17 = vector.load %arg6[%c0, %c0_5] : memref<32x64xbf16, #tpu.memory_space<vmem>>, vector<32x64xbf16>
      %c0_6 = arith.constant 0 : index
      %c0_7 = arith.constant 0 : index
      %18 = vector.load %arg4[%c0_6, %c0_7] : memref<64x1280xbf16, #tpu.memory_space<vmem>>, vector<64x1280xbf16>
      %cst = arith.constant dense<0.000000e+00> : vector<32x1280xf32>
      %19 = tpu.matmul %17, %18, %cst {dimension_numbers = #tpu.dot_dimension_numbers<[1], [0], [0], [1], [0, 0, 1, 1], [], []>} : vector<32x64xbf16>, vector<64x1280xbf16>, vector<32x1280xf32> -> vector<32x1280xf32>
      %cst_8 = arith.constant -1.000000e+30 : f32
      %20 = vector.shape_cast %5 : vector<1x1280xi1> to vector<1x1280xi1>
      %21 = vector.broadcast %20 : vector<1x1280xi1> to vector<32x1280xi1>
      %22 = vector.broadcast %cst_8 : f32 to vector<32x1280xf32>
      %23 = arith.select %21, %19, %22 : vector<32x1280xi1>, vector<32x1280xf32>
      %c0_9 = arith.constant 0 : index
      %c0_10 = arith.constant 0 : index
      %24 = vector.load %arg18[%c0_9, %c0_10] : memref<32x1xf32, #tpu.memory_space<vmem>>, vector<32x1xf32>
      %25 = vector.broadcast %24 : vector<32x1xf32> to vector<32x1280xf32>
      %26 = arith.subf %23, %25 : vector<32x1280xf32>
      %27 = arith.truncf %26 : vector<32x1280xf32> to vector<32x1280xbf16>
      %28 = math.exp %27 : vector<32x1280xbf16>
      %c0_11 = arith.constant 0 : index
      %c0_12 = arith.constant 0 : index
      %29 = vector.load %arg17[%c0_11, %c0_12] : memref<16x32xbf16, #tpu.memory_space<vmem>>, vector<16x32xbf16>
      %cst_13 = arith.constant dense<0.000000e+00> : vector<16x1280xf32>
      %30 = tpu.matmul %29, %28, %cst_13 {dimension_numbers = #tpu.dot_dimension_numbers<[1], [0], [0], [1], [0, 0, 1, 1], [], []>} : vector<16x32xbf16>, vector<32x1280xbf16>, vector<16x1280xf32> -> vector<16x1280xf32>
      %c0_14 = arith.constant 0 : index
      %c0_15 = arith.constant 0 : index
      %31 = vector.load %arg20[%c0_14, %c0_15] : memref<16x1xf32, #tpu.memory_space<vmem>>, vector<16x1xf32>
      %cst_16 = arith.constant 9.99999997E-7 : f32
      %32 = vector.broadcast %cst_16 : f32 to vector<16x1280xf32>
      %33 = arith.addf %30, %32 : vector<16x1280xf32>
      %34 = math.log %33 : vector<16x1280xf32>
      %c0_17 = arith.constant 0 : index
      %c0_18 = arith.constant 0 : index
      %35 = vector.load %arg3[%c0_17, %c0_18] : memref<16x1280xbf16, #tpu.memory_space<vmem>>, vector<16x1280xbf16>
      %36 = arith.extf %35 : vector<16x1280xbf16> to vector<16x1280xf32>
      %37 = arith.mulf %34, %36 : vector<16x1280xf32>
      %cst_19 = arith.constant dense<0.000000e+00> : vector<16xf32>
      %38 = vector.multi_reduction <add>, %37, %cst_19 [1] : vector<16x1280xf32> to vector<16xf32>
      %39 = vector.shape_cast %38 : vector<16xf32> to vector<16x1xf32>
      %cst_20 = arith.constant 0.000000e+00 : f32
      %40 = vector.broadcast %cst_20 : f32 to vector<16x1xf32>
      %41 = arith.subf %40, %39 : vector<16x1xf32>
      %42 = arith.addf %31, %41 : vector<16x1xf32>
      %c0_21 = arith.constant 0 : index
      %c0_22 = arith.constant 0 : index
      %43 = vector.load %arg20[%c0_21, %c0_22] : memref<16x1xf32, #tpu.memory_space<vmem>>, vector<16x1xf32>
      tpu.vector_store %arg20[%c0_21, %c0_22], %42 {strides = array<i32>} : memref<16x1xf32, #tpu.memory_space<vmem>>, vector<16x1xf32>,
      %c1_i32_23 = arith.constant 1 : i32
      %44 = arith.cmpi eq, %arg2, %c1_i32_23 : i32
      %45 = arith.extui %44 : i1 to i32
      %c0_i32_24 = arith.constant 0 : i32
      %46 = arith.cmpi ne, %45, %c0_i32_24 : i32
      scf.if %46 {
        %c0_25 = arith.constant 0 : index
        %c0_26 = arith.constant 0 : index
        %47 = vector.load %arg20[%c0_25, %c0_26] : memref<16x1xf32, #tpu.memory_space<vmem>>, vector<16x1xf32>
        %48 = vector.shape_cast %47 : vector<16x1xf32> to vector<1x16x1xf32>
        %cst_27 = arith.constant dense<0.000000e+00> : vector<1xf32>
        %49 = vector.multi_reduction <add>, %48, %cst_27 [1, 2] : vector<1x16x1xf32> to vector<1xf32>
        %50 = vector.shape_cast %49 : vector<1xf32> to vector<1x1x1xf32>
        %51 = vector.extract %50[0, 0, 0] : f32 from vector<1x1x1xf32>
        %52 = vector.broadcast %51 : f32 to vector<1x8x128xf32>
        %c0_28 = arith.constant 0 : index
        %c0_29 = arith.constant 0 : index
        %c0_30 = arith.constant 0 : index
        %53 = vector.load %arg15[%c0_28, %c0_29, %c0_30] : memref<1x8x128xf32, #tpu.memory_space<vmem>>, vector<1x8x128xf32>
        tpu.vector_store %arg15[%c0_28, %c0_29, %c0_30], %52 {strides = array<i32>} : memref<1x8x128xf32, #tpu.memory_space<vmem>>, vector<1x8x128xf32>,
      } else {
      }
    } else {
    }
    return
  }
  func.func @transform_0(%arg0: i32, %arg1: i32, %arg2: i32) -> (i32, i32) {
    %c0_i32 = arith.constant 0 : i32
    return %arg0, %arg2 : i32, i32
  }
  func.func @transform_1(%arg0: i32, %arg1: i32, %arg2: i32) -> (i32, i32) {
    %c0_i32 = arith.constant 0 : i32
    %c0_i32_0 = arith.constant 0 : i32
    return %c0_i32, %arg2 : i32, i32
  }
  func.func @transform_2(%arg0: i32, %arg1: i32, %arg2: i32) -> (i32, i32) {
    %c1_i32 = arith.constant 1 : i32
    %0 = arith.subi %c1_i32, %arg1 : i32
    %1 = arith.muli %arg2, %0 : i32
    %c0_i32 = arith.constant 0 : i32
    %c0_i32_0 = arith.constant 0 : i32
    return %1, %c0_i32 : i32, i32
  }
  func.func @transform_3(%arg0: i32, %arg1: i32, %arg2: i32) -> (i32, i32) {
    %c0_i32 = arith.constant 0 : i32
    %c0_i32_0 = arith.constant 0 : i32
    %c0_i32_1 = arith.constant 0 : i32
    return %c0_i32, %c0_i32_0 : i32, i32
  }
  func.func @transform_4(%arg0: i32, %arg1: i32, %arg2: i32) -> (i32, i32) {
    %c0_i32 = arith.constant 0 : i32
    %c0_i32_0 = arith.constant 0 : i32
    return %arg0, %c0_i32 : i32, i32
  }
  func.func @transform_5(%arg0: i32, %arg1: i32, %arg2: i32) -> (i32, i32) {
    %c0_i32 = arith.constant 0 : i32
    %c0_i32_0 = arith.constant 0 : i32
    return %arg0, %c0_i32 : i32, i32
  }
  func.func @transform_6(%arg0: i32, %arg1: i32, %arg2: i32) -> (i32, i32) {
    %c0_i32 = arith.constant 0 : i32
    %c0_i32_0 = arith.constant 0 : i32
    %c0_i32_1 = arith.constant 0 : i32
    return %c0_i32, %c0_i32_0 : i32, i32
  }
  func.func @transform_7(%arg0: i32, %arg1: i32, %arg2: i32) -> (i32, i32) {
    %c0_i32 = arith.constant 0 : i32
    %c0_i32_0 = arith.constant 0 : i32
    %c0_i32_1 = arith.constant 0 : i32
    return %c0_i32, %c0_i32_0 : i32, i32
  }
  func.func @transform_8(%arg0: i32, %arg1: i32, %arg2: i32) -> (i32, i32) {
    %c0_i32 = arith.constant 0 : i32
    %c0_i32_0 = arith.constant 0 : i32
    %c0_i32_1 = arith.constant 0 : i32
    return %c0_i32, %c0_i32_0 : i32, i32
  }
  func.func @transform_9(%arg0: i32, %arg1: i32, %arg2: i32) -> (i32, i32) {
    %c0_i32 = arith.constant 0 : i32
    %c0_i32_0 = arith.constant 0 : i32
    %c0_i32_1 = arith.constant 0 : i32
    return %c0_i32, %c0_i32_0 : i32, i32
  }
  func.func @transform_10(%arg0: i32, %arg1: i32, %arg2: i32) -> (i32, i32) {
    %c0_i32 = arith.constant 0 : i32
    %c0_i32_0 = arith.constant 0 : i32
    %c0_i32_1 = arith.constant 0 : i32
    return %c0_i32, %c0_i32_0 : i32, i32
  }
  func.func @transform_11(%arg0: i32, %arg1: i32, %arg2: i32) -> (i32, i32) {
    %c0_i32 = arith.constant 0 : i32
    %c0_i32_0 = arith.constant 0 : i32
    %c0_i32_1 = arith.constant 0 : i32
    return %c0_i32, %c0_i32_0 : i32, i32
  }
  func.func @transform_12(%arg0: i32, %arg1: i32, %arg2: i32) -> (i32, i32, i32) {
    %c0_i32 = arith.constant 0 : i32
    %c0_i32_0 = arith.constant 0 : i32
    %c0_i32_1 = arith.constant 0 : i32
    return %arg0, %c0_i32, %c0_i32_0 : i32, i32, i32
  }
}

module attributes {stable_mosaic.version = 11 : i64} {
  func.func @eta_kernel(%arg0: i32, %arg1: memref<4x1280xbf16, #tpu.memory_space<vmem>>, %arg2: memref<1280x32xbf16, #tpu.memory_space<vmem>>, %arg3: memref<1x32xf32, #tpu.memory_space<vmem>>, %arg4: memref<32x128xf32, #tpu.memory_space<vmem>>, %arg5: memref<32x128xf32, #tpu.memory_space<vmem>>, %arg6: memref<1x128xf32, #tpu.memory_space<vmem>>, %arg7: memref<32x128xf32, #tpu.memory_space<vmem>>, %arg8: memref<32x128xf32, #tpu.memory_space<vmem>>, %arg9: memref<1x128xf32, #tpu.memory_space<vmem>>, %arg10: memref<32x128xf32, #tpu.memory_space<vmem>>, %arg11: memref<32x128xf32, #tpu.memory_space<vmem>>, %arg12: memref<1x128xf32, #tpu.memory_space<vmem>>, %arg13: memref<32x8xf32, #tpu.memory_space<vmem>>, %arg14: memref<8x8xf32, #tpu.memory_space<vmem>>, %arg15: memref<1x8xf32, #tpu.memory_space<vmem>>, %arg16: memref<32x4xf32, #tpu.memory_space<vmem>>, %arg17: memref<32x8xf32, #tpu.memory_space<vmem>>, %arg18: memref<4x32xf32, #tpu.memory_space<vmem>>) attributes {dimension_semantics = [#tpu.dimension_semantics<arbitrary>], iteration_bounds = array<i64: 2>, scalar_prefetch = 0 : i64, scratch_operands = 1 : i64, tpu.core_type = #tpu.core_type<tc>, window_params = [{transform_indices = @transform_0, window_bounds = array<i64: 4, 1280>}, {transform_indices = @transform_1, window_bounds = array<i64: 1280, 32>}, {pipeline_mode = #tpu.pipeline_mode<synchronous>, transform_indices = @transform_2, window_bounds = array<i64: 1, 32>}, {pipeline_mode = #tpu.pipeline_mode<synchronous>, transform_indices = @transform_3, window_bounds = array<i64: 32, 128>}, {pipeline_mode = #tpu.pipeline_mode<synchronous>, transform_indices = @transform_4, window_bounds = array<i64: 32, 128>}, {pipeline_mode = #tpu.pipeline_mode<synchronous>, transform_indices = @transform_5, window_bounds = array<i64: 1, 128>}, {pipeline_mode = #tpu.pipeline_mode<synchronous>, transform_indices = @transform_6, window_bounds = array<i64: 32, 128>}, {pipeline_mode = #tpu.pipeline_mode<synchronous>, transform_indices = @transform_7, window_bounds = array<i64: 32, 128>}, {pipeline_mode = #tpu.pipeline_mode<synchronous>, transform_indices = @transform_8, window_bounds = array<i64: 1, 128>}, {pipeline_mode = #tpu.pipeline_mode<synchronous>, transform_indices = @transform_9, window_bounds = array<i64: 32, 128>}, {pipeline_mode = #tpu.pipeline_mode<synchronous>, transform_indices = @transform_10, window_bounds = array<i64: 32, 128>}, {pipeline_mode = #tpu.pipeline_mode<synchronous>, transform_indices = @transform_11, window_bounds = array<i64: 1, 128>}, {pipeline_mode = #tpu.pipeline_mode<synchronous>, transform_indices = @transform_12, window_bounds = array<i64: 32, 8>}, {pipeline_mode = #tpu.pipeline_mode<synchronous>, transform_indices = @transform_13, window_bounds = array<i64: 8, 8>}, {pipeline_mode = #tpu.pipeline_mode<synchronous>, transform_indices = @transform_14, window_bounds = array<i64: 1, 8>}, {pipeline_mode = #tpu.pipeline_mode<synchronous>, transform_indices = @transform_15, window_bounds = array<i64: 32, 4>}, {pipeline_mode = #tpu.pipeline_mode<synchronous>, transform_indices = @transform_16, window_bounds = array<i64: 32, 8>}]} {
    %c0_i32 = arith.constant 0 : i32
    %0 = arith.cmpi eq, %arg0, %c0_i32 : i32
    %1 = arith.extui %0 : i1 to i32
    %c0_i32_0 = arith.constant 0 : i32
    %2 = arith.cmpi ne, %1, %c0_i32_0 : i32
    scf.if %2 {
      %cst_9 = arith.constant 0.000000e+00 : f32
      %12 = vector.broadcast %cst_9 : f32 to vector<4x32xf32>
      %c0_10 = arith.constant 0 : index
      %c0_11 = arith.constant 0 : index
      %13 = vector.load %arg18[%c0_10, %c0_11] : memref<4x32xf32, #tpu.memory_space<vmem>>, vector<4x32xf32>
      tpu.vector_store %arg18[%c0_10, %c0_11], %12 {strides = array<i32>} : memref<4x32xf32, #tpu.memory_space<vmem>>, vector<4x32xf32>,
    } else {
    }
    %c0 = arith.constant 0 : index
    %c0_1 = arith.constant 0 : index
    %3 = vector.load %arg18[%c0, %c0_1] : memref<4x32xf32, #tpu.memory_space<vmem>>, vector<4x32xf32>
    %c0_2 = arith.constant 0 : index
    %c0_3 = arith.constant 0 : index
    %4 = vector.load %arg1[%c0_2, %c0_3] : memref<4x1280xbf16, #tpu.memory_space<vmem>>, vector<4x1280xbf16>
    %c0_4 = arith.constant 0 : index
    %c0_5 = arith.constant 0 : index
    %5 = vector.load %arg2[%c0_4, %c0_5] : memref<1280x32xbf16, #tpu.memory_space<vmem>>, vector<1280x32xbf16>
    %cst = arith.constant dense<0.000000e+00> : vector<4x32xf32>
    %6 = tpu.matmul %4, %5, %cst {dimension_numbers = #tpu.dot_dimension_numbers<[1], [0], [0], [1], [0, 0, 1, 1], [], []>} : vector<4x1280xbf16>, vector<1280x32xbf16>, vector<4x32xf32> -> vector<4x32xf32>
    %7 = arith.addf %3, %6 : vector<4x32xf32>
    %c0_6 = arith.constant 0 : index
    %c0_7 = arith.constant 0 : index
    %8 = vector.load %arg18[%c0_6, %c0_7] : memref<4x32xf32, #tpu.memory_space<vmem>>, vector<4x32xf32>
    tpu.vector_store %arg18[%c0_6, %c0_7], %7 {strides = array<i32>} : memref<4x32xf32, #tpu.memory_space<vmem>>, vector<4x32xf32>,
    %c1_i32 = arith.constant 1 : i32
    %9 = arith.cmpi eq, %arg0, %c1_i32 : i32
    %10 = arith.extui %9 : i1 to i32
    %c0_i32_8 = arith.constant 0 : i32
    %11 = arith.cmpi ne, %10, %c0_i32_8 : i32
    scf.if %11 {
      %c0_9 = arith.constant 0 : index
      %c0_10 = arith.constant 0 : index
      %12 = vector.load %arg18[%c0_9, %c0_10] : memref<4x32xf32, #tpu.memory_space<vmem>>, vector<4x32xf32>
      %c0_11 = arith.constant 0 : index
      %c0_12 = arith.constant 0 : index
      %13 = vector.load %arg3[%c0_11, %c0_12] : memref<1x32xf32, #tpu.memory_space<vmem>>, vector<1x32xf32>
      %14 = vector.broadcast %13 : vector<1x32xf32> to vector<4x32xf32>
      %15 = arith.addf %12, %14 : vector<4x32xf32>
      %c0_13 = arith.constant 0 : index
      %c0_14 = arith.constant 0 : index
      %16 = vector.load %arg4[%c0_13, %c0_14] : memref<32x128xf32, #tpu.memory_space<vmem>>, vector<32x128xf32>
      %cst_15 = arith.constant dense<0.000000e+00> : vector<4x128xf32>
      %17 = tpu.matmul %15, %16, %cst_15 {dimension_numbers = #tpu.dot_dimension_numbers<[1], [0], [0], [1], [0, 0, 1, 1], [], []>} : vector<4x32xf32>, vector<32x128xf32>, vector<4x128xf32> -> vector<4x128xf32>
      %c0_16 = arith.constant 0 : index
      %c0_17 = arith.constant 0 : index
      %18 = vector.load %arg6[%c0_16, %c0_17] : memref<1x128xf32, #tpu.memory_space<vmem>>, vector<1x128xf32>
      %19 = vector.broadcast %18 : vector<1x128xf32> to vector<4x128xf32>
      %20 = arith.addf %17, %19 : vector<4x128xf32>
      %c0_18 = arith.constant 0 : index
      %c0_19 = arith.constant 0 : index
      %21 = vector.load %arg5[%c0_18, %c0_19] : memref<32x128xf32, #tpu.memory_space<vmem>>, vector<32x128xf32>
      %cst_20 = arith.constant 0.000000e+00 : f32
      %22 = vector.broadcast %cst_20 : f32 to vector<1x32xf32>
      %cst_21 = arith.constant 0.000000e+00 : f32
      %23 = vector.broadcast %cst_21 : f32 to vector<1x32xf32>
      %24 = vector.extract_strided_slice %20 {offsets = [0, 0], sizes = [1, 128], strides = [1, 1]} : vector<4x128xf32> to vector<1x128xf32>
      %cst_22 = arith.constant dense<0.000000e+00> : vector<1x128xf32>
      %25 = tpu.matmul %22, %21, %cst_22 {dimension_numbers = #tpu.dot_dimension_numbers<[1], [0], [0], [1], [0, 0, 1, 1], [], []>} : vector<1x32xf32>, vector<32x128xf32>, vector<1x128xf32> -> vector<1x128xf32>
      %26 = arith.addf %24, %25 : vector<1x128xf32>
      %27 = vector.extract_strided_slice %26 {offsets = [0, 0], sizes = [1, 32], strides = [1, 1]} : vector<1x128xf32> to vector<1x32xf32>
      %cst_23 = arith.constant 0.000000e+00 : f32
      %28 = vector.broadcast %cst_23 : f32 to vector<1x32xf32>
      %29 = arith.subf %28, %27 : vector<1x32xf32>
      %30 = math.exp %29 : vector<1x32xf32>
      %cst_24 = arith.constant 1.000000e+00 : f32
      %31 = vector.broadcast %cst_24 : f32 to vector<1x32xf32>
      %32 = arith.addf %31, %30 : vector<1x32xf32>
      %cst_25 = arith.constant 1.000000e+00 : f32
      %33 = vector.broadcast %cst_25 : f32 to vector<1x32xf32>
      %34 = arith.divf %33, %32 : vector<1x32xf32>
      %35 = vector.extract_strided_slice %26 {offsets = [0, 32], sizes = [1, 32], strides = [1, 1]} : vector<1x128xf32> to vector<1x32xf32>
      %cst_26 = arith.constant 0.000000e+00 : f32
      %36 = vector.broadcast %cst_26 : f32 to vector<1x32xf32>
      %37 = arith.subf %36, %35 : vector<1x32xf32>
      %38 = math.exp %37 : vector<1x32xf32>
      %cst_27 = arith.constant 1.000000e+00 : f32
      %39 = vector.broadcast %cst_27 : f32 to vector<1x32xf32>
      %40 = arith.addf %39, %38 : vector<1x32xf32>
      %cst_28 = arith.constant 1.000000e+00 : f32
      %41 = vector.broadcast %cst_28 : f32 to vector<1x32xf32>
      %42 = arith.divf %41, %40 : vector<1x32xf32>
      %43 = vector.extract_strided_slice %26 {offsets = [0, 64], sizes = [1, 32], strides = [1, 1]} : vector<1x128xf32> to vector<1x32xf32>
      %44 = math.tanh %43 : vector<1x32xf32>
      %45 = vector.extract_strided_slice %26 {offsets = [0, 96], sizes = [1, 32], strides = [1, 1]} : vector<1x128xf32> to vector<1x32xf32>
      %cst_29 = arith.constant 0.000000e+00 : f32
      %46 = vector.broadcast %cst_29 : f32 to vector<1x32xf32>
      %47 = arith.subf %46, %45 : vector<1x32xf32>
      %48 = math.exp %47 : vector<1x32xf32>
      %cst_30 = arith.constant 1.000000e+00 : f32
      %49 = vector.broadcast %cst_30 : f32 to vector<1x32xf32>
      %50 = arith.addf %49, %48 : vector<1x32xf32>
      %cst_31 = arith.constant 1.000000e+00 : f32
      %51 = vector.broadcast %cst_31 : f32 to vector<1x32xf32>
      %52 = arith.divf %51, %50 : vector<1x32xf32>
      %53 = arith.mulf %42, %23 : vector<1x32xf32>
      %54 = arith.mulf %34, %44 : vector<1x32xf32>
      %55 = arith.addf %53, %54 : vector<1x32xf32>
      %56 = math.tanh %55 : vector<1x32xf32>
      %57 = arith.mulf %52, %56 : vector<1x32xf32>
      %58 = vector.extract_strided_slice %20 {offsets = [1, 0], sizes = [1, 128], strides = [1, 1]} : vector<4x128xf32> to vector<1x128xf32>
      %cst_32 = arith.constant dense<0.000000e+00> : vector<1x128xf32>
      %59 = tpu.matmul %57, %21, %cst_32 {dimension_numbers = #tpu.dot_dimension_numbers<[1], [0], [0], [1], [0, 0, 1, 1], [], []>} : vector<1x32xf32>, vector<32x128xf32>, vector<1x128xf32> -> vector<1x128xf32>
      %60 = arith.addf %58, %59 : vector<1x128xf32>
      %61 = vector.extract_strided_slice %60 {offsets = [0, 0], sizes = [1, 32], strides = [1, 1]} : vector<1x128xf32> to vector<1x32xf32>
      %cst_33 = arith.constant 0.000000e+00 : f32
      %62 = vector.broadcast %cst_33 : f32 to vector<1x32xf32>
      %63 = arith.subf %62, %61 : vector<1x32xf32>
      %64 = math.exp %63 : vector<1x32xf32>
      %cst_34 = arith.constant 1.000000e+00 : f32
      %65 = vector.broadcast %cst_34 : f32 to vector<1x32xf32>
      %66 = arith.addf %65, %64 : vector<1x32xf32>
      %cst_35 = arith.constant 1.000000e+00 : f32
      %67 = vector.broadcast %cst_35 : f32 to vector<1x32xf32>
      %68 = arith.divf %67, %66 : vector<1x32xf32>
      %69 = vector.extract_strided_slice %60 {offsets = [0, 32], sizes = [1, 32], strides = [1, 1]} : vector<1x128xf32> to vector<1x32xf32>
      %cst_36 = arith.constant 0.000000e+00 : f32
      %70 = vector.broadcast %cst_36 : f32 to vector<1x32xf32>
      %71 = arith.subf %70, %69 : vector<1x32xf32>
      %72 = math.exp %71 : vector<1x32xf32>
      %cst_37 = arith.constant 1.000000e+00 : f32
      %73 = vector.broadcast %cst_37 : f32 to vector<1x32xf32>
      %74 = arith.addf %73, %72 : vector<1x32xf32>
      %cst_38 = arith.constant 1.000000e+00 : f32
      %75 = vector.broadcast %cst_38 : f32 to vector<1x32xf32>
      %76 = arith.divf %75, %74 : vector<1x32xf32>
      %77 = vector.extract_strided_slice %60 {offsets = [0, 64], sizes = [1, 32], strides = [1, 1]} : vector<1x128xf32> to vector<1x32xf32>
      %78 = math.tanh %77 : vector<1x32xf32>
      %79 = vector.extract_strided_slice %60 {offsets = [0, 96], sizes = [1, 32], strides = [1, 1]} : vector<1x128xf32> to vector<1x32xf32>
      %cst_39 = arith.constant 0.000000e+00 : f32
      %80 = vector.broadcast %cst_39 : f32 to vector<1x32xf32>
      %81 = arith.subf %80, %79 : vector<1x32xf32>
      %82 = math.exp %81 : vector<1x32xf32>
      %cst_40 = arith.constant 1.000000e+00 : f32
      %83 = vector.broadcast %cst_40 : f32 to vector<1x32xf32>
      %84 = arith.addf %83, %82 : vector<1x32xf32>
      %cst_41 = arith.constant 1.000000e+00 : f32
      %85 = vector.broadcast %cst_41 : f32 to vector<1x32xf32>
      %86 = arith.divf %85, %84 : vector<1x32xf32>
      %87 = arith.mulf %76, %55 : vector<1x32xf32>
      %88 = arith.mulf %68, %78 : vector<1x32xf32>
      %89 = arith.addf %87, %88 : vector<1x32xf32>
      %90 = math.tanh %89 : vector<1x32xf32>
      %91 = arith.mulf %86, %90 : vector<1x32xf32>
      %92 = vector.extract_strided_slice %20 {offsets = [2, 0], sizes = [1, 128], strides = [1, 1]} : vector<4x128xf32> to vector<1x128xf32>
      %cst_42 = arith.constant dense<0.000000e+00> : vector<1x128xf32>
      %93 = tpu.matmul %91, %21, %cst_42 {dimension_numbers = #tpu.dot_dimension_numbers<[1], [0], [0], [1], [0, 0, 1, 1], [], []>} : vector<1x32xf32>, vector<32x128xf32>, vector<1x128xf32> -> vector<1x128xf32>
      %94 = arith.addf %92, %93 : vector<1x128xf32>
      %95 = vector.extract_strided_slice %94 {offsets = [0, 0], sizes = [1, 32], strides = [1, 1]} : vector<1x128xf32> to vector<1x32xf32>
      %cst_43 = arith.constant 0.000000e+00 : f32
      %96 = vector.broadcast %cst_43 : f32 to vector<1x32xf32>
      %97 = arith.subf %96, %95 : vector<1x32xf32>
      %98 = math.exp %97 : vector<1x32xf32>
      %cst_44 = arith.constant 1.000000e+00 : f32
      %99 = vector.broadcast %cst_44 : f32 to vector<1x32xf32>
      %100 = arith.addf %99, %98 : vector<1x32xf32>
      %cst_45 = arith.constant 1.000000e+00 : f32
      %101 = vector.broadcast %cst_45 : f32 to vector<1x32xf32>
      %102 = arith.divf %101, %100 : vector<1x32xf32>
      %103 = vector.extract_strided_slice %94 {offsets = [0, 32], sizes = [1, 32], strides = [1, 1]} : vector<1x128xf32> to vector<1x32xf32>
      %cst_46 = arith.constant 0.000000e+00 : f32
      %104 = vector.broadcast %cst_46 : f32 to vector<1x32xf32>
      %105 = arith.subf %104, %103 : vector<1x32xf32>
      %106 = math.exp %105 : vector<1x32xf32>
      %cst_47 = arith.constant 1.000000e+00 : f32
      %107 = vector.broadcast %cst_47 : f32 to vector<1x32xf32>
      %108 = arith.addf %107, %106 : vector<1x32xf32>
      %cst_48 = arith.constant 1.000000e+00 : f32
      %109 = vector.broadcast %cst_48 : f32 to vector<1x32xf32>
      %110 = arith.divf %109, %108 : vector<1x32xf32>
      %111 = vector.extract_strided_slice %94 {offsets = [0, 64], sizes = [1, 32], strides = [1, 1]} : vector<1x128xf32> to vector<1x32xf32>
      %112 = math.tanh %111 : vector<1x32xf32>
      %113 = vector.extract_strided_slice %94 {offsets = [0, 96], sizes = [1, 32], strides = [1, 1]} : vector<1x128xf32> to vector<1x32xf32>
      %cst_49 = arith.constant 0.000000e+00 : f32
      %114 = vector.broadcast %cst_49 : f32 to vector<1x32xf32>
      %115 = arith.subf %114, %113 : vector<1x32xf32>
      %116 = math.exp %115 : vector<1x32xf32>
      %cst_50 = arith.constant 1.000000e+00 : f32
      %117 = vector.broadcast %cst_50 : f32 to vector<1x32xf32>
      %118 = arith.addf %117, %116 : vector<1x32xf32>
      %cst_51 = arith.constant 1.000000e+00 : f32
      %119 = vector.broadcast %cst_51 : f32 to vector<1x32xf32>
      %120 = arith.divf %119, %118 : vector<1x32xf32>
      %121 = arith.mulf %110, %89 : vector<1x32xf32>
      %122 = arith.mulf %102, %112 : vector<1x32xf32>
      %123 = arith.addf %121, %122 : vector<1x32xf32>
      %124 = math.tanh %123 : vector<1x32xf32>
      %125 = arith.mulf %120, %124 : vector<1x32xf32>
      %126 = vector.extract_strided_slice %20 {offsets = [3, 0], sizes = [1, 128], strides = [1, 1]} : vector<4x128xf32> to vector<1x128xf32>
      %cst_52 = arith.constant dense<0.000000e+00> : vector<1x128xf32>
      %127 = tpu.matmul %125, %21, %cst_52 {dimension_numbers = #tpu.dot_dimension_numbers<[1], [0], [0], [1], [0, 0, 1, 1], [], []>} : vector<1x32xf32>, vector<32x128xf32>, vector<1x128xf32> -> vector<1x128xf32>
      %128 = arith.addf %126, %127 : vector<1x128xf32>
      %129 = vector.extract_strided_slice %128 {offsets = [0, 0], sizes = [1, 32], strides = [1, 1]} : vector<1x128xf32> to vector<1x32xf32>
      %cst_53 = arith.constant 0.000000e+00 : f32
      %130 = vector.broadcast %cst_53 : f32 to vector<1x32xf32>
      %131 = arith.subf %130, %129 : vector<1x32xf32>
      %132 = math.exp %131 : vector<1x32xf32>
      %cst_54 = arith.constant 1.000000e+00 : f32
      %133 = vector.broadcast %cst_54 : f32 to vector<1x32xf32>
      %134 = arith.addf %133, %132 : vector<1x32xf32>
      %cst_55 = arith.constant 1.000000e+00 : f32
      %135 = vector.broadcast %cst_55 : f32 to vector<1x32xf32>
      %136 = arith.divf %135, %134 : vector<1x32xf32>
      %137 = vector.extract_strided_slice %128 {offsets = [0, 32], sizes = [1, 32], strides = [1, 1]} : vector<1x128xf32> to vector<1x32xf32>
      %cst_56 = arith.constant 0.000000e+00 : f32
      %138 = vector.broadcast %cst_56 : f32 to vector<1x32xf32>
      %139 = arith.subf %138, %137 : vector<1x32xf32>
      %140 = math.exp %139 : vector<1x32xf32>
      %cst_57 = arith.constant 1.000000e+00 : f32
      %141 = vector.broadcast %cst_57 : f32 to vector<1x32xf32>
      %142 = arith.addf %141, %140 : vector<1x32xf32>
      %cst_58 = arith.constant 1.000000e+00 : f32
      %143 = vector.broadcast %cst_58 : f32 to vector<1x32xf32>
      %144 = arith.divf %143, %142 : vector<1x32xf32>
      %145 = vector.extract_strided_slice %128 {offsets = [0, 64], sizes = [1, 32], strides = [1, 1]} : vector<1x128xf32> to vector<1x32xf32>
      %146 = math.tanh %145 : vector<1x32xf32>
      %147 = vector.extract_strided_slice %128 {offsets = [0, 96], sizes = [1, 32], strides = [1, 1]} : vector<1x128xf32> to vector<1x32xf32>
      %cst_59 = arith.constant 0.000000e+00 : f32
      %148 = vector.broadcast %cst_59 : f32 to vector<1x32xf32>
      %149 = arith.subf %148, %147 : vector<1x32xf32>
      %150 = math.exp %149 : vector<1x32xf32>
      %cst_60 = arith.constant 1.000000e+00 : f32
      %151 = vector.broadcast %cst_60 : f32 to vector<1x32xf32>
      %152 = arith.addf %151, %150 : vector<1x32xf32>
      %cst_61 = arith.constant 1.000000e+00 : f32
      %153 = vector.broadcast %cst_61 : f32 to vector<1x32xf32>
      %154 = arith.divf %153, %152 : vector<1x32xf32>
      %155 = arith.mulf %144, %123 : vector<1x32xf32>
      %156 = arith.mulf %136, %146 : vector<1x32xf32>
      %157 = arith.addf %155, %156 : vector<1x32xf32>
      %158 = math.tanh %157 : vector<1x32xf32>
      %159 = arith.mulf %154, %158 : vector<1x32xf32>
      %160 = tpu.concatenate %57, %91, %125, %159 in 0 : vector<1x32xf32>, vector<1x32xf32>, vector<1x32xf32>, vector<1x32xf32> -> vector<4x32xf32>
      %c0_62 = arith.constant 0 : index
      %c0_63 = arith.constant 0 : index
      %161 = vector.load %arg7[%c0_62, %c0_63] : memref<32x128xf32, #tpu.memory_space<vmem>>, vector<32x128xf32>
      %cst_64 = arith.constant dense<0.000000e+00> : vector<4x128xf32>
      %162 = tpu.matmul %160, %161, %cst_64 {dimension_numbers = #tpu.dot_dimension_numbers<[1], [0], [0], [1], [0, 0, 1, 1], [], []>} : vector<4x32xf32>, vector<32x128xf32>, vector<4x128xf32> -> vector<4x128xf32>
      %c0_65 = arith.constant 0 : index
      %c0_66 = arith.constant 0 : index
      %163 = vector.load %arg9[%c0_65, %c0_66] : memref<1x128xf32, #tpu.memory_space<vmem>>, vector<1x128xf32>
      %164 = vector.broadcast %163 : vector<1x128xf32> to vector<4x128xf32>
      %165 = arith.addf %162, %164 : vector<4x128xf32>
      %c0_67 = arith.constant 0 : index
      %c0_68 = arith.constant 0 : index
      %166 = vector.load %arg8[%c0_67, %c0_68] : memref<32x128xf32, #tpu.memory_space<vmem>>, vector<32x128xf32>
      %cst_69 = arith.constant 0.000000e+00 : f32
      %167 = vector.broadcast %cst_69 : f32 to vector<1x32xf32>
      %cst_70 = arith.constant 0.000000e+00 : f32
      %168 = vector.broadcast %cst_70 : f32 to vector<1x32xf32>
      %169 = vector.extract_strided_slice %165 {offsets = [0, 0], sizes = [1, 128], strides = [1, 1]} : vector<4x128xf32> to vector<1x128xf32>
      %cst_71 = arith.constant dense<0.000000e+00> : vector<1x128xf32>
      %170 = tpu.matmul %167, %166, %cst_71 {dimension_numbers = #tpu.dot_dimension_numbers<[1], [0], [0], [1], [0, 0, 1, 1], [], []>} : vector<1x32xf32>, vector<32x128xf32>, vector<1x128xf32> -> vector<1x128xf32>
      %171 = arith.addf %169, %170 : vector<1x128xf32>
      %172 = vector.extract_strided_slice %171 {offsets = [0, 0], sizes = [1, 32], strides = [1, 1]} : vector<1x128xf32> to vector<1x32xf32>
      %cst_72 = arith.constant 0.000000e+00 : f32
      %173 = vector.broadcast %cst_72 : f32 to vector<1x32xf32>
      %174 = arith.subf %173, %172 : vector<1x32xf32>
      %175 = math.exp %174 : vector<1x32xf32>
      %cst_73 = arith.constant 1.000000e+00 : f32
      %176 = vector.broadcast %cst_73 : f32 to vector<1x32xf32>
      %177 = arith.addf %176, %175 : vector<1x32xf32>
      %cst_74 = arith.constant 1.000000e+00 : f32
      %178 = vector.broadcast %cst_74 : f32 to vector<1x32xf32>
      %179 = arith.divf %178, %177 : vector<1x32xf32>
      %180 = vector.extract_strided_slice %171 {offsets = [0, 32], sizes = [1, 32], strides = [1, 1]} : vector<1x128xf32> to vector<1x32xf32>
      %cst_75 = arith.constant 0.000000e+00 : f32
      %181 = vector.broadcast %cst_75 : f32 to vector<1x32xf32>
      %182 = arith.subf %181, %180 : vector<1x32xf32>
      %183 = math.exp %182 : vector<1x32xf32>
      %cst_76 = arith.constant 1.000000e+00 : f32
      %184 = vector.broadcast %cst_76 : f32 to vector<1x32xf32>
      %185 = arith.addf %184, %183 : vector<1x32xf32>
      %cst_77 = arith.constant 1.000000e+00 : f32
      %186 = vector.broadcast %cst_77 : f32 to vector<1x32xf32>
      %187 = arith.divf %186, %185 : vector<1x32xf32>
      %188 = vector.extract_strided_slice %171 {offsets = [0, 64], sizes = [1, 32], strides = [1, 1]} : vector<1x128xf32> to vector<1x32xf32>
      %189 = math.tanh %188 : vector<1x32xf32>
      %190 = vector.extract_strided_slice %171 {offsets = [0, 96], sizes = [1, 32], strides = [1, 1]} : vector<1x128xf32> to vector<1x32xf32>
      %cst_78 = arith.constant 0.000000e+00 : f32
      %191 = vector.broadcast %cst_78 : f32 to vector<1x32xf32>
      %192 = arith.subf %191, %190 : vector<1x32xf32>
      %193 = math.exp %192 : vector<1x32xf32>
      %cst_79 = arith.constant 1.000000e+00 : f32
      %194 = vector.broadcast %cst_79 : f32 to vector<1x32xf32>
      %195 = arith.addf %194, %193 : vector<1x32xf32>
      %cst_80 = arith.constant 1.000000e+00 : f32
      %196 = vector.broadcast %cst_80 : f32 to vector<1x32xf32>
      %197 = arith.divf %196, %195 : vector<1x32xf32>
      %198 = arith.mulf %187, %168 : vector<1x32xf32>
      %199 = arith.mulf %179, %189 : vector<1x32xf32>
      %200 = arith.addf %198, %199 : vector<1x32xf32>
      %201 = math.tanh %200 : vector<1x32xf32>
      %202 = arith.mulf %197, %201 : vector<1x32xf32>
      %203 = vector.extract_strided_slice %165 {offsets = [1, 0], sizes = [1, 128], strides = [1, 1]} : vector<4x128xf32> to vector<1x128xf32>
      %cst_81 = arith.constant dense<0.000000e+00> : vector<1x128xf32>
      %204 = tpu.matmul %202, %166, %cst_81 {dimension_numbers = #tpu.dot_dimension_numbers<[1], [0], [0], [1], [0, 0, 1, 1], [], []>} : vector<1x32xf32>, vector<32x128xf32>, vector<1x128xf32> -> vector<1x128xf32>
      %205 = arith.addf %203, %204 : vector<1x128xf32>
      %206 = vector.extract_strided_slice %205 {offsets = [0, 0], sizes = [1, 32], strides = [1, 1]} : vector<1x128xf32> to vector<1x32xf32>
      %cst_82 = arith.constant 0.000000e+00 : f32
      %207 = vector.broadcast %cst_82 : f32 to vector<1x32xf32>
      %208 = arith.subf %207, %206 : vector<1x32xf32>
      %209 = math.exp %208 : vector<1x32xf32>
      %cst_83 = arith.constant 1.000000e+00 : f32
      %210 = vector.broadcast %cst_83 : f32 to vector<1x32xf32>
      %211 = arith.addf %210, %209 : vector<1x32xf32>
      %cst_84 = arith.constant 1.000000e+00 : f32
      %212 = vector.broadcast %cst_84 : f32 to vector<1x32xf32>
      %213 = arith.divf %212, %211 : vector<1x32xf32>
      %214 = vector.extract_strided_slice %205 {offsets = [0, 32], sizes = [1, 32], strides = [1, 1]} : vector<1x128xf32> to vector<1x32xf32>
      %cst_85 = arith.constant 0.000000e+00 : f32
      %215 = vector.broadcast %cst_85 : f32 to vector<1x32xf32>
      %216 = arith.subf %215, %214 : vector<1x32xf32>
      %217 = math.exp %216 : vector<1x32xf32>
      %cst_86 = arith.constant 1.000000e+00 : f32
      %218 = vector.broadcast %cst_86 : f32 to vector<1x32xf32>
      %219 = arith.addf %218, %217 : vector<1x32xf32>
      %cst_87 = arith.constant 1.000000e+00 : f32
      %220 = vector.broadcast %cst_87 : f32 to vector<1x32xf32>
      %221 = arith.divf %220, %219 : vector<1x32xf32>
      %222 = vector.extract_strided_slice %205 {offsets = [0, 64], sizes = [1, 32], strides = [1, 1]} : vector<1x128xf32> to vector<1x32xf32>
      %223 = math.tanh %222 : vector<1x32xf32>
      %224 = vector.extract_strided_slice %205 {offsets = [0, 96], sizes = [1, 32], strides = [1, 1]} : vector<1x128xf32> to vector<1x32xf32>
      %cst_88 = arith.constant 0.000000e+00 : f32
      %225 = vector.broadcast %cst_88 : f32 to vector<1x32xf32>
      %226 = arith.subf %225, %224 : vector<1x32xf32>
      %227 = math.exp %226 : vector<1x32xf32>
      %cst_89 = arith.constant 1.000000e+00 : f32
      %228 = vector.broadcast %cst_89 : f32 to vector<1x32xf32>
      %229 = arith.addf %228, %227 : vector<1x32xf32>
      %cst_90 = arith.constant 1.000000e+00 : f32
      %230 = vector.broadcast %cst_90 : f32 to vector<1x32xf32>
      %231 = arith.divf %230, %229 : vector<1x32xf32>
      %232 = arith.mulf %221, %200 : vector<1x32xf32>
      %233 = arith.mulf %213, %223 : vector<1x32xf32>
      %234 = arith.addf %232, %233 : vector<1x32xf32>
      %235 = math.tanh %234 : vector<1x32xf32>
      %236 = arith.mulf %231, %235 : vector<1x32xf32>
      %237 = vector.extract_strided_slice %165 {offsets = [2, 0], sizes = [1, 128], strides = [1, 1]} : vector<4x128xf32> to vector<1x128xf32>
      %cst_91 = arith.constant dense<0.000000e+00> : vector<1x128xf32>
      %238 = tpu.matmul %236, %166, %cst_91 {dimension_numbers = #tpu.dot_dimension_numbers<[1], [0], [0], [1], [0, 0, 1, 1], [], []>} : vector<1x32xf32>, vector<32x128xf32>, vector<1x128xf32> -> vector<1x128xf32>
      %239 = arith.addf %237, %238 : vector<1x128xf32>
      %240 = vector.extract_strided_slice %239 {offsets = [0, 0], sizes = [1, 32], strides = [1, 1]} : vector<1x128xf32> to vector<1x32xf32>
      %cst_92 = arith.constant 0.000000e+00 : f32
      %241 = vector.broadcast %cst_92 : f32 to vector<1x32xf32>
      %242 = arith.subf %241, %240 : vector<1x32xf32>
      %243 = math.exp %242 : vector<1x32xf32>
      %cst_93 = arith.constant 1.000000e+00 : f32
      %244 = vector.broadcast %cst_93 : f32 to vector<1x32xf32>
      %245 = arith.addf %244, %243 : vector<1x32xf32>
      %cst_94 = arith.constant 1.000000e+00 : f32
      %246 = vector.broadcast %cst_94 : f32 to vector<1x32xf32>
      %247 = arith.divf %246, %245 : vector<1x32xf32>
      %248 = vector.extract_strided_slice %239 {offsets = [0, 32], sizes = [1, 32], strides = [1, 1]} : vector<1x128xf32> to vector<1x32xf32>
      %cst_95 = arith.constant 0.000000e+00 : f32
      %249 = vector.broadcast %cst_95 : f32 to vector<1x32xf32>
      %250 = arith.subf %249, %248 : vector<1x32xf32>
      %251 = math.exp %250 : vector<1x32xf32>
      %cst_96 = arith.constant 1.000000e+00 : f32
      %252 = vector.broadcast %cst_96 : f32 to vector<1x32xf32>
      %253 = arith.addf %252, %251 : vector<1x32xf32>
      %cst_97 = arith.constant 1.000000e+00 : f32
      %254 = vector.broadcast %cst_97 : f32 to vector<1x32xf32>
      %255 = arith.divf %254, %253 : vector<1x32xf32>
      %256 = vector.extract_strided_slice %239 {offsets = [0, 64], sizes = [1, 32], strides = [1, 1]} : vector<1x128xf32> to vector<1x32xf32>
      %257 = math.tanh %256 : vector<1x32xf32>
      %258 = vector.extract_strided_slice %239 {offsets = [0, 96], sizes = [1, 32], strides = [1, 1]} : vector<1x128xf32> to vector<1x32xf32>
      %cst_98 = arith.constant 0.000000e+00 : f32
      %259 = vector.broadcast %cst_98 : f32 to vector<1x32xf32>
      %260 = arith.subf %259, %258 : vector<1x32xf32>
      %261 = math.exp %260 : vector<1x32xf32>
      %cst_99 = arith.constant 1.000000e+00 : f32
      %262 = vector.broadcast %cst_99 : f32 to vector<1x32xf32>
      %263 = arith.addf %262, %261 : vector<1x32xf32>
      %cst_100 = arith.constant 1.000000e+00 : f32
      %264 = vector.broadcast %cst_100 : f32 to vector<1x32xf32>
      %265 = arith.divf %264, %263 : vector<1x32xf32>
      %266 = arith.mulf %255, %234 : vector<1x32xf32>
      %267 = arith.mulf %247, %257 : vector<1x32xf32>
      %268 = arith.addf %266, %267 : vector<1x32xf32>
      %269 = math.tanh %268 : vector<1x32xf32>
      %270 = arith.mulf %265, %269 : vector<1x32xf32>
      %271 = vector.extract_strided_slice %165 {offsets = [3, 0], sizes = [1, 128], strides = [1, 1]} : vector<4x128xf32> to vector<1x128xf32>
      %cst_101 = arith.constant dense<0.000000e+00> : vector<1x128xf32>
      %272 = tpu.matmul %270, %166, %cst_101 {dimension_numbers = #tpu.dot_dimension_numbers<[1], [0], [0], [1], [0, 0, 1, 1], [], []>} : vector<1x32xf32>, vector<32x128xf32>, vector<1x128xf32> -> vector<1x128xf32>
      %273 = arith.addf %271, %272 : vector<1x128xf32>
      %274 = vector.extract_strided_slice %273 {offsets = [0, 0], sizes = [1, 32], strides = [1, 1]} : vector<1x128xf32> to vector<1x32xf32>
      %cst_102 = arith.constant 0.000000e+00 : f32
      %275 = vector.broadcast %cst_102 : f32 to vector<1x32xf32>
      %276 = arith.subf %275, %274 : vector<1x32xf32>
      %277 = math.exp %276 : vector<1x32xf32>
      %cst_103 = arith.constant 1.000000e+00 : f32
      %278 = vector.broadcast %cst_103 : f32 to vector<1x32xf32>
      %279 = arith.addf %278, %277 : vector<1x32xf32>
      %cst_104 = arith.constant 1.000000e+00 : f32
      %280 = vector.broadcast %cst_104 : f32 to vector<1x32xf32>
      %281 = arith.divf %280, %279 : vector<1x32xf32>
      %282 = vector.extract_strided_slice %273 {offsets = [0, 32], sizes = [1, 32], strides = [1, 1]} : vector<1x128xf32> to vector<1x32xf32>
      %cst_105 = arith.constant 0.000000e+00 : f32
      %283 = vector.broadcast %cst_105 : f32 to vector<1x32xf32>
      %284 = arith.subf %283, %282 : vector<1x32xf32>
      %285 = math.exp %284 : vector<1x32xf32>
      %cst_106 = arith.constant 1.000000e+00 : f32
      %286 = vector.broadcast %cst_106 : f32 to vector<1x32xf32>
      %287 = arith.addf %286, %285 : vector<1x32xf32>
      %cst_107 = arith.constant 1.000000e+00 : f32
      %288 = vector.broadcast %cst_107 : f32 to vector<1x32xf32>
      %289 = arith.divf %288, %287 : vector<1x32xf32>
      %290 = vector.extract_strided_slice %273 {offsets = [0, 64], sizes = [1, 32], strides = [1, 1]} : vector<1x128xf32> to vector<1x32xf32>
      %291 = math.tanh %290 : vector<1x32xf32>
      %292 = vector.extract_strided_slice %273 {offsets = [0, 96], sizes = [1, 32], strides = [1, 1]} : vector<1x128xf32> to vector<1x32xf32>
      %cst_108 = arith.constant 0.000000e+00 : f32
      %293 = vector.broadcast %cst_108 : f32 to vector<1x32xf32>
      %294 = arith.subf %293, %292 : vector<1x32xf32>
      %295 = math.exp %294 : vector<1x32xf32>
      %cst_109 = arith.constant 1.000000e+00 : f32
      %296 = vector.broadcast %cst_109 : f32 to vector<1x32xf32>
      %297 = arith.addf %296, %295 : vector<1x32xf32>
      %cst_110 = arith.constant 1.000000e+00 : f32
      %298 = vector.broadcast %cst_110 : f32 to vector<1x32xf32>
      %299 = arith.divf %298, %297 : vector<1x32xf32>
      %300 = arith.mulf %289, %268 : vector<1x32xf32>
      %301 = arith.mulf %281, %291 : vector<1x32xf32>
      %302 = arith.addf %300, %301 : vector<1x32xf32>
      %303 = math.tanh %302 : vector<1x32xf32>
      %304 = arith.mulf %299, %303 : vector<1x32xf32>
      %305 = tpu.concatenate %202, %236, %270, %304 in 0 : vector<1x32xf32>, vector<1x32xf32>, vector<1x32xf32>, vector<1x32xf32> -> vector<4x32xf32>
      %c0_111 = arith.constant 0 : index
      %c0_112 = arith.constant 0 : index
      %306 = vector.load %arg10[%c0_111, %c0_112] : memref<32x128xf32, #tpu.memory_space<vmem>>, vector<32x128xf32>
      %cst_113 = arith.constant dense<0.000000e+00> : vector<4x128xf32>
      %307 = tpu.matmul %305, %306, %cst_113 {dimension_numbers = #tpu.dot_dimension_numbers<[1], [0], [0], [1], [0, 0, 1, 1], [], []>} : vector<4x32xf32>, vector<32x128xf32>, vector<4x128xf32> -> vector<4x128xf32>
      %c0_114 = arith.constant 0 : index
      %c0_115 = arith.constant 0 : index
      %308 = vector.load %arg12[%c0_114, %c0_115] : memref<1x128xf32, #tpu.memory_space<vmem>>, vector<1x128xf32>
      %309 = vector.broadcast %308 : vector<1x128xf32> to vector<4x128xf32>
      %310 = arith.addf %307, %309 : vector<4x128xf32>
      %c0_116 = arith.constant 0 : index
      %c0_117 = arith.constant 0 : index
      %311 = vector.load %arg11[%c0_116, %c0_117] : memref<32x128xf32, #tpu.memory_space<vmem>>, vector<32x128xf32>
      %cst_118 = arith.constant 0.000000e+00 : f32
      %312 = vector.broadcast %cst_118 : f32 to vector<1x32xf32>
      %cst_119 = arith.constant 0.000000e+00 : f32
      %313 = vector.broadcast %cst_119 : f32 to vector<1x32xf32>
      %314 = vector.extract_strided_slice %310 {offsets = [0, 0], sizes = [1, 128], strides = [1, 1]} : vector<4x128xf32> to vector<1x128xf32>
      %cst_120 = arith.constant dense<0.000000e+00> : vector<1x128xf32>
      %315 = tpu.matmul %312, %311, %cst_120 {dimension_numbers = #tpu.dot_dimension_numbers<[1], [0], [0], [1], [0, 0, 1, 1], [], []>} : vector<1x32xf32>, vector<32x128xf32>, vector<1x128xf32> -> vector<1x128xf32>
      %316 = arith.addf %314, %315 : vector<1x128xf32>
      %317 = vector.extract_strided_slice %316 {offsets = [0, 0], sizes = [1, 32], strides = [1, 1]} : vector<1x128xf32> to vector<1x32xf32>
      %cst_121 = arith.constant 0.000000e+00 : f32
      %318 = vector.broadcast %cst_121 : f32 to vector<1x32xf32>
      %319 = arith.subf %318, %317 : vector<1x32xf32>
      %320 = math.exp %319 : vector<1x32xf32>
      %cst_122 = arith.constant 1.000000e+00 : f32
      %321 = vector.broadcast %cst_122 : f32 to vector<1x32xf32>
      %322 = arith.addf %321, %320 : vector<1x32xf32>
      %cst_123 = arith.constant 1.000000e+00 : f32
      %323 = vector.broadcast %cst_123 : f32 to vector<1x32xf32>
      %324 = arith.divf %323, %322 : vector<1x32xf32>
      %325 = vector.extract_strided_slice %316 {offsets = [0, 32], sizes = [1, 32], strides = [1, 1]} : vector<1x128xf32> to vector<1x32xf32>
      %cst_124 = arith.constant 0.000000e+00 : f32
      %326 = vector.broadcast %cst_124 : f32 to vector<1x32xf32>
      %327 = arith.subf %326, %325 : vector<1x32xf32>
      %328 = math.exp %327 : vector<1x32xf32>
      %cst_125 = arith.constant 1.000000e+00 : f32
      %329 = vector.broadcast %cst_125 : f32 to vector<1x32xf32>
      %330 = arith.addf %329, %328 : vector<1x32xf32>
      %cst_126 = arith.constant 1.000000e+00 : f32
      %331 = vector.broadcast %cst_126 : f32 to vector<1x32xf32>
      %332 = arith.divf %331, %330 : vector<1x32xf32>
      %333 = vector.extract_strided_slice %316 {offsets = [0, 64], sizes = [1, 32], strides = [1, 1]} : vector<1x128xf32> to vector<1x32xf32>
      %334 = math.tanh %333 : vector<1x32xf32>
      %335 = vector.extract_strided_slice %316 {offsets = [0, 96], sizes = [1, 32], strides = [1, 1]} : vector<1x128xf32> to vector<1x32xf32>
      %cst_127 = arith.constant 0.000000e+00 : f32
      %336 = vector.broadcast %cst_127 : f32 to vector<1x32xf32>
      %337 = arith.subf %336, %335 : vector<1x32xf32>
      %338 = math.exp %337 : vector<1x32xf32>
      %cst_128 = arith.constant 1.000000e+00 : f32
      %339 = vector.broadcast %cst_128 : f32 to vector<1x32xf32>
      %340 = arith.addf %339, %338 : vector<1x32xf32>
      %cst_129 = arith.constant 1.000000e+00 : f32
      %341 = vector.broadcast %cst_129 : f32 to vector<1x32xf32>
      %342 = arith.divf %341, %340 : vector<1x32xf32>
      %343 = arith.mulf %332, %313 : vector<1x32xf32>
      %344 = arith.mulf %324, %334 : vector<1x32xf32>
      %345 = arith.addf %343, %344 : vector<1x32xf32>
      %346 = math.tanh %345 : vector<1x32xf32>
      %347 = arith.mulf %342, %346 : vector<1x32xf32>
      %348 = vector.extract_strided_slice %310 {offsets = [1, 0], sizes = [1, 128], strides = [1, 1]} : vector<4x128xf32> to vector<1x128xf32>
      %cst_130 = arith.constant dense<0.000000e+00> : vector<1x128xf32>
      %349 = tpu.matmul %347, %311, %cst_130 {dimension_numbers = #tpu.dot_dimension_numbers<[1], [0], [0], [1], [0, 0, 1, 1], [], []>} : vector<1x32xf32>, vector<32x128xf32>, vector<1x128xf32> -> vector<1x128xf32>
      %350 = arith.addf %348, %349 : vector<1x128xf32>
      %351 = vector.extract_strided_slice %350 {offsets = [0, 0], sizes = [1, 32], strides = [1, 1]} : vector<1x128xf32> to vector<1x32xf32>
      %cst_131 = arith.constant 0.000000e+00 : f32
      %352 = vector.broadcast %cst_131 : f32 to vector<1x32xf32>
      %353 = arith.subf %352, %351 : vector<1x32xf32>
      %354 = math.exp %353 : vector<1x32xf32>
      %cst_132 = arith.constant 1.000000e+00 : f32
      %355 = vector.broadcast %cst_132 : f32 to vector<1x32xf32>
      %356 = arith.addf %355, %354 : vector<1x32xf32>
      %cst_133 = arith.constant 1.000000e+00 : f32
      %357 = vector.broadcast %cst_133 : f32 to vector<1x32xf32>
      %358 = arith.divf %357, %356 : vector<1x32xf32>
      %359 = vector.extract_strided_slice %350 {offsets = [0, 32], sizes = [1, 32], strides = [1, 1]} : vector<1x128xf32> to vector<1x32xf32>
      %cst_134 = arith.constant 0.000000e+00 : f32
      %360 = vector.broadcast %cst_134 : f32 to vector<1x32xf32>
      %361 = arith.subf %360, %359 : vector<1x32xf32>
      %362 = math.exp %361 : vector<1x32xf32>
      %cst_135 = arith.constant 1.000000e+00 : f32
      %363 = vector.broadcast %cst_135 : f32 to vector<1x32xf32>
      %364 = arith.addf %363, %362 : vector<1x32xf32>
      %cst_136 = arith.constant 1.000000e+00 : f32
      %365 = vector.broadcast %cst_136 : f32 to vector<1x32xf32>
      %366 = arith.divf %365, %364 : vector<1x32xf32>
      %367 = vector.extract_strided_slice %350 {offsets = [0, 64], sizes = [1, 32], strides = [1, 1]} : vector<1x128xf32> to vector<1x32xf32>
      %368 = math.tanh %367 : vector<1x32xf32>
      %369 = vector.extract_strided_slice %350 {offsets = [0, 96], sizes = [1, 32], strides = [1, 1]} : vector<1x128xf32> to vector<1x32xf32>
      %cst_137 = arith.constant 0.000000e+00 : f32
      %370 = vector.broadcast %cst_137 : f32 to vector<1x32xf32>
      %371 = arith.subf %370, %369 : vector<1x32xf32>
      %372 = math.exp %371 : vector<1x32xf32>
      %cst_138 = arith.constant 1.000000e+00 : f32
      %373 = vector.broadcast %cst_138 : f32 to vector<1x32xf32>
      %374 = arith.addf %373, %372 : vector<1x32xf32>
      %cst_139 = arith.constant 1.000000e+00 : f32
      %375 = vector.broadcast %cst_139 : f32 to vector<1x32xf32>
      %376 = arith.divf %375, %374 : vector<1x32xf32>
      %377 = arith.mulf %366, %345 : vector<1x32xf32>
      %378 = arith.mulf %358, %368 : vector<1x32xf32>
      %379 = arith.addf %377, %378 : vector<1x32xf32>
      %380 = math.tanh %379 : vector<1x32xf32>
      %381 = arith.mulf %376, %380 : vector<1x32xf32>
      %382 = vector.extract_strided_slice %310 {offsets = [2, 0], sizes = [1, 128], strides = [1, 1]} : vector<4x128xf32> to vector<1x128xf32>
      %cst_140 = arith.constant dense<0.000000e+00> : vector<1x128xf32>
      %383 = tpu.matmul %381, %311, %cst_140 {dimension_numbers = #tpu.dot_dimension_numbers<[1], [0], [0], [1], [0, 0, 1, 1], [], []>} : vector<1x32xf32>, vector<32x128xf32>, vector<1x128xf32> -> vector<1x128xf32>
      %384 = arith.addf %382, %383 : vector<1x128xf32>
      %385 = vector.extract_strided_slice %384 {offsets = [0, 0], sizes = [1, 32], strides = [1, 1]} : vector<1x128xf32> to vector<1x32xf32>
      %cst_141 = arith.constant 0.000000e+00 : f32
      %386 = vector.broadcast %cst_141 : f32 to vector<1x32xf32>
      %387 = arith.subf %386, %385 : vector<1x32xf32>
      %388 = math.exp %387 : vector<1x32xf32>
      %cst_142 = arith.constant 1.000000e+00 : f32
      %389 = vector.broadcast %cst_142 : f32 to vector<1x32xf32>
      %390 = arith.addf %389, %388 : vector<1x32xf32>
      %cst_143 = arith.constant 1.000000e+00 : f32
      %391 = vector.broadcast %cst_143 : f32 to vector<1x32xf32>
      %392 = arith.divf %391, %390 : vector<1x32xf32>
      %393 = vector.extract_strided_slice %384 {offsets = [0, 32], sizes = [1, 32], strides = [1, 1]} : vector<1x128xf32> to vector<1x32xf32>
      %cst_144 = arith.constant 0.000000e+00 : f32
      %394 = vector.broadcast %cst_144 : f32 to vector<1x32xf32>
      %395 = arith.subf %394, %393 : vector<1x32xf32>
      %396 = math.exp %395 : vector<1x32xf32>
      %cst_145 = arith.constant 1.000000e+00 : f32
      %397 = vector.broadcast %cst_145 : f32 to vector<1x32xf32>
      %398 = arith.addf %397, %396 : vector<1x32xf32>
      %cst_146 = arith.constant 1.000000e+00 : f32
      %399 = vector.broadcast %cst_146 : f32 to vector<1x32xf32>
      %400 = arith.divf %399, %398 : vector<1x32xf32>
      %401 = vector.extract_strided_slice %384 {offsets = [0, 64], sizes = [1, 32], strides = [1, 1]} : vector<1x128xf32> to vector<1x32xf32>
      %402 = math.tanh %401 : vector<1x32xf32>
      %403 = vector.extract_strided_slice %384 {offsets = [0, 96], sizes = [1, 32], strides = [1, 1]} : vector<1x128xf32> to vector<1x32xf32>
      %cst_147 = arith.constant 0.000000e+00 : f32
      %404 = vector.broadcast %cst_147 : f32 to vector<1x32xf32>
      %405 = arith.subf %404, %403 : vector<1x32xf32>
      %406 = math.exp %405 : vector<1x32xf32>
      %cst_148 = arith.constant 1.000000e+00 : f32
      %407 = vector.broadcast %cst_148 : f32 to vector<1x32xf32>
      %408 = arith.addf %407, %406 : vector<1x32xf32>
      %cst_149 = arith.constant 1.000000e+00 : f32
      %409 = vector.broadcast %cst_149 : f32 to vector<1x32xf32>
      %410 = arith.divf %409, %408 : vector<1x32xf32>
      %411 = arith.mulf %400, %379 : vector<1x32xf32>
      %412 = arith.mulf %392, %402 : vector<1x32xf32>
      %413 = arith.addf %411, %412 : vector<1x32xf32>
      %414 = math.tanh %413 : vector<1x32xf32>
      %415 = arith.mulf %410, %414 : vector<1x32xf32>
      %416 = vector.extract_strided_slice %310 {offsets = [3, 0], sizes = [1, 128], strides = [1, 1]} : vector<4x128xf32> to vector<1x128xf32>
      %cst_150 = arith.constant dense<0.000000e+00> : vector<1x128xf32>
      %417 = tpu.matmul %415, %311, %cst_150 {dimension_numbers = #tpu.dot_dimension_numbers<[1], [0], [0], [1], [0, 0, 1, 1], [], []>} : vector<1x32xf32>, vector<32x128xf32>, vector<1x128xf32> -> vector<1x128xf32>
      %418 = arith.addf %416, %417 : vector<1x128xf32>
      %419 = vector.extract_strided_slice %418 {offsets = [0, 0], sizes = [1, 32], strides = [1, 1]} : vector<1x128xf32> to vector<1x32xf32>
      %cst_151 = arith.constant 0.000000e+00 : f32
      %420 = vector.broadcast %cst_151 : f32 to vector<1x32xf32>
      %421 = arith.subf %420, %419 : vector<1x32xf32>
      %422 = math.exp %421 : vector<1x32xf32>
      %cst_152 = arith.constant 1.000000e+00 : f32
      %423 = vector.broadcast %cst_152 : f32 to vector<1x32xf32>
      %424 = arith.addf %423, %422 : vector<1x32xf32>
      %cst_153 = arith.constant 1.000000e+00 : f32
      %425 = vector.broadcast %cst_153 : f32 to vector<1x32xf32>
      %426 = arith.divf %425, %424 : vector<1x32xf32>
      %427 = vector.extract_strided_slice %418 {offsets = [0, 32], sizes = [1, 32], strides = [1, 1]} : vector<1x128xf32> to vector<1x32xf32>
      %cst_154 = arith.constant 0.000000e+00 : f32
      %428 = vector.broadcast %cst_154 : f32 to vector<1x32xf32>
      %429 = arith.subf %428, %427 : vector<1x32xf32>
      %430 = math.exp %429 : vector<1x32xf32>
      %cst_155 = arith.constant 1.000000e+00 : f32
      %431 = vector.broadcast %cst_155 : f32 to vector<1x32xf32>
      %432 = arith.addf %431, %430 : vector<1x32xf32>
      %cst_156 = arith.constant 1.000000e+00 : f32
      %433 = vector.broadcast %cst_156 : f32 to vector<1x32xf32>
      %434 = arith.divf %433, %432 : vector<1x32xf32>
      %435 = vector.extract_strided_slice %418 {offsets = [0, 64], sizes = [1, 32], strides = [1, 1]} : vector<1x128xf32> to vector<1x32xf32>
      %436 = math.tanh %435 : vector<1x32xf32>
      %437 = vector.extract_strided_slice %418 {offsets = [0, 96], sizes = [1, 32], strides = [1, 1]} : vector<1x128xf32> to vector<1x32xf32>
      %cst_157 = arith.constant 0.000000e+00 : f32
      %438 = vector.broadcast %cst_157 : f32 to vector<1x32xf32>
      %439 = arith.subf %438, %437 : vector<1x32xf32>
      %440 = math.exp %439 : vector<1x32xf32>
      %cst_158 = arith.constant 1.000000e+00 : f32
      %441 = vector.broadcast %cst_158 : f32 to vector<1x32xf32>
      %442 = arith.addf %441, %440 : vector<1x32xf32>
      %cst_159 = arith.constant 1.000000e+00 : f32
      %443 = vector.broadcast %cst_159 : f32 to vector<1x32xf32>
      %444 = arith.divf %443, %442 : vector<1x32xf32>
      %445 = arith.mulf %434, %413 : vector<1x32xf32>
      %446 = arith.mulf %426, %436 : vector<1x32xf32>
      %447 = arith.addf %445, %446 : vector<1x32xf32>
      %448 = math.tanh %447 : vector<1x32xf32>
      %449 = arith.mulf %444, %448 : vector<1x32xf32>
      %450 = tpu.concatenate %347, %381, %415, %449 in 0 : vector<1x32xf32>, vector<1x32xf32>, vector<1x32xf32>, vector<1x32xf32> -> vector<4x32xf32>
      %c0_160 = arith.constant 0 : index
      %c0_161 = arith.constant 0 : index
      %451 = vector.load %arg13[%c0_160, %c0_161] : memref<32x8xf32, #tpu.memory_space<vmem>>, vector<32x8xf32>
      %cst_162 = arith.constant dense<0.000000e+00> : vector<4x8xf32>
      %452 = tpu.matmul %450, %451, %cst_162 {dimension_numbers = #tpu.dot_dimension_numbers<[1], [0], [0], [1], [0, 0, 1, 1], [], []>} : vector<4x32xf32>, vector<32x8xf32>, vector<4x8xf32> -> vector<4x8xf32>
      %c0_163 = arith.constant 0 : index
      %c0_164 = arith.constant 0 : index
      %453 = vector.load %arg15[%c0_163, %c0_164] : memref<1x8xf32, #tpu.memory_space<vmem>>, vector<1x8xf32>
      %454 = vector.broadcast %453 : vector<1x8xf32> to vector<4x8xf32>
      %455 = arith.addf %452, %454 : vector<4x8xf32>
      %c0_165 = arith.constant 0 : index
      %c0_166 = arith.constant 0 : index
      %456 = vector.load %arg14[%c0_165, %c0_166] : memref<8x8xf32, #tpu.memory_space<vmem>>, vector<8x8xf32>
      %cst_167 = arith.constant 0.000000e+00 : f32
      %457 = vector.broadcast %cst_167 : f32 to vector<1x8xf32>
      %458 = vector.extract_strided_slice %455 {offsets = [0, 0], sizes = [1, 8], strides = [1, 1]} : vector<4x8xf32> to vector<1x8xf32>
      %cst_168 = arith.constant dense<0.000000e+00> : vector<1x8xf32>
      %459 = tpu.matmul %457, %456, %cst_168 {dimension_numbers = #tpu.dot_dimension_numbers<[1], [0], [0], [1], [0, 0, 1, 1], [], []>} : vector<1x8xf32>, vector<8x8xf32>, vector<1x8xf32> -> vector<1x8xf32>
      %460 = arith.addf %458, %459 : vector<1x8xf32>
      %461 = vector.extract_strided_slice %455 {offsets = [1, 0], sizes = [1, 8], strides = [1, 1]} : vector<4x8xf32> to vector<1x8xf32>
      %cst_169 = arith.constant dense<0.000000e+00> : vector<1x8xf32>
      %462 = tpu.matmul %460, %456, %cst_169 {dimension_numbers = #tpu.dot_dimension_numbers<[1], [0], [0], [1], [0, 0, 1, 1], [], []>} : vector<1x8xf32>, vector<8x8xf32>, vector<1x8xf32> -> vector<1x8xf32>
      %463 = arith.addf %461, %462 : vector<1x8xf32>
      %464 = vector.extract_strided_slice %455 {offsets = [2, 0], sizes = [1, 8], strides = [1, 1]} : vector<4x8xf32> to vector<1x8xf32>
      %cst_170 = arith.constant dense<0.000000e+00> : vector<1x8xf32>
      %465 = tpu.matmul %463, %456, %cst_170 {dimension_numbers = #tpu.dot_dimension_numbers<[1], [0], [0], [1], [0, 0, 1, 1], [], []>} : vector<1x8xf32>, vector<8x8xf32>, vector<1x8xf32> -> vector<1x8xf32>
      %466 = arith.addf %464, %465 : vector<1x8xf32>
      %467 = vector.extract_strided_slice %455 {offsets = [3, 0], sizes = [1, 8], strides = [1, 1]} : vector<4x8xf32> to vector<1x8xf32>
      %cst_171 = arith.constant dense<0.000000e+00> : vector<1x8xf32>
      %468 = tpu.matmul %466, %456, %cst_171 {dimension_numbers = #tpu.dot_dimension_numbers<[1], [0], [0], [1], [0, 0, 1, 1], [], []>} : vector<1x8xf32>, vector<8x8xf32>, vector<1x8xf32> -> vector<1x8xf32>
      %469 = arith.addf %467, %468 : vector<1x8xf32>
      %470 = tpu.concatenate %460, %463, %466, %469 in 0 : vector<1x8xf32>, vector<1x8xf32>, vector<1x8xf32>, vector<1x8xf32> -> vector<4x8xf32>
      %c0_172 = arith.constant 0 : index
      %c0_173 = arith.constant 0 : index
      %471 = vector.load %arg16[%c0_172, %c0_173] : memref<32x4xf32, #tpu.memory_space<vmem>>, vector<32x4xf32>
      %cst_174 = arith.constant dense<0.000000e+00> : vector<32x8xf32>
      %472 = tpu.matmul %471, %470, %cst_174 {dimension_numbers = #tpu.dot_dimension_numbers<[1], [0], [0], [1], [0, 0, 1, 1], [], []>} : vector<32x4xf32>, vector<4x8xf32>, vector<32x8xf32> -> vector<32x8xf32>
      %c0_175 = arith.constant 0 : index
      %c0_176 = arith.constant 0 : index
      %473 = vector.load %arg17[%c0_175, %c0_176] : memref<32x8xf32, #tpu.memory_space<vmem>>, vector<32x8xf32>
      tpu.vector_store %arg17[%c0_175, %c0_176], %472 {strides = array<i32>} : memref<32x8xf32, #tpu.memory_space<vmem>>, vector<32x8xf32>,
    } else {
    }
    return
  }
  func.func @transform_0(%arg0: i32) -> (i32, i32) {
    %c0_i32 = arith.constant 0 : i32
    %c0_i32_0 = arith.constant 0 : i32
    return %c0_i32, %arg0 : i32, i32
  }
  func.func @transform_1(%arg0: i32) -> (i32, i32) {
    %c0_i32 = arith.constant 0 : i32
    %c0_i32_0 = arith.constant 0 : i32
    return %arg0, %c0_i32 : i32, i32
  }
  func.func @transform_2(%arg0: i32) -> (i32, i32) {
    %c0_i32 = arith.constant 0 : i32
    %c0_i32_0 = arith.constant 0 : i32
    %c0_i32_1 = arith.constant 0 : i32
    return %c0_i32, %c0_i32_0 : i32, i32
  }
  func.func @transform_3(%arg0: i32) -> (i32, i32) {
    %c0_i32 = arith.constant 0 : i32
    %c0_i32_0 = arith.constant 0 : i32
    %c0_i32_1 = arith.constant 0 : i32
    return %c0_i32, %c0_i32_0 : i32, i32
  }
  func.func @transform_4(%arg0: i32) -> (i32, i32) {
    %c0_i32 = arith.constant 0 : i32
    %c0_i32_0 = arith.constant 0 : i32
    %c0_i32_1 = arith.constant 0 : i32
    return %c0_i32, %c0_i32_0 : i32, i32
  }
  func.func @transform_5(%arg0: i32) -> (i32, i32) {
    %c0_i32 = arith.constant 0 : i32
    %c0_i32_0 = arith.constant 0 : i32
    %c0_i32_1 = arith.constant 0 : i32
    return %c0_i32, %c0_i32_0 : i32, i32
  }
  func.func @transform_6(%arg0: i32) -> (i32, i32) {
    %c0_i32 = arith.constant 0 : i32
    %c0_i32_0 = arith.constant 0 : i32
    %c0_i32_1 = arith.constant 0 : i32
    return %c0_i32, %c0_i32_0 : i32, i32
  }
  func.func @transform_7(%arg0: i32) -> (i32, i32) {
    %c0_i32 = arith.constant 0 : i32
    %c0_i32_0 = arith.constant 0 : i32
    %c0_i32_1 = arith.constant 0 : i32
    return %c0_i32, %c0_i32_0 : i32, i32
  }
  func.func @transform_8(%arg0: i32) -> (i32, i32) {
    %c0_i32 = arith.constant 0 : i32
    %c0_i32_0 = arith.constant 0 : i32
    %c0_i32_1 = arith.constant 0 : i32
    return %c0_i32, %c0_i32_0 : i32, i32
  }
  func.func @transform_9(%arg0: i32) -> (i32, i32) {
    %c0_i32 = arith.constant 0 : i32
    %c0_i32_0 = arith.constant 0 : i32
    %c0_i32_1 = arith.constant 0 : i32
    return %c0_i32, %c0_i32_0 : i32, i32
  }
  func.func @transform_10(%arg0: i32) -> (i32, i32) {
    %c0_i32 = arith.constant 0 : i32
    %c0_i32_0 = arith.constant 0 : i32
    %c0_i32_1 = arith.constant 0 : i32
    return %c0_i32, %c0_i32_0 : i32, i32
  }
  func.func @transform_11(%arg0: i32) -> (i32, i32) {
    %c0_i32 = arith.constant 0 : i32
    %c0_i32_0 = arith.constant 0 : i32
    %c0_i32_1 = arith.constant 0 : i32
    return %c0_i32, %c0_i32_0 : i32, i32
  }
  func.func @transform_12(%arg0: i32) -> (i32, i32) {
    %c0_i32 = arith.constant 0 : i32
    %c0_i32_0 = arith.constant 0 : i32
    %c0_i32_1 = arith.constant 0 : i32
    return %c0_i32, %c0_i32_0 : i32, i32
  }
  func.func @transform_13(%arg0: i32) -> (i32, i32) {
    %c0_i32 = arith.constant 0 : i32
    %c0_i32_0 = arith.constant 0 : i32
    %c0_i32_1 = arith.constant 0 : i32
    return %c0_i32, %c0_i32_0 : i32, i32
  }
  func.func @transform_14(%arg0: i32) -> (i32, i32) {
    %c0_i32 = arith.constant 0 : i32
    %c0_i32_0 = arith.constant 0 : i32
    %c0_i32_1 = arith.constant 0 : i32
    return %c0_i32, %c0_i32_0 : i32, i32
  }
  func.func @transform_15(%arg0: i32) -> (i32, i32) {
    %c0_i32 = arith.constant 0 : i32
    %c0_i32_0 = arith.constant 0 : i32
    %c0_i32_1 = arith.constant 0 : i32
    return %c0_i32, %c0_i32_0 : i32, i32
  }
  func.func @transform_16(%arg0: i32) -> (i32, i32) {
    %c0_i32 = arith.constant 0 : i32
    %c0_i32_0 = arith.constant 0 : i32
    %c0_i32_1 = arith.constant 0 : i32
    return %c0_i32, %c0_i32_0 : i32, i32
  }
}

</mosaic_0001>

<bundles_post_ra>
// kernel: detm_forward_eval.2
= control target key start
LH: loop header
LB: loop body
LE: loop exit
PB: predicated region body
PF: predicated region fallthrough
CT: control target
= control target key end

     0   :  { %s5548_s0 = inlined_call_operand.vmem [shape: bf16[4,2560], index: 0, kind: input, shape index: {}]   ;;  %s5549_s1 = inlined_call_operand.vmem [shape: bf16[2560,32], index: 1, kind: input, shape index: {}]   ;;  %s5550_s2 = inlined_call_operand.hbm [shape: f32[1,32], index: 2, kind: input, shape index: {}]   ;;  %s5551_s3 = inlined_call_operand.vmem [shape: f32[32,128], index: 3, kind: input, shape index: {}]   ;;  %s5552_s4 = inlined_call_operand.vmem [shape: f32[32,128], index: 4, kind: input, shape index: {}]   ;;  %s5553_s5 = inlined_call_operand.hbm [shape: f32[1,128], index: 5, kind: input, shape index: {}]   ;;  %s5554_s6 = inlined_call_operand.vmem [shape: f32[32,128], index: 6, kind: input, shape index: {}]   ;;  %s5555_s7 = inlined_call_operand.vmem [shape: f32[32,128], index: 7, kind: input, shape index: {}]   ;;  %s5556_s8 = inlined_call_operand.hbm [shape: f32[1,128], index: 8, kind: input, shape index: {}]   ;;  %s5557_s9 = inlined_call_operand.hbm [shape: f32[32,128], index: 9, kind: input, shape index: {}]   ;;  %s5558_s10 = inlined_call_operand.hbm [shape: f32[32,128], index: 10, kind: input, shape index: {}]   ;;  %s5559_s11 = inlined_call_operand.hbm [shape: f32[1,128], index: 11, kind: input, shape index: {}]   ;;  %s5560_s12 = inlined_call_operand.hbm [shape: f32[32,8], index: 12, kind: input, shape index: {}]   ;;  %s5561_s13 = inlined_call_operand.hbm [shape: f32[8,8], index: 13, kind: input, shape index: {}]   ;;  %s5562_s14 = inlined_call_operand.hbm [shape: f32[1,8], index: 14, kind: input, shape index: {}]   ;;  %s5563_s15 = inlined_call_operand.vmem [shape: f32[32,4], index: 15, kind: input, shape index: {}]   ;;  %s5564_s16 = inlined_call_operand.vmem [shape: f32[32,8], index: 16, kind: output, shape index: {}]  }
   0x1   :  { %5568 = sst [smem:[#allocation22_spill]] %s5548_s0 }
   0x2   :  { %5569 = sst [smem:[#allocation23_spill]] %s5553_s5 }
   0x3   :  { %21 = vsyncpa [#allocation4], 0 }
   0x4   :  { %22 = vsyncpa [#allocation6], 0 }
   0x5   :  { %23 = vsyncpa [#allocation9], 0 }
   0x6   :  { %24 = vsyncpa [#allocation12], 0 }
   0x7   :  { %25 = vsyncpa [#allocation15], 0  ;;  %s4927_s21 = smov 0  }
   0x8 LB: > { %s4825_s22 = smov [#allocation5]   ;;  %s4933_s24 = sadd.s32 4294967295, %s4823_s21   ;;  %s4823_s21 = sphi %s4927_s21, %s31_s21  }
   0x9   : > { %s433_s23 = sshll.u32 %s4825_s22, 4  ;;  %p3737_p0 = scmp.ge.s32.totalorder %s4823_s21, 1  ;;  %s434_s23 = int_to_ptr.vmem [resolvable:$true] %s433_s23 }
   0xa   : > { %p403_p1 = scmp.lt.s32.totalorder %s4823_s21, 3  ;;  %p5565_p3 = scmp.eq.s32.totalorder %s4933_s24, 0 }
   0xb   : > { %s4826_s26 = smov [#allocation8]   ;;  %s4827_s29 = smov [#allocation11]  }
   0xc   : > { %p4939_p4 = pnand %p3737_p0, %p403_p1  ;;  %s460_s27 = sshll.u32 %s4826_s26, 4  ;;  %s4945_s27 = int_to_ptr.vmem [resolvable:$true] %s460_s27 }
   0xd   : > { %s487_s30 = sshll.u32 %s4827_s29, 4  ;;  %s4828_s0 = smov [#allocation14]   ;;  %s4953_s30 = int_to_ptr.vmem [resolvable:$true] %s487_s30 }
   0xe   : > { %p4314_p5 = pneg %p4939_p4  ;;  %s4955_s17 = sshll.u32 %s4828_s0, 4  ;;  %s512_s17 = int_to_ptr.vmem [resolvable:$true] %s4955_s17 }
   0xf   : > { %s4574_s19 = scalar_lea.vmem %s434_s23, 16  ;;  %s4581_s20 = scalar_lea.vmem %s434_s23, 32 }
  0x10   : > { %p4949_p6 = pnand %p5565_p3, %p4314_p5  ;;  %p4575_p8 = scmp.ne.s32.totalorder %s434_s23, %s4574_s19 }
  0x11   : > { %p4582_p11 = scmp.lt.s32.totalorder %s434_s23, %s434_s23  ;;  %p4583_p12 = scmp.lt.s32.totalorder %s4581_s20, %s4574_s19 }
  0x12   : > { %p4959_p7 = pneg %p4949_p6 }
  0x13   : > { %p4584_p13 = por %p4583_p12, %p4582_p11 }
  0x14   : > { %p4577_p9 = pnand %p4575_p8, %p4959_p7 }
  0x16   : > { %p4578_p10 = pneg %p4577_p9 }
  0x18   : > { %p4585_p0 = pnand %p4584_p13, %p4578_p10 }
  0x1a   : > { %4588 = shalt.err (!%p4585_p0)
}
  0x1b   : > { %s5573_s5 = sld [smem:[#allocation23_spill]]  ;;  %s4600_s29 = scalar_lea.vmem %s4945_s27, 512 }
  0x1c   : > { %p4601_p1 = scmp.ne.s32.totalorder %s4945_s27, %s4600_s29  ;;  %p4608_p9 = scmp.lt.s32.totalorder %s4945_s27, %s4945_s27 }
  0x1d   : > { %p4609_p11 = scmp.lt.s32.totalorder %s4600_s29, %s4600_s29 }
  0x1e   : > { %p4603_p5 = pnand %p4601_p1, %p4959_p7 }
  0x1f   : > { %p4610_p10 = por %p4609_p11, %p4608_p9 }
  0x20   : > { %p4604_p8 = pneg %p4603_p5 }
  0x21   : > { %4320 = dma.hbm_to_vmem [thread:$0]  (!%p4949_p6), %s5573_s5, 16, %s434_s23, [#allocation6]  }
  0x22   : > { %p4611_p12 = pnand %p4610_p10, %p4604_p8 }
  0x24   : > { %4614 = shalt.err (!%p4611_p12)
}
  0x25   : > { %s5566_s0 = smov 128   ;;  %s4830_s23 = smov 8  }
  0x26   : > { %4326 = dma.hbm_to_vmem [thread:$0]  (!%p4949_p6), %s5557_s9, 512, %s4945_s27, [#allocation9], %s5566_s0, %s5566_s0, %s4830_s23  }
  0x27   : > { %s4626_s22 = scalar_lea.vmem %s4953_s30, 16  ;;  %s4633_s26 = scalar_lea.vmem %s4953_s30, 32 }
  0x28   : > { %p4627_p13 = scmp.ne.s32.totalorder %s4953_s30, %s4626_s22  ;;  %p4634_p5 = scmp.lt.s32.totalorder %s4953_s30, %s4953_s30 }
  0x29   : > { %p4635_p8 = scmp.lt.s32.totalorder %s4633_s26, %s4626_s22 }
  0x2a   : > { %p4629_p0 = pnand %p4627_p13, %p4959_p7 }
  0x2b   : > { %p4636_p9 = por %p4635_p8, %p4634_p5 }
  0x2c   : > { %p4630_p1 = pneg %p4629_p0 }
  0x2e   : > { %p4637_p11 = pnand %p4636_p9, %p4630_p1 }
  0x30   : > { %4640 = shalt.err (!%p4637_p11)
}
  0x31   : > { %4332 = dma.hbm_to_vmem [thread:$0]  (!%p4949_p6), %s5559_s11, 16, %s4953_s30, [#allocation12]  }
  0x32   : > { %s4652_s27 = scalar_lea.vmem %s512_s17, 128  ;;  %p4660_p0 = scmp.lt.s32.totalorder %s512_s17, %s512_s17 }
  0x33   : > { %p4653_p10 = scmp.ne.s32.totalorder %s512_s17, %s4652_s27  ;;  %p4661_p2 = scmp.lt.s32.totalorder %s4652_s27, %s4652_s27 }
  0x35   : > { %p4655_p12 = pnand %p4653_p10, %p4959_p7  ;;  %p4662_p5 = por %p4661_p2, %p4660_p0 }
  0x37   : > { %p4656_p13 = pneg %p4655_p12 }
  0x39   : > { %p4663_p1 = pnand %p4662_p5, %p4656_p13 }
  0x3b   : > { %4666 = shalt.err (!%p4663_p1)
}
  0x3c   : > { %4338 = dma.hbm_to_vmem [thread:$0]  (!%p4949_p6), %s5561_s13, 128, %s512_s17, [#allocation15]  }
  0x3d   : > { %s4831_s5 = smov [#allocation3]   ;;  %s4832_s22 = smov [#allocation7]  }
  0x3e   : > { %s416_s30 = sshll.u32 %s4831_s5, 4  ;;  %s450_s26 = sshll.u32 %s4832_s22, 4  ;;  %s417_s30 = int_to_ptr.vmem [resolvable:$true] %s416_s30  ;;  %s451_s26 = int_to_ptr.vmem [resolvable:$true] %s450_s26 }
  0x3f   : > { %s4678_s29 = scalar_lea.vmem %s417_s30, 16  ;;  %s4685_s27 = scalar_lea.vmem %s417_s30, 32 }
  0x40   : > { %p4679_p8 = scmp.ne.s32.totalorder %s417_s30, %s4678_s29  ;;  %p4686_p2 = scmp.lt.s32.totalorder %s417_s30, %s417_s30 }
  0x41   : > { %p4687_p10 = scmp.lt.s32.totalorder %s4685_s27, %s4678_s29 }
  0x42   : > { %p4681_p9 = pnand %p4679_p8, %p4959_p7 }
  0x43   : > { %p4688_p12 = por %p4687_p10, %p4686_p2 }
  0x44   : > { %p4682_p11 = pneg %p4681_p9 }
  0x46   : > { %p4689_p13 = pnand %p4688_p12, %p4682_p11 }
  0x48   : > { %4692 = shalt.err (!%p4689_p13)
}
  0x49   : > { %4317 = dma.hbm_to_vmem [thread:$0]  (!%p4949_p6), %s5550_s2, 16, %s417_s30, [#allocation4]  }
  0x4a   : > { %s4704_s20 = scalar_lea.vmem %s451_s26, 16  ;;  %s4711_s5 = scalar_lea.vmem %s451_s26, 32 }
  0x4b   : > { %p4705_p0 = scmp.ne.s32.totalorder %s451_s26, %s4704_s20  ;;  %p4712_p8 = scmp.lt.s32.totalorder %s451_s26, %s451_s26 }
  0x4c   : > { %p4713_p9 = scmp.lt.s32.totalorder %s4711_s5, %s4704_s20 }
  0x4d   : > { %p4707_p5 = pnand %p4705_p0, %p4959_p7 }
  0x4e   : > { %p4714_p3 = por %p4713_p9, %p4712_p8 }
  0x4f   : > { %p4708_p1 = pneg %p4707_p5 }
  0x51   : > { %p4715_p2 = pnand %p4714_p3, %p4708_p1 }
  0x53   : > { %4718 = shalt.err (!%p4715_p2)
}
  0x54   : > { %4323 = dma.hbm_to_vmem [thread:$0]  (!%p4949_p6), %s5556_s8, 16, %s451_s26, [#allocation6]  }
  0x55   : > { %s4833_s30 = smov [#allocation10]   ;;  %s4834_s19 = smov [#allocation13]  }
  0x56   : > { %s473_s27 = sshll.u32 %s4833_s30, 4  ;;  %s497_s17 = sshll.u32 %s4834_s19, 4  ;;  %s474_s27 = int_to_ptr.vmem [resolvable:$true] %s473_s27  ;;  %s498_s17 = int_to_ptr.vmem [resolvable:$true] %s497_s17 }
  0x57   : > { %s4730_s0 = scalar_lea.vmem %s474_s27, 512  ;;  %p4738_p13 = scmp.lt.s32.totalorder %s474_s27, %s474_s27 }
  0x58   : > { %p4731_p11 = scmp.ne.s32.totalorder %s474_s27, %s4730_s0  ;;  %p4739_p3 = scmp.lt.s32.totalorder %s4730_s0, %s4730_s0 }
  0x5a   : > { %p4733_p10 = pnand %p4731_p11, %p4959_p7  ;;  %p4740_p0 = por %p4739_p3, %p4738_p13 }
  0x5c   : > { %p4734_p12 = pneg %p4733_p10 }
  0x5e   : > { %p4741_p5 = pnand %p4740_p0, %p4734_p12 }
  0x60   : > { %4744 = shalt.err (!%p4741_p5)
}
  0x61   : > { %s5574_s20 = smov 128   ;;  %s4756_s22 = scalar_lea.vmem %s498_s17, 512 }
  0x62   : > { %4329 = dma.hbm_to_vmem [thread:$0]  (!%p4949_p6), %s5558_s10, 512, %s474_s27, [#allocation9], %s5574_s20, %s5574_s20, %s4830_s23  }
  0x63   : > { %p4757_p1 = scmp.ne.s32.totalorder %s498_s17, %s4756_s22  ;;  %p4764_p2 = scmp.lt.s32.totalorder %s498_s17, %s498_s17 }
  0x64   : > { %p4765_p11 = scmp.lt.s32.totalorder %s4756_s22, %s4756_s22 }
  0x65   : > { %p4759_p8 = pnand %p4757_p1, %p4959_p7 }
  0x66   : > { %p4766_p10 = por %p4765_p11, %p4764_p2 }
  0x67   : > { %p4760_p9 = pneg %p4759_p8 }
  0x69   : > { %p4767_p12 = pnand %p4766_p10, %p4760_p9 }
  0x6b   : > { %4770 = shalt.err (!%p4767_p12)
}
  0x6c   : > { %4335 = dma.hbm_to_vmem [thread:$0]  (!%p4949_p6), %s5560_s12, 512, %s498_s17, [#allocation12], %s5574_s20, %s5574_s20, %s4830_s23  }
  0x6d   : > { %s4835_s30 = smov [#allocation16]  }
  0x6e   : > { %s522_s27 = sshll.u32 %s4835_s30, 4  ;;  %s523_s27 = int_to_ptr.vmem [resolvable:$true] %s522_s27 }
  0x6f   : > { %s4782_s19 = scalar_lea.vmem %s523_s27, 16  ;;  %s4789_s26 = scalar_lea.vmem %s523_s27, 32 }
  0x70   : > { %p4783_p13 = scmp.ne.s32.totalorder %s523_s27, %s4782_s19  ;;  %p4790_p5 = scmp.lt.s32.totalorder %s523_s27, %s523_s27 }
  0x71   : > { %p4791_p1 = scmp.lt.s32.totalorder %s4789_s26, %s4782_s19 }
  0x72   : > { %p4785_p3 = pnand %p4783_p13, %p4959_p7 }
  0x73   : > { %p4792_p8 = por %p4791_p1, %p4790_p5 }
  0x74   : > { %p4786_p0 = pneg %p4785_p3 }
  0x76   : > { %p4793_p9 = pnand %p4792_p8, %p4786_p0 }
  0x78   : > { %4796 = shalt.err (!%p4793_p9)
}
  0x79   : > { %4341 = dma.hbm_to_vmem [thread:$0]  (!%p4949_p6), %s5562_s14, 16, %s523_s27, [#allocation15]  }
  0x7a   : > { %556 = sbr.rel (%p4939_p4) target bundleno = 9764 (0x2624), region = 84  ;;  %p5575_p2 = scmp.eq.s32.totalorder (!%p4939_p4), %s4933_s24, 0 }
  0x7f   : > { %4802 = dma.done.wait (%p5575_p2), [#allocation4], 16   ;;  %p5576_p7 = pmov %p5575_p2 }
  0x80   : > { %p5577_p11 = pmov %p5575_p2 }
  0x81   : > { %4804 = vsyncadd (%p5576_p7), [#allocation4], 4294967280 }
  0x82   : > { %4806 = dma.done.wait (%p5577_p11), [#allocation6], 32   ;;  %p5578_p10 = pmov %p5575_p2 }
  0x83   : > { %p5579_p12 = pmov %p5575_p2 }
  0x84   : > { %4808 = vsyncadd (%p5578_p10), [#allocation6], 4294967264 }
  0x85   : > { %4810 = dma.done.wait (%p5579_p12), [#allocation9], 1024   ;;  %p5580_p6 = pmov %p5575_p2 }
  0x86   : > { %p5581_p4 = pmov %p5575_p2 }
  0x87   : > { %4812 = vsyncadd (%p5580_p6), [#allocation9], 4294966272 }
  0x88   : > { %4814 = dma.done.wait (%p5581_p4), [#allocation12], 528   ;;  %p5582_p13 = pmov %p5575_p2 }
  0x89   : > { %p5583_p3 = pmov %p5575_p2 }
  0x8a   : > { %4816 = vsyncadd (%p5582_p13), [#allocation12], 4294966768 }
  0x8b   : > { %4818 = dma.done.wait (%p5583_p3), [#allocation15], 144   ;;  %p5584_p0 = pmov %p5575_p2 }
  0x8c   : > { %s638_s25 = smul.u32 10, %s4933_s24  ;;  %s5585_s20 = sld [smem:[#allocation22_spill]] }
  0x8d   : > { %4820 = vsyncadd (%p5584_p0), [#allocation15], 4294967152  ;;  %s644_s28 = smul.u32 160, %s4933_s24  ;;  %p5586_p8 = scmp.ne.s32.totalorder %s4933_s24, 0 }
  0x8e   : > { %p639_p5 = scmp.lt.s32.totalorder %s638_s25, 19 }
  0x8f   : > { %p645_p1 = scmp.lt.s32.totalorder %s644_s28, 319  ;;  %654 = sbr.rel (%p5586_p8) target bundleno = 150 (0x96), region = 124 }
  0x90   : > { %s5588_s25 = smov (!%p639_p5, %s638_s25), 19 }
  0x91   : > { %s5590_s28 = smov (!%p645_p1, %s644_s28), 319  ;;  %s3758_s18 = sshll.u32 %s5588_s25, 1 }
  0x92   : > { %s5074_s0 = scalar_lea.vmem %s5585_s20, %s3758_s18  ;;  %s3759_s29 = sshll.u32 %s5590_s28, 2 }
  0x93   : > { %s5079_s19 = scalar_lea.vmem %s5549_s1, %s3759_s29 }
  0x94   : > { %vm655_vm0 = vcmask 257024   ;;  %v4836_v0 = vmov 0.0  }
  0x95   : > { %656 = vst.msk [vmem:[#allocation2] sm:$0xf] %vm655_vm0, %v4836_v0 }
  0x96 PF: > { %v4385_v1 = vld [vmem:[%s5079_s19 + $0x78] sm:$0xff]   ;;  %v4389_v5 = vld [vmem:[%s5079_s19 + $0x70] sm:$0xff]   ;;  %v4393_v9 = vld [vmem:[%s5079_s19 + $0x68] sm:$0xff]   ;;  %v828_v29 = vlaneseq  ;;  %v4837_v37 = vmov 1983009808   ;;  %vm1557_vm1 = vcmask 257024  }
  0x97   : > { %v4386_v2 = vld [vmem:[%s5079_s19 + $0xf8] sm:$0xff]   ;;  %3871 = vmatprep.subr.bf16.mxu0 %v4385_v1  ;;  %v4390_v6 = vld [vmem:[%s5079_s19 + $0xf0] sm:$0xff]   ;;  %v4394_v10 = vld [vmem:[%s5079_s19 + $0xe8] sm:$0xff]   ;;  %v826_v38 = vunpack.c.l.s4 %v4837_v37  ;;  %p3842_p9 = scmp.ne.s32.totalorder %s4933_s24, 1 }
  0x98   : > { %v4387_v3 = vld [vmem:[%s5079_s19 + $0x38] sm:$0xff]   ;;  %3893 = vmatprep.subr.bf16.mxu1 %v4386_v2  ;;  %v4391_v7 = vld [vmem:[%s5079_s19 + $0x30] sm:$0xff]   ;;  %v4395_v11 = vld [vmem:[%s5079_s19 + $0x28] sm:$0xff]   ;;  %v829_v34 = vshrl.u32 %v828_v29, 7  ;;  %s4840_s5 = smov (!%p3842_p9), 64   ;;  %s4841_s22 = smov (!%p3842_p9), 32  }
  0x99   : > { %v4388_v4 = vld [vmem:[%s5079_s19 + $0xb8] sm:$0xff]   ;;  %3872 = vmatpush3.bf16.msra.mxu0 %v4387_v3  ;;  %v4392_v8 = vld [vmem:[%s5079_s19 + $0xb0] sm:$0xff]   ;;  %v4396_v12 = vld [vmem:[%s5079_s19 + $0xa8] sm:$0xff]   ;;  %v827_v39 = vunpack.c.0.s8 %v826_v38 }
  0x9a   : > { %3894 = vmatpush3.bf16.msra.mxu1 %v4388_v4  ;;  %3873 = vmatprep.subr.bf16.mxu0 %v4389_v5  ;;  %v4397_v13 = vld [vmem:[%s5079_s19 + $0x60] sm:$0xff]   ;;  %v4401_v17 = vld [vmem:[%s5079_s19 + $0x58] sm:$0xff]   ;;  %v4405_v21 = vld [vmem:[%s5079_s19 + $0x50] sm:$0xff]  }
  0x9b   : > { %3895 = vmatprep.subr.bf16.mxu1 %v4390_v6  ;;  %v4398_v14 = vld [vmem:[%s5079_s19 + $0xe0] sm:$0xff]   ;;  %v4402_v18 = vld [vmem:[%s5079_s19 + $0xd8] sm:$0xff]   ;;  %v4406_v22 = vld [vmem:[%s5079_s19 + $0xd0] sm:$0xff]   ;;  %v5118_v42 = vsub.s32 %v827_v39, %v829_v34 }
  0x9c   : > { %v4399_v15 = vld [vmem:[%s5079_s19 + $0x20] sm:$0xff]   ;;  %v4403_v19 = vld [vmem:[%s5079_s19 + $0x18] sm:$0xff]   ;;  %v4407_v23 = vld [vmem:[%s5079_s19 + $0x10] sm:$0xff]  }
  0x9d   : > { %3874 = vmatpush3.bf16.msra.mxu0 %v4391_v7  ;;  %v4400_v16 = vld [vmem:[%s5079_s19 + $0xa0] sm:$0xff]   ;;  %v4404_v20 = vld [vmem:[%s5079_s19 + $0x98] sm:$0xff]   ;;  %v4408_v24 = vld [vmem:[%s5079_s19 + $0x90] sm:$0xff]  }
  0x9e   : > { %3896 = vmatpush3.bf16.msra.mxu1 %v4392_v8  ;;  %3875 = vmatprep.subr.bf16.mxu0 %v4393_v9  ;;  %v4409_v25 = vld [vmem:[%s5079_s19 + $0x48] sm:$0xff]   ;;  %v4413_v30 = vld [vmem:[%s5079_s19 + $0x40] sm:$0xff]   ;;  %v4418_v36 = vld [vmem:[%s5079_s19 + $0x178] sm:$0xff]  }
  0x9f   : > { %3897 = vmatprep.subr.bf16.mxu1 %v4394_v10  ;;  %v4410_v26 = vld [vmem:[%s5079_s19 + $0xc8] sm:$0xff]   ;;  %v4414_v31 = vld [vmem:[%s5079_s19 + $0xc0] sm:$0xff]   ;;  %v4420_v41 = vld [vmem:[%s5079_s19 + $0x1f8] sm:$0xff]  }
  0xa0   : > { %v4411_v27 = vld [vmem:[%s5079_s19 + $0x8] sm:$0xff]   ;;  %v4415_v32 = vld [vmem:[%s5079_s19] sm:$0xff]   ;;  %v4419_v45 = vld [vmem:[%s5079_s19 + $0x138] sm:$0xff]  }
  0xa1   : > { %3876 = vmatpush3.bf16.msra.mxu0 %v4395_v11  ;;  %v4412_v28 = vld [vmem:[%s5079_s19 + $0x88] sm:$0xff]   ;;  %v4416_v33 = vld [vmem:[%s5079_s19 + $0x80] sm:$0xff]   ;;  %v4421_v46 = vld [vmem:[%s5079_s19 + $0x1b8] sm:$0xff]  }
  0xa2   : > { %3898 = vmatpush3.bf16.msra.mxu1 %v4396_v12  ;;  %3877 = vmatprep.subr.bf16.mxu0 %v4397_v13  ;;  %v658_v35 = vld [vmem:[%s5074_s0] sm:$0xff]  ;;  %v4422_v49 = vld [vmem:[%s5079_s19 + $0x170] sm:$0xff]   ;;  %v4426_v53 = vld [vmem:[%s5079_s19 + $0x168] sm:$0xff]  }
  0xa3   : > { %3899 = vmatprep.subr.bf16.mxu1 %v4398_v14  ;;  %v824_v40 = vcombine.high %v658_v35, %v658_v35  ;;  %v831_v43 = vrot.slane %v658_v35, %v5118_v42  ;;  %v4424_v50 = vld [vmem:[%s5079_s19 + $0x1f0] sm:$0xff]   ;;  %v4428_v54 = vld [vmem:[%s5079_s19 + $0x1e8] sm:$0xff]   ;;  %v4430_v57 = vld [vmem:[%s5079_s19 + $0x160] sm:$0xff]  }
  0xa4   : > { %v4423_v51 = vld [vmem:[%s5079_s19 + $0x130] sm:$0xff]   ;;  %v4427_v55 = vld [vmem:[%s5079_s19 + $0x128] sm:$0xff]   ;;  %v4432_v58 = vld [vmem:[%s5079_s19 + $0x1e0] sm:$0xff]  }
  0xa5   : > { %3878 = vmatpush3.bf16.msra.mxu0 %v4399_v15  ;;  %v838_v44 = vrot.slane %v824_v40, %v5118_v42  ;;  %v839_v47 = vcombine.high %v831_v43, %v831_v43  ;;  %v4425_v52 = vld [vmem:[%s5079_s19 + $0x1b0] sm:$0xff]   ;;  %v4429_v56 = vld [vmem:[%s5079_s19 + $0x1a8] sm:$0xff]   ;;  %v4431_v59 = vld [vmem:[%s5079_s19 + $0x120] sm:$0xff]  }
  0xa6   : > { %3900 = vmatpush3.bf16.msra.mxu1 %v4400_v16  ;;  %3879 = vmatprep.subr.bf16.mxu0 %v4401_v17  ;;  %v4433_v60 = vld [vmem:[%s5079_s19 + $0x1a0] sm:$0xff]   ;;  %v4434_v61 = vld [vmem:[%s5079_s19 + $0x158] sm:$0xff]   ;;  %v4438_v1 = vld [vmem:[%s5079_s19 + $0x150] sm:$0xff]  }
  0xa7   : > { %3901 = vmatprep.subr.bf16.mxu1 %v4402_v18  ;;  %v840_v48 = vcombine.high %v838_v44, %v838_v44  ;;  %1388 = vmatprep.mubr.bf16.mxu0 %v839_v47  ;;  %v4436_v62 = vld [vmem:[%s5079_s19 + $0x1d8] sm:$0xff]   ;;  %v4440_v2 = vld [vmem:[%s5079_s19 + $0x1d0] sm:$0xff]   ;;  %v4442_v5 = vld [vmem:[%s5079_s19 + $0x148] sm:$0xff]  }
  0xa8   : > { %v4435_v63 = vld [vmem:[%s5079_s19 + $0x118] sm:$0xff]   ;;  %v4439_v3 = vld [vmem:[%s5079_s19 + $0x110] sm:$0xff]   ;;  %v4444_v6 = vld [vmem:[%s5079_s19 + $0x1c8] sm:$0xff]  }
  0xa9   : > { %3880 = vmatpush3.bf16.msra.mxu0 %v4403_v19  ;;  %1428 = vmatprep.mubr.bf16.mxu1 %v840_v48  ;;  %v4437_v0 = vld [vmem:[%s5079_s19 + $0x198] sm:$0xff]   ;;  %v4441_v4 = vld [vmem:[%s5079_s19 + $0x190] sm:$0xff]   ;;  %v4443_v7 = vld [vmem:[%s5079_s19 + $0x108] sm:$0xff]  }
  0xaa   : > { %3902 = vmatpush3.bf16.msra.mxu1 %v4404_v20  ;;  %3881 = vmatprep.subr.bf16.mxu0 %v4405_v21  ;;  %v659_v8 = vld [vmem:[%s5074_s0 + $0x8] sm:$0xff]  ;;  %v4446_v12 = vld [vmem:[%s5079_s19 + $0x140] sm:$0xff]   ;;  %v4450_v19 = vld [vmem:[%s5079_s19 + $0x278] sm:$0xff]  }
  0xab   : > { %3903 = vmatprep.subr.bf16.mxu1 %v4406_v22  ;;  %v4445_v9 = vld [vmem:[%s5079_s19 + $0x188] sm:$0xff]   ;;  %v848_v10 = vrot.slane %v659_v8, %v5118_v42  ;;  %v841_v11 = vcombine.high %v659_v8, %v659_v8  ;;  %v4448_v13 = vld [vmem:[%s5079_s19 + $0x1c0] sm:$0xff]   ;;  %v4452_v20 = vld [vmem:[%s5079_s19 + $0x238] sm:$0xff]  }
  0xac   : > { %v4447_v16 = vld [vmem:[%s5079_s19 + $0x100] sm:$0xff]   ;;  %v4453_v21 = vld [vmem:[%s5079_s19 + $0x270] sm:$0xff]   ;;  %v4459_v29 = vld [vmem:[%s5079_s19 + $0x258] sm:$0xff]  }
  0xad   : > { %3882 = vmatpush3.bf16.msra.mxu0 %v4407_v23  ;;  %v856_v14 = vcombine.high %v848_v10, %v848_v10  ;;  %v855_v15 = vrot.slane %v841_v11, %v5118_v42  ;;  %v4449_v18 = vld [vmem:[%s5079_s19 + $0x180] sm:$0xff]   ;;  %v4454_v22 = vld [vmem:[%s5079_s19 + $0x230] sm:$0xff]   ;;  %v4455_v23 = vld [vmem:[%s5079_s19 + $0x268] sm:$0xff]  }
  0xae   : > { %3904 = vmatpush3.bf16.msra.mxu1 %v4408_v24  ;;  %3883 = vmatprep.subr.bf16.mxu0 %v4409_v25  ;;  %v4456_v24 = vld [vmem:[%s5079_s19 + $0x228] sm:$0xff]   ;;  %v3761_v25 = vld.sshfl [vmem:[%s5074_s0 + $0x10] sm:$0x33 pattern:$0x76325410]  ;;  %v4465_v35 = vld [vmem:[%s5079_s19 + $0x240] sm:$0xff]  }
  0xaf   : > { %3905 = vmatprep.subr.bf16.mxu1 %v4410_v26  ;;  %v857_v17 = vcombine.high %v855_v15, %v855_v15  ;;  %v4457_v26 = vld [vmem:[%s5079_s19 + $0x260] sm:$0xff]   ;;  %v4464_v34 = vld [vmem:[%s5079_s19 + $0x208] sm:$0xff]  }
  0xb1   : > { %3884 = vmatpush3.bf16.msra.mxu0 %v4411_v27  ;;  %v865_v27 = vcombine.high %v3761_v25, %v3761_v25 }
  0xb2   : > { %3906 = vmatpush3.bf16.msra.mxu1 %v4412_v28  ;;  %3885 = vmatprep.subr.bf16.mxu0 %v4413_v30  ;;  %v4458_v28 = vld [vmem:[%s5079_s19 + $0x220] sm:$0xff]   ;;  %v4460_v30 = vld [vmem:[%s5079_s19 + $0x218] sm:$0xff]  }
  0xb3   : > { %3907 = vmatprep.subr.bf16.mxu1 %v4414_v31  ;;  %v4461_v31 = vld [vmem:[%s5079_s19 + $0x250] sm:$0xff]  }
  0xb5   : > { %3886 = vmatpush3.bf16.msra.mxu0 %v4415_v32  ;;  %v4462_v32 = vld [vmem:[%s5079_s19 + $0x210] sm:$0xff]  }
  0xb6   : > { %3908 = vmatpush3.bf16.msra.mxu1 %v4416_v33  ;;  %3915 = vmatprep.subr.bf16.mxu0 %v4418_v36  ;;  %v4463_v33 = vld [vmem:[%s5079_s19 + $0x248] sm:$0xff]   ;;  %v4466_v36 = vld [vmem:[%s5079_s19 + $0x200] sm:$0xff]  }
  0xb7   : > { %3937 = vmatprep.subr.bf16.mxu1 %v4420_v41 }
  0xb8   : > { %1389 = vmatmul.mubr.bf16.vlgmr.msra.gmra.mxu0 %v831_v43 }
  0xb9   : > { %1429 = vmatmul.mubr.bf16.vlgmr.msra.gmra.mxu1 %v838_v44  ;;  %3916 = vmatpush3.bf16.msra.mxu0 %v4419_v45 }
  0xba   : > { %3938 = vmatpush3.bf16.msra.mxu1 %v4421_v46  ;;  %3917 = vmatprep.subr.bf16.mxu0 %v4422_v49 }
  0xbb   : > { %3939 = vmatprep.subr.bf16.mxu1 %v4424_v50  ;;  %1468 = vmatprep.mubr.bf16.mxu0 %v856_v14 }
  0xbc   : > { %1508 = vmatprep.mubr.bf16.mxu1 %v857_v17 }
  0xbd   : > { %3918 = vmatpush3.bf16.msra.mxu0 %v4423_v51 }
  0xbe   : > { %3940 = vmatpush3.bf16.msra.mxu1 %v4425_v52  ;;  %3919 = vmatprep.subr.bf16.mxu0 %v4426_v53 }
  0xbf   : > { %3941 = vmatprep.subr.bf16.mxu1 %v4428_v54 }
  0xc1   : > { %3920 = vmatpush3.bf16.msra.mxu0 %v4427_v55 }
  0xc2   : > { %3942 = vmatpush3.bf16.msra.mxu1 %v4429_v56  ;;  %3921 = vmatprep.subr.bf16.mxu0 %v4430_v57 }
  0xc3   : > { %3943 = vmatprep.subr.bf16.mxu1 %v4432_v58 }
  0xc5   : > { %3922 = vmatpush3.bf16.msra.mxu0 %v4431_v59 }
  0xc6   : > { %3944 = vmatpush3.bf16.msra.mxu1 %v4433_v60  ;;  %3923 = vmatprep.subr.bf16.mxu0 %v4434_v61 }
  0xc7   : > { %3945 = vmatprep.subr.bf16.mxu1 %v4436_v62 }
  0xc9   : > { %3924 = vmatpush3.bf16.msra.mxu0 %v4435_v63  ;;  %v657_v63 = vld [vmem:[#allocation2] sm:$0xf] }
  0xca   : > { %3946 = vmatpush3.bf16.msra.mxu1 %v4437_v0  ;;  %3925 = vmatprep.subr.bf16.mxu0 %v4438_v1 }
  0xcb   : > { %3947 = vmatprep.subr.bf16.mxu1 %v4440_v2 }
  0xcd   : > { %3926 = vmatpush3.bf16.msra.mxu0 %v4439_v3 }
  0xce   : > { %3948 = vmatpush3.bf16.msra.mxu1 %v4441_v4  ;;  %3927 = vmatprep.subr.bf16.mxu0 %v4442_v5 }
  0xcf   : > { %3949 = vmatprep.subr.bf16.mxu1 %v4444_v6 }
  0xd1   : > { %3928 = vmatpush3.bf16.msra.mxu0 %v4443_v7 }
  0xd2   : > { %3950 = vmatpush3.bf16.msra.mxu1 %v4445_v9  ;;  %3929 = vmatprep.subr.bf16.mxu0 %v4446_v12 }
  0xd3   : > { %3951 = vmatprep.subr.bf16.mxu1 %v4448_v13 }
  0xd5   : > { %3930 = vmatpush3.bf16.msra.mxu0 %v4447_v16 }
  0xd6   : > { %3952 = vmatpush3.bf16.msra.mxu1 %v4449_v18  ;;  %3959 = vmatprep.subr.bf16.mxu0 %v4450_v19 }
  0xd8   : > { %1469 = vmatmul.mubr.bf16.vlgmr.msra.gmra.mxu0 %v848_v10 }
  0xd9   : > { %1509 = vmatmul.mubr.bf16.vlgmr.msra.gmra.mxu1 %v855_v15  ;;  %3960 = vmatpush3.bf16.msra.mxu0 %v4452_v20 }
  0xda   : > { %3961 = vmatprep.subr.bf16.mxu0 %v4453_v21  ;;  %1548 = vmatprep.mubr.bf16.mxu0 %v865_v27 }
  0xdd   : > { %3962 = vmatpush3.bf16.msra.mxu0 %v4454_v22 }
  0xde   : > { %3963 = vmatprep.subr.bf16.mxu0 %v4455_v23 }
  0xe1   : > { %3964 = vmatpush3.bf16.msra.mxu0 %v4456_v24 }
  0xe2   : > { %3965 = vmatprep.subr.bf16.mxu0 %v4457_v26 }
  0xe5   : > { %3966 = vmatpush3.bf16.msra.mxu0 %v4458_v28 }
  0xe6   : > { %3967 = vmatprep.subr.bf16.mxu0 %v4459_v29 }
  0xe9   : > { %3968 = vmatpush3.bf16.msra.mxu0 %v4460_v30 }
  0xea   : > { %3969 = vmatprep.subr.bf16.mxu0 %v4461_v31 }
  0xed   : > { %3970 = vmatpush3.bf16.msra.mxu0 %v4462_v32 }
  0xee   : > { %3971 = vmatprep.subr.bf16.mxu0 %v4463_v33 }
  0xf1   : > { %3972 = vmatpush3.bf16.msra.mxu0 %v4464_v34 }
  0xf2   : > { %3973 = vmatprep.subr.bf16.mxu0 %v4465_v35 }
  0xf5   : > { %3974 = vmatpush3.bf16.msra.mxu0 %v4466_v36 }
  0xf8   : > { %1549 = vmatmul.mubr.bf16.vlgmr.msra.gmra.mxu0 %v3761_v25 }
 0x178   : > { %v3887_v37 = vpop.f32.mrf.mxu0 }
 0x179   : > { %v3909_v38 = vpop.f32.mrf.mxu1 }
 0x17a   : > { %v3888_v39 = vpop.f32.mrf.mxu0 }
 0x17b   : > { %v3910_v40 = vpop.f32.mrf.mxu1  ;;  %v3889_v53 = vadd.f32 %v3888_v39, %v3887_v37 }
 0x17c   : > { %v3890_v41 = vpop.f32.mrf.mxu0  ;;  %v3911_v54 = vadd.f32 %v3910_v40, %v3909_v38 }
 0x17d   : > { %v3912_v42 = vpop.f32.mrf.mxu1 }
 0x17e   : > { %v3891_v43 = vpop.f32.mrf.mxu0  ;;  %v1431_v56 = vadd.f32 %v3911_v54, %v3889_v53 }
 0x17f   : > { %v3913_v44 = vpop.f32.mrf.mxu1 }
 0x198   : > { %v3931_v45 = vpop.f32.mrf.mxu0 }
 0x199   : > { %v3953_v46 = vpop.f32.mrf.mxu1 }
 0x19a   : > { %v3932_v47 = vpop.f32.mrf.mxu0 }
 0x19b   : > { %v3954_v48 = vpop.f32.mrf.mxu1  ;;  %v3933_v55 = vadd.f32 %v3932_v47, %v3931_v45 }
 0x19c   : > { %v3934_v49 = vpop.f32.mrf.mxu0  ;;  %v3955_v58 = vadd.f32 %v3954_v48, %v3953_v46 }
 0x19d   : > { %v3956_v50 = vpop.f32.mrf.mxu1  ;;  %v1471_v57 = vadd.f32 %v3933_v55, %v1431_v56 }
 0x19e   : > { %v3935_v51 = vpop.f32.mrf.mxu0 }
 0x19f   : > { %v3957_v52 = vpop.f32.mrf.mxu1  ;;  %v1511_v61 = vadd.f32 %v3955_v58, %v1471_v57 }
 0x1b8   : > { %v3975_v59 = vpop.f32.mrf.mxu0 }
 0x1ba   : > { %v3976_v60 = vpop.f32.mrf.mxu0 }
 0x1bb   : > { %v3977_v62 = vadd.f32 %v3976_v60, %v3975_v59 }
 0x1bc   : > { %v3978_v0 = vpop.f32.mrf.mxu0 }
 0x1bd   : > { %v1551_v1 = vadd.f32 %v3977_v62, %v1511_v61  ;;  %1562 = sbr.rel (%p3842_p9) target bundleno = 9764 (0x2624), region = 128 }
 0x1be   : > { %v3979_v2 = vpop.f32.mrf.mxu0 }
 0x1bf   : > { %v1556_v3 = vadd.f32 %v1551_v1, %v657_v63 }
 0x1c1   : > { %1558 = vst.msk [vmem:[#allocation2] sm:$0xf] %vm1557_vm1, %v1556_v3 }
 0x1c2   : > { %v1575_v4 = vld [vmem:[%s5551_s3 + $0x18] sm:$0xff]  ;;  %v4838_v6 = vmov 0.0   ;;  %v1574_v7 = vld [vmem:[%s5551_s3 + $0x10] sm:$0xff]  ;;  %v1573_v9 = vld [vmem:[%s5551_s3 + $0x8] sm:$0xff]  ;;  %vm1583_vm2 = vcmask 261120   ;;  %vm4839_vm3 = vmmov 0  }
 0x1c3   : > { %v5179_v5 = vld [vmem:[%s5552_s4 + $0x18] sm:$0xff]  ;;  %4074 = vmatprep.subr.mxu0 %v4838_v6  ;;  %4085 = vmatprep.subr.mxu1 %v4838_v6  ;;  %v5189_v8 = vld [vmem:[%s5552_s4 + $0x10] sm:$0xff]  ;;  %v5200_v10 = vld [vmem:[%s5552_s4 + $0x8] sm:$0xff]  ;;  %vm2079_vm4 = vcmask 1040384   ;;  %vm2081_vm5 = vcmask 1041408   ;;  %vm2083_vm6 = vcmask 1042432  }
 0x1c4   : > { %4075 = vmatpush3.msra.mxu0 %v1575_v4  ;;  %4086 = vmatpush3.msra.mxu1 %v5179_v5  ;;  %v3843_v12 = vld [vmem:[#allocation3] ss:$0 sm:$0xff]  ;;  %v3844_v16 = vld [vmem:[#allocation5] ss:$0 sm:$0xff]  ;;  %vm3188_vm7 = vcmask 64512   ;;  %vm3502_vm8 = vcmask 31744  }
 0x1c5   : > { %4076 = vmatprep.subr.mxu0 %v4838_v6  ;;  %4087 = vmatprep.subr.mxu1 %v4838_v6  ;;  %v1572_v13 = vld [vmem:[%s5551_s3] sm:$0xff]  ;;  %vm3515_vm9 = vcmask 1043456  }
 0x1c6   : > { %4077 = vmatpush3.msra.mxu0 %v1574_v7  ;;  %4088 = vmatpush3.msra.mxu1 %v5189_v8  ;;  %v5212_v14 = vld [vmem:[%s5552_s4] sm:$0xff] }
 0x1c7   : > { %4078 = vmatprep.subr.mxu0 %v4838_v6  ;;  %4089 = vmatprep.subr.mxu1 %v4838_v6 }
 0x1c8   : > { %v1563_v11 = vld [vmem:[#allocation2] sm:$0xf]  ;;  %4079 = vmatpush3.msra.mxu0 %v1573_v9  ;;  %4090 = vmatpush3.msra.mxu1 %v5200_v10 }
 0x1c9   : > { %v1571_v15 = vadd.f32 %v3843_v12, %v1563_v11  ;;  %4080 = vmatprep.subr.mxu0 %v4838_v6  ;;  %4091 = vmatprep.subr.mxu1 %v4838_v6 }
 0x1ca   : > { %4081 = vmatpush3.msra.mxu0 %v1572_v13  ;;  %4082 = vmatprep.mubr.msk.f32.mxu0 %vm4839_vm3, %v4838_v6 }
 0x1cb   : > { %4092 = vmatpush3.msra.mxu1 %v5212_v14  ;;  %4093 = vmatprep.mubr.msk.f32.mxu1 %vm4839_vm3, %v4838_v6 }
 0x1cc   : > { %4083 = vmatmul.mubr.msk.f32.vlgmr.msra.gmra.mxu0 %vm1583_vm2, %v1571_v15  ;;  %4094 = vmatmul.mubr.f32.vlgmr.msra.gmra.mxu1 %v4838_v6 }
 0x1cd   : > { %4096 = vmatprep.subr.mxu0 %v4838_v6  ;;  %4104 = vmatprep.mubr.msk.f32.mxu0 %vm4839_vm3, %v4838_v6 }
 0x1ce   : > { %4097 = vmatpush3.msra.mxu0 %v5179_v5  ;;  %4107 = vmatprep.subr.mxu1 %v4838_v6 }
 0x1cf   : > { %4098 = vmatprep.subr.mxu0 %v4838_v6  ;;  %4108 = vmatpush3.msra.mxu1 %v5179_v5 }
 0x1d0   : > { %4099 = vmatpush3.msra.mxu0 %v5189_v8  ;;  %4109 = vmatprep.subr.mxu1 %v4838_v6 }
 0x1d1   : > { %4100 = vmatprep.subr.mxu0 %v4838_v6  ;;  %4110 = vmatpush3.msra.mxu1 %v5189_v8 }
 0x1d2   : > { %4101 = vmatpush3.msra.mxu0 %v5200_v10  ;;  %4111 = vmatprep.subr.mxu1 %v4838_v6 }
 0x1d3   : > { %4102 = vmatprep.subr.mxu0 %v4838_v6  ;;  %4112 = vmatpush3.msra.mxu1 %v5200_v10 }
 0x1d4   : > { %4103 = vmatpush3.msra.mxu0 %v5212_v14  ;;  %4113 = vmatprep.subr.mxu1 %v4838_v6 }
 0x1d5   : > { %4114 = vmatpush3.msra.mxu1 %v5212_v14  ;;  %4115 = vmatprep.mubr.msk.f32.mxu1 %vm4839_vm3, %v4838_v6 }
 0x1d6   : > { %4118 = vmatprep.subr.mxu0 %v4838_v6  ;;  %4129 = vmatprep.subr.mxu1 %v4838_v6 }
 0x28c   : > { %v1653_v17 = vpop.f32.mrf.mxu0  ;;  %v1730_v18 = vpop.f32.mrf.mxu1 }
 0x28d   : > { %v5245_v19 = vadd.f32 %v3844_v16, %v1653_v17 }
 0x28e   : > { %v4084_v20 = vpop.f32.mrf.mxu0  ;;  %v4095_v21 = vpop.f32.mrf.mxu1 }
 0x28f   : > { %v1734_v22 = vadd.f32 %v1730_v18, %v5245_v19 }
 0x291   : > { %4467 = vtanh.f32 %v1734_v22  ;;  %v1735_v24 = vsub.f32 0.0, %v1734_v22 }
 0x293   : > { %v1736_v25 = vmul.f32 1.442695, %v1735_v24 }
 0x295   : > { %4469 = vpow2.f32 %v1736_v25 }
 0x29e   : > { %v4468_v23 = vpop.eup %4467 }
 0x29f   : > { %1744 = vrot.lane.b32.xlu0 %v4468_v23, %s4840_s5 }
 0x2a2   : > { %v4470_v26 = vpop.eup %4469 }
 0x2a3   : > { %v1738_v27 = vadd.f32 1.0, %v4470_v26 }
 0x2a5   : > { %4471 = vrcp.f32 %v1738_v27 }
 0x2b2   : > { %v4472_v28 = vpop.eup %4471 }
 0x2b3   : > { %v1742_v31 = vmul.f32 0.0, %v4472_v28 }
 0x311   : > { %v1745_v29 = vpop.permute.xlu0 %1744 }
 0x312   : > { %v1747_v30 = vmul.f32 %v4472_v28, %v1745_v29 }
 0x314   : > { %1749 = vrot.lane.b32.xlu0 %v1747_v30, %s4841_s22 }
 0x386   : > { %v1750_v32 = vpop.permute.xlu0 %1749 }
 0x387   : > { %v1752_v33 = vadd.f32 %v1750_v32, %v1742_v31 }
 0x389   : > { %4473 = vtanh.f32 %v1752_v33  ;;  %v1846_v50 = vrot.slane %v1752_v33, 7 }
 0x396   : > { %v4474_v34 = vpop.eup %4473 }
 0x397   : > { %1755 = vrot.lane.b32.xlu1 %v4474_v34, %s4840_s5 }
 0x409   : > { %v1756_v35 = vpop.permute.xlu1 %1755 }
 0x40a   : > { %v5251_v36 = vmul.f32 %v4472_v28, %v1756_v35 }
 0x40c   : > { %1760 = vrot.lane.b32.xlu1 %v5251_v36, %s4841_s22 }
 0x47e   : > { %v1761_v37 = vpop.permute.xlu1 %1760 }
 0x47f   : > { %4105 = vmatmul.mubr.msk.f32.vlgmr.msra.gmra.mxu0 %vm1583_vm2, %v1761_v37  ;;  %v2087_v37 = vld [vmem:[%s5554_s6 + $0x10] sm:$0xff] }
 0x480   : > { %4119 = vmatpush3.msra.mxu0 %v5179_v5  ;;  %4126 = vmatprep.mubr.msk.f32.mxu0 %vm4839_vm3, %v4838_v6 }
 0x481   : > { %4120 = vmatprep.subr.mxu0 %v4838_v6 }
 0x482   : > { %4121 = vmatpush3.msra.mxu0 %v5189_v8 }
 0x483   : > { %4122 = vmatprep.subr.mxu0 %v4838_v6 }
 0x484   : > { %4123 = vmatpush3.msra.mxu0 %v5200_v10 }
 0x485   : > { %4124 = vmatprep.subr.mxu0 %v4838_v6 }
 0x486   : > { %4125 = vmatpush3.msra.mxu0 %v5212_v14 }
 0x487   : > { %4140 = vmatprep.subr.mxu0 %v4838_v6 }
 0x53f   : > { %v1830_v38 = vpop.f32.mrf.mxu0 }
 0x540   : > { %v1835_v39 = vrot.slane %v1830_v38, 7  ;;  %v5305_v38 = vld [vmem:[%s5555_s7 + $0x10] sm:$0xff] }
 0x541   : > { %v4106_v40 = vpop.f32.mrf.mxu0 }
 0x542   : > { %v1837_v41 = vadd.f32 %v1835_v39, %v5245_v19  ;;  %v2086_v39 = vld [vmem:[%s5554_s6 + $0x8] sm:$0xff] }
 0x543   : > { %v5315_v40 = vld [vmem:[%s5555_s7 + $0x8] sm:$0xff] }
 0x544   : > { %4475 = vtanh.f32 %v1837_v41  ;;  %v1838_v43 = vsub.f32 0.0, %v1837_v41  ;;  %v2085_v41 = vld [vmem:[%s5554_s6] sm:$0xff] }
 0x546   : > { %v1839_v44 = vmul.f32 1.442695, %v1838_v43 }
 0x548   : > { %4477 = vpow2.f32 %v1839_v44 }
 0x551   : > { %v4476_v42 = vpop.eup %4475 }
 0x552   : > { %1850 = vrot.lane.b32.xlu0 %v4476_v42, %s4840_s5  ;;  %v5326_v42 = vld [vmem:[%s5555_s7] sm:$0xff] }
 0x555   : > { %v4478_v45 = vpop.eup %4477 }
 0x556   : > { %v1841_v46 = vadd.f32 1.0, %v4478_v45 }
 0x558   : > { %4479 = vrcp.f32 %v1841_v46 }
 0x565   : > { %v4480_v47 = vpop.eup %4479 }
 0x566   : > { %v1848_v51 = vmul.f32 %v4480_v47, %v1846_v50  ;;  %v3849_v50 = vld [vmem:[#allocation7] ss:$0 sm:$0xff] }
 0x5c4   : > { %v1851_v48 = vpop.permute.xlu0 %1850 }
 0x5c5   : > { %v1853_v49 = vmul.f32 %v4480_v47, %v1851_v48 }
 0x5c7   : > { %1855 = vrot.lane.b32.xlu1 %v1853_v49, %s4841_s22 }
 0x639   : > { %v1856_v52 = vpop.permute.xlu1 %1855 }
 0x63a   : > { %v1858_v53 = vadd.f32 %v1856_v52, %v1848_v51 }
 0x63c   : > { %4481 = vtanh.f32 %v1858_v53  ;;  %v1953_v8 = vrot.slane %v1858_v53, 7 }
 0x649   : > { %v4482_v54 = vpop.eup %4481 }
 0x64a   : > { %1861 = vrot.lane.b32.xlu0 %v4482_v54, %s4840_s5 }
 0x6bc   : > { %v1862_v55 = vpop.permute.xlu0 %1861 }
 0x6bd   : > { %v1864_v56 = vmul.f32 %v4480_v47, %v1862_v55 }
 0x6bf   : > { %v1866_v57 = vrot.slane %v1864_v56, 1  ;;  %v2080_v15 = vsel %vm2079_vm4, %v5251_v36, %v1864_v56  ;;  %v5296_v36 = vld [vmem:[%s5555_s7 + $0x18] sm:$0xff] }
 0x6c1   : > { %1867 = vrot.lane.b32.xlu1 %v1866_v57, %s4841_s22 }
 0x733   : > { %v1868_v58 = vpop.permute.xlu1 %1867 }
 0x734   : > { %4116 = vmatmul.mubr.msk.f32.vlgmr.msra.gmra.mxu1 %vm1583_vm2, %v1868_v58 }
 0x735   : > { %4137 = vmatprep.mubr.msk.f32.mxu1 %vm4839_vm3, %v4838_v6 }
 0x7f4   : > { %v1937_v59 = vpop.f32.mrf.mxu1 }
 0x7f5   : > { %v1942_v60 = vrot.slane %v1937_v59, 6 }
 0x7f6   : > { %v4117_v61 = vpop.f32.mrf.mxu1 }
 0x7f7   : > { %v1944_v62 = vadd.f32 %v1942_v60, %v5245_v19 }
 0x7f9   : > { %4483 = vtanh.f32 %v1944_v62  ;;  %v1945_v0 = vsub.f32 0.0, %v1944_v62 }
 0x7fb   : > { %v1946_v1 = vmul.f32 1.442695, %v1945_v0 }
 0x7fd   : > { %4485 = vpow2.f32 %v1946_v1 }
 0x806   : > { %v4484_v63 = vpop.eup %4483 }
 0x807   : > { %1957 = vrot.lane.b32.xlu0 %v4484_v63, %s4840_s5 }
 0x80a   : > { %v4486_v2 = vpop.eup %4485 }
 0x80b   : > { %v1948_v3 = vadd.f32 1.0, %v4486_v2 }
 0x80d   : > { %4487 = vrcp.f32 %v1948_v3 }
 0x81a   : > { %v4488_v4 = vpop.eup %4487 }
 0x81b   : > { %v1955_v9 = vmul.f32 %v4488_v4, %v1953_v8 }
 0x879   : > { %v1958_v5 = vpop.permute.xlu0 %1957 }
 0x87a   : > { %v1960_v7 = vmul.f32 %v4488_v4, %v1958_v5 }
 0x87c   : > { %1962 = vrot.lane.b32.xlu1 %v1960_v7, %s4841_s22 }
 0x8ee   : > { %v1963_v10 = vpop.permute.xlu1 %1962 }
 0x8ef   : > { %v1965_v11 = vadd.f32 %v1963_v10, %v1955_v9 }
 0x8f1   : > { %4489 = vtanh.f32 %v1965_v11  ;;  %v2060_v32 = vrot.slane %v1965_v11, 7 }
 0x8fe   : > { %v4490_v12 = vpop.eup %4489 }
 0x8ff   : > { %1968 = vrot.lane.b32.xlu0 %v4490_v12, %s4840_s5 }
 0x971   : > { %v1969_v13 = vpop.permute.xlu0 %1968 }
 0x972   : > { %v1971_v14 = vmul.f32 %v4488_v4, %v1969_v13 }
 0x974   : > { %v1973_v16 = vrot.slane %v1971_v14, 2  ;;  %v5281_v17 = vsel %vm2081_vm5, %v2080_v15, %v1971_v14 }
 0x976   : > { %1974 = vrot.lane.b32.xlu1 %v1973_v16, %s4841_s22 }
 0x9e8   : > { %v1975_v18 = vpop.permute.xlu1 %1974 }
 0x9e9   : > { %4127 = vmatmul.mubr.msk.f32.vlgmr.msra.gmra.mxu0 %vm1583_vm2, %v1975_v18 }
 0x9ea   : > { %4148 = vmatprep.mubr.msk.f32.mxu0 %vm4839_vm3, %v4838_v6  ;;  %4141 = vmatpush3.msra.mxu0 %v5296_v36 }
 0x9eb   : > { %4142 = vmatprep.subr.mxu0 %v4838_v6 }
 0x9ec   : > { %4143 = vmatpush3.msra.mxu0 %v5305_v38 }
 0x9ed   : > { %4144 = vmatprep.subr.mxu0 %v4838_v6 }
 0x9ee   : > { %4145 = vmatpush3.msra.mxu0 %v5315_v40 }
 0x9ef   : > { %4146 = vmatprep.subr.mxu0 %v4838_v6 }
 0x9f0   : > { %4147 = vmatpush3.msra.mxu0 %v5326_v42 }
 0x9f1   : > { %4149 = vmatmul.mubr.f32.vlgmr.msra.gmra.mxu0 %v4838_v6  ;;  %4162 = vmatprep.subr.mxu0 %v4838_v6 }
 0x9f2   : > { %4170 = vmatprep.mubr.msk.f32.mxu0 %vm4839_vm3, %v4838_v6  ;;  %4163 = vmatpush3.msra.mxu0 %v5296_v36 }
 0x9f3   : > { %4164 = vmatprep.subr.mxu0 %v4838_v6 }
 0x9f4   : > { %4165 = vmatpush3.msra.mxu0 %v5305_v38 }
 0x9f5   : > { %4166 = vmatprep.subr.mxu0 %v4838_v6 }
 0x9f6   : > { %4167 = vmatpush3.msra.mxu0 %v5315_v40 }
 0x9f7   : > { %4168 = vmatprep.subr.mxu0 %v4838_v6 }
 0x9f8   : > { %4169 = vmatpush3.msra.mxu0 %v5326_v42 }
 0x9f9   : > { %4184 = vmatprep.subr.mxu0 %v4838_v6 }
 0xaa9   : > { %v2044_v20 = vpop.f32.mrf.mxu0 }
 0xaaa   : > { %v2049_v21 = vrot.slane %v2044_v20, 5 }
 0xaab   : > { %v4128_v22 = vpop.f32.mrf.mxu0 }
 0xaac   : > { %v2051_v23 = vadd.f32 %v2049_v21, %v5245_v19  ;;  %v2088_v19 = vld [vmem:[%s5554_s6 + $0x18] sm:$0xff] }
 0xaad   : > { %4130 = vmatpush3.msra.mxu1 %v2088_v19 }
 0xaae   : > { %4491 = vtanh.f32 %v2051_v23  ;;  %v2052_v25 = vsub.f32 0.0, %v2051_v23  ;;  %4131 = vmatprep.subr.mxu1 %v4838_v6 }
 0xaaf   : > { %4132 = vmatpush3.msra.mxu1 %v2087_v37 }
 0xab0   : > { %v2053_v26 = vmul.f32 1.442695, %v2052_v25  ;;  %4133 = vmatprep.subr.mxu1 %v4838_v6 }
 0xab1   : > { %4134 = vmatpush3.msra.mxu1 %v2086_v39  ;;  %v2241_v48 = vpop.f32.mrf.mxu0 }
 0xab2   : > { %4493 = vpow2.f32 %v2053_v26  ;;  %4135 = vmatprep.subr.mxu1 %v4838_v6 }
 0xab3   : > { %4136 = vmatpush3.msra.mxu1 %v2085_v41  ;;  %v4150_v49 = vpop.f32.mrf.mxu0 }
 0xab4   : > { %4151 = vmatprep.subr.mxu1 %v4838_v6 }
 0xabb   : > { %v4492_v24 = vpop.eup %4491 }
 0xabc   : > { %2064 = vrot.lane.b32.xlu0 %v4492_v24, %s4840_s5 }
 0xabf   : > { %v4494_v27 = vpop.eup %4493 }
 0xac0   : > { %v2055_v28 = vadd.f32 1.0, %v4494_v27 }
 0xac2   : > { %4495 = vrcp.f32 %v2055_v28 }
 0xacf   : > { %v4496_v29 = vpop.eup %4495 }
 0xad0   : > { %v2062_v33 = vmul.f32 %v4496_v29, %v2060_v32 }
 0xb2e   : > { %v2065_v30 = vpop.permute.xlu0 %2064 }
 0xb2f   : > { %v2067_v31 = vmul.f32 %v4496_v29, %v2065_v30 }
 0xb31   : > { %2069 = vrot.lane.b32.xlu1 %v2067_v31, %s4841_s22 }
 0xba3   : > { %v2070_v34 = vpop.permute.xlu1 %2069 }
 0xba4   : > { %v2072_v35 = vadd.f32 %v2070_v34, %v2062_v33 }
 0xba6   : > { %4497 = vtanh.f32 %v2072_v35 }
 0xbb3   : > { %v4498_v43 = vpop.eup %4497 }
 0xbb4   : > { %2075 = vrot.lane.b32.xlu0 %v4498_v43, %s4840_s5 }
 0xc26   : > { %v2076_v44 = vpop.permute.xlu0 %2075 }
 0xc27   : > { %v2078_v45 = vmul.f32 %v4496_v29, %v2076_v44 }
 0xc29   : > { %v2084_v46 = vsel %vm2083_vm6, %v5281_v17, %v2078_v45 }
 0xc2a   : > { %2097 = vrot.lane.b32.xlu1 %v2084_v46, %s4841_s22 }
 0xc9c   : > { %v2098_v47 = vpop.permute.xlu1 %2097 }
 0xc9d   : > { %4138 = vmatmul.mubr.msk.f32.vlgmr.msra.gmra.mxu1 %vm1583_vm2, %v2098_v47 }
 0xc9e   : > { %4152 = vmatpush3.msra.mxu1 %v5296_v36  ;;  %4159 = vmatprep.mubr.msk.f32.mxu1 %vm4839_vm3, %v4838_v6 }
 0xc9f   : > { %4153 = vmatprep.subr.mxu1 %v4838_v6 }
 0xca0   : > { %4154 = vmatpush3.msra.mxu1 %v5305_v38 }
 0xca1   : > { %4155 = vmatprep.subr.mxu1 %v4838_v6 }
 0xca2   : > { %4156 = vmatpush3.msra.mxu1 %v5315_v40 }
 0xca3   : > { %4157 = vmatprep.subr.mxu1 %v4838_v6 }
 0xca4   : > { %4158 = vmatpush3.msra.mxu1 %v5326_v42 }
 0xca5   : > { %4173 = vmatprep.subr.mxu1 %v4838_v6 }
 0xd5d   : > { %v2167_v51 = vpop.f32.mrf.mxu1 }
 0xd5e   : > { %v5360_v52 = vadd.f32 %v3849_v50, %v2167_v51 }
 0xd5f   : > { %v4139_v53 = vpop.f32.mrf.mxu1 }
 0xd60   : > { %v2245_v54 = vadd.f32 %v2241_v48, %v5360_v52 }
 0xd62   : > { %4499 = vtanh.f32 %v2245_v54  ;;  %v2246_v56 = vsub.f32 0.0, %v2245_v54 }
 0xd64   : > { %v2247_v57 = vmul.f32 1.442695, %v2246_v56 }
 0xd66   : > { %4501 = vpow2.f32 %v2247_v57 }
 0xd6f   : > { %v4500_v55 = vpop.eup %4499 }
 0xd70   : > { %2255 = vrot.lane.b32.xlu0 %v4500_v55, %s4840_s5 }
 0xd73   : > { %v4502_v58 = vpop.eup %4501 }
 0xd74   : > { %v2249_v59 = vadd.f32 1.0, %v4502_v58 }
 0xd76   : > { %4503 = vrcp.f32 %v2249_v59 }
 0xd83   : > { %v4504_v60 = vpop.eup %4503 }
 0xd84   : > { %v2253_v63 = vmul.f32 0.0, %v4504_v60 }
 0xde2   : > { %v2256_v61 = vpop.permute.xlu0 %2255 }
 0xde3   : > { %v2258_v62 = vmul.f32 %v4504_v60, %v2256_v61 }
 0xde5   : > { %2260 = vrot.lane.b32.xlu1 %v2258_v62, %s4841_s22 }
 0xe57   : > { %v2261_v0 = vpop.permute.xlu1 %2260 }
 0xe58   : > { %v2263_v1 = vadd.f32 %v2261_v0, %v2253_v63 }
 0xe5a   : > { %4505 = vtanh.f32 %v2263_v1  ;;  %v2357_v20 = vrot.slane %v2263_v1, 7 }
 0xe67   : > { %v4506_v2 = vpop.eup %4505 }
 0xe68   : > { %2266 = vrot.lane.b32.xlu0 %v4506_v2, %s4840_s5 }
 0xeda   : > { %v2267_v3 = vpop.permute.xlu0 %2266 }
 0xedb   : > { %v5366_v4 = vmul.f32 %v4504_v60, %v2267_v3 }
 0xedd   : > { %2271 = vrot.lane.b32.xlu1 %v5366_v4, %s4841_s22 }
 0xf4f   : > { %v2272_v5 = vpop.permute.xlu1 %2271 }
 0xf50   : > { %4160 = vmatmul.mubr.msk.f32.vlgmr.msra.gmra.mxu1 %vm1583_vm2, %v2272_v5  ;;  %v2595_v5 = vld [vmem:[#allocation8 + $0x10] sm:$0xff] }
 0xf51   : > { %4174 = vmatpush3.msra.mxu1 %v5296_v36  ;;  %4181 = vmatprep.mubr.msk.f32.mxu1 %vm4839_vm3, %v4838_v6 }
 0xf52   : > { %4175 = vmatprep.subr.mxu1 %v4838_v6 }
 0xf53   : > { %4176 = vmatpush3.msra.mxu1 %v5305_v38 }
 0xf54   : > { %4177 = vmatprep.subr.mxu1 %v4838_v6 }
 0xf55   : > { %4178 = vmatpush3.msra.mxu1 %v5315_v40 }
 0xf56   : > { %4179 = vmatprep.subr.mxu1 %v4838_v6 }
 0xf57   : > { %4180 = vmatpush3.msra.mxu1 %v5326_v42 }
 0xf58   : > { %4195 = vmatprep.subr.mxu1 %v4838_v6 }
0x1010   : > { %v2341_v7 = vpop.f32.mrf.mxu1 }
0x1011   : > { %v2346_v8 = vrot.slane %v2341_v7, 7  ;;  %v5408_v7 = vld [vmem:[#allocation10 + $0x10] sm:$0xff] }
0x1012   : > { %v4161_v9 = vpop.f32.mrf.mxu1 }
0x1013   : > { %v2348_v10 = vadd.f32 %v2346_v8, %v5360_v52  ;;  %v2594_v8 = vld [vmem:[#allocation8 + $0x8] sm:$0xff] }
0x1014   : > { %v5412_v9 = vld [vmem:[#allocation10 + $0x8] sm:$0xff] }
0x1015   : > { %4507 = vtanh.f32 %v2348_v10  ;;  %v2349_v12 = vsub.f32 0.0, %v2348_v10  ;;  %v2593_v10 = vld [vmem:[#allocation8] sm:$0xff] }
0x1017   : > { %v2350_v13 = vmul.f32 1.442695, %v2349_v12 }
0x1019   : > { %4509 = vpow2.f32 %v2350_v13 }
0x1022   : > { %v4508_v11 = vpop.eup %4507 }
0x1023   : > { %2361 = vrot.lane.b32.xlu0 %v4508_v11, %s4840_s5  ;;  %v5417_v11 = vld [vmem:[#allocation10] sm:$0xff] }
0x1026   : > { %v4510_v14 = vpop.eup %4509 }
0x1027   : > { %v2352_v15 = vadd.f32 1.0, %v4510_v14 }
0x1029   : > { %4511 = vrcp.f32 %v2352_v15 }
0x1036   : > { %v4512_v16 = vpop.eup %4511 }
0x1037   : > { %v2359_v21 = vmul.f32 %v4512_v16, %v2357_v20  ;;  %v3854_v20 = vld [vmem:[#allocation11] ss:$0 sm:$0xff] }
0x1095   : > { %v2362_v17 = vpop.permute.xlu0 %2361 }
0x1096   : > { %v2364_v18 = vmul.f32 %v4512_v16, %v2362_v17 }
0x1098   : > { %2366 = vrot.lane.b32.xlu1 %v2364_v18, %s4841_s22 }
0x110a   : > { %v2367_v22 = vpop.permute.xlu1 %2366 }
0x110b   : > { %v2369_v23 = vadd.f32 %v2367_v22, %v2359_v21 }
0x110d   : > { %4513 = vtanh.f32 %v2369_v23  ;;  %v2464_v40 = vrot.slane %v2369_v23, 7 }
0x111a   : > { %v4514_v24 = vpop.eup %4513 }
0x111b   : > { %2372 = vrot.lane.b32.xlu0 %v4514_v24, %s4840_s5 }
0x118d   : > { %v2373_v25 = vpop.permute.xlu0 %2372 }
0x118e   : > { %v2375_v26 = vmul.f32 %v4512_v16, %v2373_v25 }
0x1190   : > { %v2377_v27 = vrot.slane %v2375_v26, 1  ;;  %v2590_v47 = vsel %vm2079_vm4, %v5366_v4, %v2375_v26  ;;  %v5405_v4 = vld [vmem:[#allocation10 + $0x18] sm:$0xff] }
0x1192   : > { %2378 = vrot.lane.b32.xlu1 %v2377_v27, %s4841_s22 }
0x1204   : > { %v2379_v28 = vpop.permute.xlu1 %2378 }
0x1205   : > { %4171 = vmatmul.mubr.msk.f32.vlgmr.msra.gmra.mxu0 %vm1583_vm2, %v2379_v28 }
0x1206   : > { %4192 = vmatprep.mubr.msk.f32.mxu0 %vm4839_vm3, %v4838_v6 }
0x12c5   : > { %v2448_v29 = vpop.f32.mrf.mxu0 }
0x12c6   : > { %v2453_v30 = vrot.slane %v2448_v29, 6 }
0x12c7   : > { %v4172_v31 = vpop.f32.mrf.mxu0 }
0x12c8   : > { %v2455_v32 = vadd.f32 %v2453_v30, %v5360_v52 }
0x12ca   : > { %4515 = vtanh.f32 %v2455_v32  ;;  %v2456_v34 = vsub.f32 0.0, %v2455_v32 }
0x12cc   : > { %v2457_v35 = vmul.f32 1.442695, %v2456_v34 }
0x12ce   : > { %4517 = vpow2.f32 %v2457_v35 }
0x12d7   : > { %v4516_v33 = vpop.eup %4515 }
0x12d8   : > { %2468 = vrot.lane.b32.xlu0 %v4516_v33, %s4840_s5 }
0x12db   : > { %v4518_v19 = vpop.eup %4517 }
0x12dc   : > { %v2459_v36 = vadd.f32 1.0, %v4518_v19 }
0x12de   : > { %4519 = vrcp.f32 %v2459_v36 }
0x12eb   : > { %v4520_v37 = vpop.eup %4519 }
0x12ec   : > { %v2466_v41 = vmul.f32 %v4520_v37, %v2464_v40 }
0x134a   : > { %v2469_v38 = vpop.permute.xlu0 %2468 }
0x134b   : > { %v2471_v39 = vmul.f32 %v4520_v37, %v2469_v38 }
0x134d   : > { %2473 = vrot.lane.b32.xlu1 %v2471_v39, %s4841_s22 }
0x13bf   : > { %v2474_v42 = vpop.permute.xlu1 %2473 }
0x13c0   : > { %v2476_v43 = vadd.f32 %v2474_v42, %v2466_v41 }
0x13c2   : > { %4521 = vtanh.f32 %v2476_v43  ;;  %v2571_v0 = vrot.slane %v2476_v43, 7 }
0x13cf   : > { %v4522_v44 = vpop.eup %4521 }
0x13d0   : > { %2479 = vrot.lane.b32.xlu0 %v4522_v44, %s4840_s5 }
0x1442   : > { %v2480_v45 = vpop.permute.xlu0 %2479 }
0x1443   : > { %v2482_v46 = vmul.f32 %v4520_v37, %v2480_v45 }
0x1445   : > { %v2484_v48 = vrot.slane %v2482_v46, 2  ;;  %v5396_v49 = vsel %vm2081_vm5, %v2590_v47, %v2482_v46 }
0x1447   : > { %2485 = vrot.lane.b32.xlu1 %v2484_v48, %s4841_s22 }
0x14b9   : > { %v2486_v50 = vpop.permute.xlu1 %2485 }
0x14ba   : > { %4182 = vmatmul.mubr.msk.f32.vlgmr.msra.gmra.mxu1 %vm1583_vm2, %v2486_v50 }
0x14bb   : > { %4203 = vmatprep.mubr.msk.f32.mxu1 %vm4839_vm3, %v4838_v6  ;;  %4196 = vmatpush3.msra.mxu1 %v5405_v4 }
0x14bc   : > { %4197 = vmatprep.subr.mxu1 %v4838_v6 }
0x14bd   : > { %4198 = vmatpush3.msra.mxu1 %v5408_v7 }
0x14be   : > { %4199 = vmatprep.subr.mxu1 %v4838_v6 }
0x14bf   : > { %4200 = vmatpush3.msra.mxu1 %v5412_v9 }
0x14c0   : > { %4201 = vmatprep.subr.mxu1 %v4838_v6 }
0x14c1   : > { %4202 = vmatpush3.msra.mxu1 %v5417_v11 }
0x14c2   : > { %4204 = vmatmul.mubr.f32.vlgmr.msra.gmra.mxu1 %v4838_v6  ;;  %4217 = vmatprep.subr.mxu1 %v4838_v6 }
0x14c3   : > { %4225 = vmatprep.mubr.msk.f32.mxu1 %vm4839_vm3, %v4838_v6  ;;  %4218 = vmatpush3.msra.mxu1 %v5405_v4 }
0x14c4   : > { %4219 = vmatprep.subr.mxu1 %v4838_v6 }
0x14c5   : > { %4220 = vmatpush3.msra.mxu1 %v5408_v7 }
0x14c6   : > { %4221 = vmatprep.subr.mxu1 %v4838_v6 }
0x14c7   : > { %4222 = vmatpush3.msra.mxu1 %v5412_v9 }
0x14c8   : > { %4223 = vmatprep.subr.mxu1 %v4838_v6 }
0x14c9   : > { %4224 = vmatpush3.msra.mxu1 %v5417_v11 }
0x14ca   : > { %4239 = vmatprep.subr.mxu1 %v4838_v6 }
0x157a   : > { %v2555_v51 = vpop.f32.mrf.mxu1 }
0x157b   : > { %v2560_v53 = vrot.slane %v2555_v51, 5 }
0x157c   : > { %v4183_v54 = vpop.f32.mrf.mxu1 }
0x157d   : > { %v2562_v55 = vadd.f32 %v2560_v53, %v5360_v52  ;;  %v2596_v52 = vld [vmem:[#allocation8 + $0x18] sm:$0xff] }
0x157e   : > { %4185 = vmatpush3.msra.mxu0 %v2596_v52 }
0x157f   : > { %4523 = vtanh.f32 %v2562_v55  ;;  %v2563_v57 = vsub.f32 0.0, %v2562_v55  ;;  %4186 = vmatprep.subr.mxu0 %v4838_v6 }
0x1580   : > { %4187 = vmatpush3.msra.mxu0 %v2595_v5 }
0x1581   : > { %v2564_v58 = vmul.f32 1.442695, %v2563_v57  ;;  %4188 = vmatprep.subr.mxu0 %v4838_v6 }
0x1582   : > { %4189 = vmatpush3.msra.mxu0 %v2594_v8  ;;  %v2749_v17 = vpop.f32.mrf.mxu1 }
0x1583   : > { %4525 = vpow2.f32 %v2564_v58  ;;  %4190 = vmatprep.subr.mxu0 %v4838_v6 }
0x1584   : > { %4191 = vmatpush3.msra.mxu0 %v2593_v10  ;;  %v4205_v18 = vpop.f32.mrf.mxu1 }
0x1585   : > { %4206 = vmatprep.subr.mxu0 %v4838_v6 }
0x158c   : > { %v4524_v56 = vpop.eup %4523 }
0x158d   : > { %2575 = vrot.lane.b32.xlu0 %v4524_v56, %s4840_s5 }
0x1590   : > { %v4526_v59 = vpop.eup %4525 }
0x1591   : > { %v2566_v60 = vadd.f32 1.0, %v4526_v59 }
0x1593   : > { %4527 = vrcp.f32 %v2566_v60 }
0x15a0   : > { %v4528_v61 = vpop.eup %4527 }
0x15a1   : > { %v2573_v1 = vmul.f32 %v4528_v61, %v2571_v0 }
0x15ff   : > { %v2576_v62 = vpop.permute.xlu0 %2575 }
0x1600   : > { %v2578_v63 = vmul.f32 %v4528_v61, %v2576_v62 }
0x1602   : > { %2580 = vrot.lane.b32.xlu1 %v2578_v63, %s4841_s22 }
0x1674   : > { %v2581_v2 = vpop.permute.xlu1 %2580 }
0x1675   : > { %v2583_v3 = vadd.f32 %v2581_v2, %v2573_v1 }
0x1677   : > { %4529 = vtanh.f32 %v2583_v3 }
0x1684   : > { %v4530_v12 = vpop.eup %4529 }
0x1685   : > { %2586 = vrot.lane.b32.xlu0 %v4530_v12, %s4840_s5 }
0x16f7   : > { %v2587_v13 = vpop.permute.xlu0 %2586 }
0x16f8   : > { %v2589_v14 = vmul.f32 %v4528_v61, %v2587_v13 }
0x16fa   : > { %v2592_v15 = vsel %vm2083_vm6, %v5396_v49, %v2589_v14 }
0x16fb   : > { %2605 = vrot.lane.b32.xlu1 %v2592_v15, %s4841_s22 }
0x176d   : > { %v2606_v16 = vpop.permute.xlu1 %2605 }
0x176e   : > { %4193 = vmatmul.mubr.msk.f32.vlgmr.msra.gmra.mxu0 %vm1583_vm2, %v2606_v16 }
0x176f   : > { %4207 = vmatpush3.msra.mxu0 %v5405_v4  ;;  %4214 = vmatprep.mubr.msk.f32.mxu0 %vm4839_vm3, %v4838_v6 }
0x1770   : > { %4208 = vmatprep.subr.mxu0 %v4838_v6 }
0x1771   : > { %4209 = vmatpush3.msra.mxu0 %v5408_v7 }
0x1772   : > { %4210 = vmatprep.subr.mxu0 %v4838_v6 }
0x1773   : > { %4211 = vmatpush3.msra.mxu0 %v5412_v9 }
0x1774   : > { %4212 = vmatprep.subr.mxu0 %v4838_v6 }
0x1775   : > { %4213 = vmatpush3.msra.mxu0 %v5417_v11 }
0x1776   : > { %4228 = vmatprep.subr.mxu0 %v4838_v6 }
0x182e   : > { %v2675_v21 = vpop.f32.mrf.mxu0 }
0x182f   : > { %v5451_v22 = vadd.f32 %v3854_v20, %v2675_v21 }
0x1830   : > { %v4194_v23 = vpop.f32.mrf.mxu0 }
0x1831   : > { %v2753_v24 = vadd.f32 %v2749_v17, %v5451_v22 }
0x1833   : > { %4531 = vtanh.f32 %v2753_v24  ;;  %v2754_v26 = vsub.f32 0.0, %v2753_v24 }
0x1835   : > { %v2755_v27 = vmul.f32 1.442695, %v2754_v26 }
0x1837   : > { %4533 = vpow2.f32 %v2755_v27 }
0x1840   : > { %v4532_v25 = vpop.eup %4531 }
0x1841   : > { %2763 = vrot.lane.b32.xlu0 %v4532_v25, %s4840_s5 }
0x1844   : > { %v4534_v28 = vpop.eup %4533 }
0x1845   : > { %v2757_v29 = vadd.f32 1.0, %v4534_v28 }
0x1847   : > { %4535 = vrcp.f32 %v2757_v29 }
0x1854   : > { %v4536_v30 = vpop.eup %4535 }
0x1855   : > { %v2761_v33 = vmul.f32 0.0, %v4536_v30 }
0x18b3   : > { %v2764_v31 = vpop.permute.xlu0 %2763 }
0x18b4   : > { %v2766_v32 = vmul.f32 %v4536_v30, %v2764_v31 }
0x18b6   : > { %2768 = vrot.lane.b32.xlu1 %v2766_v32, %s4841_s22 }
0x1928   : > { %v2769_v34 = vpop.permute.xlu1 %2768 }
0x1929   : > { %v2771_v35 = vadd.f32 %v2769_v34, %v2761_v33 }
0x192b   : > { %4537 = vtanh.f32 %v2771_v35  ;;  %v2865_v51 = vrot.slane %v2771_v35, 7 }
0x1938   : > { %v4538_v19 = vpop.eup %4537 }
0x1939   : > { %2774 = vrot.lane.b32.xlu0 %v4538_v19, %s4840_s5 }
0x19ab   : > { %v2775_v36 = vpop.permute.xlu0 %2774 }
0x19ac   : > { %v5457_v37 = vmul.f32 %v4536_v30, %v2775_v36 }
0x19ae   : > { %2779 = vrot.lane.b32.xlu1 %v5457_v37, %s4841_s22 }
0x1a20   : > { %v2780_v38 = vpop.permute.xlu1 %2779 }
0x1a21   : > { %4215 = vmatmul.mubr.msk.f32.vlgmr.msra.gmra.mxu0 %vm1583_vm2, %v2780_v38  ;;  %v3102_v38 = vld [vmem:[#allocation13 + $0x8] sm:$0xff] }
0x1a22   : > { %4229 = vmatpush3.msra.mxu0 %v5405_v4  ;;  %4236 = vmatprep.mubr.msk.f32.mxu0 %vm4839_vm3, %v4838_v6 }
0x1a23   : > { %4230 = vmatprep.subr.mxu0 %v4838_v6 }
0x1a24   : > { %4231 = vmatpush3.msra.mxu0 %v5408_v7 }
0x1a25   : > { %4232 = vmatprep.subr.mxu0 %v4838_v6 }
0x1a26   : > { %4233 = vmatpush3.msra.mxu0 %v5412_v9 }
0x1a27   : > { %4234 = vmatprep.subr.mxu0 %v4838_v6 }
0x1a28   : > { %4235 = vmatpush3.msra.mxu0 %v5417_v11 }
0x1a29   : > { %4260 = vmatprep.subr.mxu0 %v4838_v6 }
0x1ae1   : > { %v2849_v39 = vpop.f32.mrf.mxu0 }
0x1ae2   : > { %v2854_v40 = vrot.slane %v2849_v39, 7  ;;  %v3101_v39 = vld [vmem:[#allocation13] sm:$0xff] }
0x1ae3   : > { %v4216_v41 = vpop.f32.mrf.mxu0 }
0x1ae4   : > { %v2856_v42 = vadd.f32 %v2854_v40, %v5451_v22  ;;  %v3187_v41 = vld [vmem:[#allocation14] sm:$0xff] }
0x1ae6   : > { %4539 = vtanh.f32 %v2856_v42  ;;  %v2857_v44 = vsub.f32 0.0, %v2856_v42 }
0x1ae8   : > { %v2858_v45 = vmul.f32 1.442695, %v2857_v44 }
0x1aea   : > { %4541 = vpow2.f32 %v2858_v45 }
0x1af3   : > { %v4540_v43 = vpop.eup %4539 }
0x1af4   : > { %2869 = vrot.lane.b32.xlu0 %v4540_v43, %s4840_s5 }
0x1af7   : > { %v4542_v46 = vpop.eup %4541 }
0x1af8   : > { %v2860_v47 = vadd.f32 1.0, %v4542_v46  ;;  %v3859_v46 = vld [vmem:[#allocation16] ss:$0 sm:$0xff] }
0x1afa   : > { %4543 = vrcp.f32 %v2860_v47 }
0x1b07   : > { %v4544_v48 = vpop.eup %4543 }
0x1b08   : > { %v2867_v53 = vmul.f32 %v4544_v48, %v2865_v51 }
0x1b66   : > { %v2870_v49 = vpop.permute.xlu0 %2869 }
0x1b67   : > { %v2872_v50 = vmul.f32 %v4544_v48, %v2870_v49 }
0x1b69   : > { %2874 = vrot.lane.b32.xlu1 %v2872_v50, %s4841_s22 }
0x1bdb   : > { %v2875_v54 = vpop.permute.xlu1 %2874 }
0x1bdc   : > { %v2877_v55 = vadd.f32 %v2875_v54, %v2867_v53 }
0x1bde   : > { %4545 = vtanh.f32 %v2877_v55  ;;  %v2972_v9 = vrot.slane %v2877_v55, 7 }
0x1beb   : > { %v4546_v56 = vpop.eup %4545 }
0x1bec   : > { %2880 = vrot.lane.b32.xlu0 %v4546_v56, %s4840_s5 }
0x1c5e   : > { %v2881_v57 = vpop.permute.xlu0 %2880 }
0x1c5f   : > { %v2883_v58 = vmul.f32 %v4544_v48, %v2881_v57 }
0x1c61   : > { %v2885_v59 = vrot.slane %v2883_v58, 1  ;;  %v3098_v16 = vsel %vm2079_vm4, %v5457_v37, %v2883_v58  ;;  %v3103_v37 = vld [vmem:[#allocation13 + $0x10] sm:$0xff] }
0x1c63   : > { %2886 = vrot.lane.b32.xlu1 %v2885_v59, %s4841_s22 }
0x1cd5   : > { %v2887_v60 = vpop.permute.xlu1 %2886 }
0x1cd6   : > { %4226 = vmatmul.mubr.msk.f32.vlgmr.msra.gmra.mxu1 %vm1583_vm2, %v2887_v60 }
0x1cd7   : > { %4247 = vmatprep.mubr.msk.f32.mxu1 %vm4839_vm3, %v4838_v6 }
0x1d96   : > { %v2956_v61 = vpop.f32.mrf.mxu1 }
0x1d97   : > { %v2961_v62 = vrot.slane %v2956_v61, 6 }
0x1d98   : > { %v4227_v63 = vpop.f32.mrf.mxu1 }
0x1d99   : > { %v2963_v0 = vadd.f32 %v2961_v62, %v5451_v22 }
0x1d9b   : > { %4547 = vtanh.f32 %v2963_v0  ;;  %v2964_v2 = vsub.f32 0.0, %v2963_v0 }
0x1d9d   : > { %v2965_v3 = vmul.f32 1.442695, %v2964_v2 }
0x1d9f   : > { %4549 = vpow2.f32 %v2965_v3 }
0x1da8   : > { %v4548_v1 = vpop.eup %4547 }
0x1da9   : > { %2976 = vrot.lane.b32.xlu0 %v4548_v1, %s4840_s5 }
0x1dac   : > { %v4550_v52 = vpop.eup %4549 }
0x1dad   : > { %v2967_v4 = vadd.f32 1.0, %v4550_v52 }
0x1daf   : > { %4551 = vrcp.f32 %v2967_v4 }
0x1dbc   : > { %v4552_v5 = vpop.eup %4551 }
0x1dbd   : > { %v2974_v10 = vmul.f32 %v4552_v5, %v2972_v9  ;;  %v3501_v9 = vld [vmem:[%s5563_s15 + $0x18] sm:$0xff] }
0x1e1b   : > { %v2977_v7 = vpop.permute.xlu0 %2976 }
0x1e1c   : > { %v2979_v8 = vmul.f32 %v4552_v5, %v2977_v7  ;;  %v3499_v7 = vld [vmem:[%s5563_s15 + $0x8] sm:$0xff] }
0x1e1e   : > { %2981 = vrot.lane.b32.xlu1 %v2979_v8, %s4841_s22  ;;  %v3500_v8 = vld [vmem:[%s5563_s15 + $0x10] sm:$0xff] }
0x1e90   : > { %v2982_v11 = vpop.permute.xlu1 %2981 }
0x1e91   : > { %v2984_v12 = vadd.f32 %v2982_v11, %v2974_v10 }
0x1e93   : > { %4553 = vtanh.f32 %v2984_v12  ;;  %v3079_v34 = vrot.slane %v2984_v12, 7 }
0x1ea0   : > { %v4554_v13 = vpop.eup %4553 }
0x1ea1   : > { %2987 = vrot.lane.b32.xlu0 %v4554_v13, %s4840_s5 }
0x1f13   : > { %v2988_v14 = vpop.permute.xlu0 %2987 }
0x1f14   : > { %v2990_v15 = vmul.f32 %v4552_v5, %v2988_v14 }
0x1f16   : > { %v2992_v17 = vrot.slane %v2990_v15, 2  ;;  %v3099_v18 = vsel %vm2081_vm5, %v3098_v16, %v2990_v15 }
0x1f18   : > { %2993 = vrot.lane.b32.xlu1 %v2992_v17, %s4841_s22 }
0x1f8a   : > { %v2994_v20 = vpop.permute.xlu1 %2993 }
0x1f8b   : > { %4237 = vmatmul.mubr.msk.f32.vlgmr.msra.gmra.mxu0 %vm1583_vm2, %v2994_v20 }
0x1f8c   : > { %4262 = vmatprep.mubr.msk.f32.mxu0 %vm4839_vm3, %v4838_v6  ;;  %4261 = vmatpush3.msra.mxu0 %v3187_v41 }
0x204b   : > { %v3063_v21 = vpop.f32.mrf.mxu0 }
0x204c   : > { %v3068_v23 = vrot.slane %v3063_v21, 5 }
0x204d   : > { %v4238_v24 = vpop.f32.mrf.mxu0 }
0x204e   : > { %v3070_v25 = vadd.f32 %v3068_v23, %v5451_v22  ;;  %v3104_v22 = vld [vmem:[#allocation13 + $0x18] sm:$0xff] }
0x204f   : > { %4240 = vmatpush3.msra.mxu1 %v3104_v22 }
0x2050   : > { %4555 = vtanh.f32 %v3070_v25  ;;  %v3071_v27 = vsub.f32 0.0, %v3070_v25  ;;  %4241 = vmatprep.subr.mxu1 %v4838_v6 }
0x2051   : > { %4242 = vmatpush3.msra.mxu1 %v3103_v37 }
0x2052   : > { %v3072_v28 = vmul.f32 1.442695, %v3071_v27  ;;  %4243 = vmatprep.subr.mxu1 %v4838_v6 }
0x2053   : > { %4244 = vmatpush3.msra.mxu1 %v3102_v38 }
0x2054   : > { %4557 = vpow2.f32 %v3072_v28  ;;  %4245 = vmatprep.subr.mxu1 %v4838_v6 }
0x2055   : > { %4246 = vmatpush3.msra.mxu1 %v3101_v39 }
0x2056   : > { %4250 = vmatprep.subr.mxu1 %v4838_v6 }
0x205d   : > { %v4556_v26 = vpop.eup %4555 }
0x205e   : > { %3083 = vrot.lane.b32.xlu0 %v4556_v26, %s4840_s5 }
0x2061   : > { %v4558_v29 = vpop.eup %4557 }
0x2062   : > { %v3074_v30 = vadd.f32 1.0, %v4558_v29 }
0x2064   : > { %4559 = vrcp.f32 %v3074_v30 }
0x2071   : > { %v4560_v31 = vpop.eup %4559 }
0x2072   : > { %v3081_v35 = vmul.f32 %v4560_v31, %v3079_v34 }
0x20d0   : > { %v3084_v32 = vpop.permute.xlu0 %3083 }
0x20d1   : > { %v3086_v33 = vmul.f32 %v4560_v31, %v3084_v32 }
0x20d3   : > { %3088 = vrot.lane.b32.xlu1 %v3086_v33, %s4841_s22 }
0x2145   : > { %v3089_v19 = vpop.permute.xlu1 %3088 }
0x2146   : > { %v3091_v36 = vadd.f32 %v3089_v19, %v3081_v35 }
0x2148   : > { %4561 = vtanh.f32 %v3091_v36 }
0x2155   : > { %v4562_v40 = vpop.eup %4561 }
0x2156   : > { %3094 = vrot.lane.b32.xlu0 %v4562_v40, %s4840_s5 }
0x21c8   : > { %v3095_v42 = vpop.permute.xlu0 %3094 }
0x21c9   : > { %v3097_v43 = vmul.f32 %v4560_v31, %v3095_v42 }
0x21cb   : > { %v3100_v44 = vsel %vm2083_vm6, %v3099_v18, %v3097_v43 }
0x21cc   : > { %3113 = vrot.lane.b32.xlu1 %v3100_v44, %s4841_s22 }
0x223e   : > { %v3114_v45 = vpop.permute.xlu1 %3113 }
0x223f   : > { %4248 = vmatmul.mubr.msk.f32.vlgmr.msra.gmra.mxu1 %vm1583_vm2, %v3114_v45 }
0x2240   : > { %4251 = vmatpush3.msra.mxu1 %v3187_v41  ;;  %4252 = vmatprep.mubr.msk.f32.mxu1 %vm4839_vm3, %v4838_v6 }
0x2241   : > { %4255 = vmatprep.subr.mxu1 %v4838_v6 }
0x2243   : > { %4253 = vmatmul.mubr.f32.vlgmr.msra.gmra.mxu1 %v4838_v6 }
0x2244   : > { %4256 = vmatpush3.msra.mxu1 %v3187_v41  ;;  %4257 = vmatprep.mubr.msk.f32.mxu1 %vm4839_vm3, %v4838_v6 }
0x2245   : > { %4265 = vmatprep.subr.mxu1 %v4838_v6 }
0x22ff   : > { %v3183_v47 = vpop.f32.mrf.mxu1 }
0x2300   : > { %v3184_v49 = vadd.f32 %v3859_v46, %v3183_v47 }
0x2301   : > { %v4249_v48 = vpop.f32.mrf.mxu1 }
0x2303   : > { %v3257_v50 = vpop.f32.mrf.mxu1 }
0x2304   : > { %v3261_v51 = vadd.f32 %v3257_v50, %v3184_v49 }
0x2305   : > { %v4254_v53 = vpop.f32.mrf.mxu1 }
0x2306   : > { %4258 = vmatmul.mubr.msk.f32.vlgmr.msra.gmra.mxu1 %vm3188_vm7, %v3261_v51 }
0x2307   : > { %4266 = vmatpush3.msra.mxu1 %v3187_v41  ;;  %4267 = vmatprep.mubr.msk.f32.mxu1 %vm4839_vm3, %v4838_v6  ;;  %v3498_v6 = vld [vmem:[%s5563_s15] sm:$0xff] }
0x23c6   : > { %v3331_v54 = vpop.f32.mrf.mxu1 }
0x23c7   : > { %v3336_v55 = vrot.slane %v3331_v54, 7 }
0x23c8   : > { %v4259_v56 = vpop.f32.mrf.mxu1 }
0x23c9   : > { %v3338_v57 = vadd.f32 %v3336_v55, %v3184_v49 }
0x23cb   : > { %v3340_v58 = vrot.slane %v3338_v57, 1  ;;  %v3495_v63 = vsel %vm2079_vm4, %v3261_v51, %v3338_v57 }
0x23cd   : > { %4263 = vmatmul.mubr.msk.f32.vlgmr.msra.gmra.mxu0 %vm3188_vm7, %v3340_v58 }
0x23ce   : > { %4272 = vmatprep.mubr.msk.f32.mxu0 %vm3502_vm8, %v3498_v6 }
0x248d   : > { %v3409_v59 = vpop.f32.mrf.mxu0 }
0x248e   : > { %v3414_v60 = vrot.slane %v3409_v59, 6 }
0x248f   : > { %v4264_v61 = vpop.f32.mrf.mxu0 }
0x2490   : > { %v3416_v62 = vadd.f32 %v3414_v60, %v3184_v49 }
0x2492   : > { %v3418_v0 = vrot.slane %v3416_v62, 2  ;;  %v3496_v1 = vsel %vm2081_vm5, %v3495_v63, %v3416_v62 }
0x2494   : > { %4268 = vmatmul.mubr.msk.f32.vlgmr.msra.gmra.mxu1 %vm3188_vm7, %v3418_v0 }
0x2554   : > { %v3487_v2 = vpop.f32.mrf.mxu1 }
0x2555   : > { %v3492_v3 = vrot.slane %v3487_v2, 5 }
0x2556   : > { %v4269_v52 = vpop.f32.mrf.mxu1 }
0x2557   : > { %v3494_v4 = vadd.f32 %v3492_v3, %v3184_v49 }
0x2559   : > { %v3497_v5 = vsel %vm2083_vm6, %v3496_v1, %v3494_v4 }
0x255a   : > { %4270 = vmatprep.subr.msk.mxu0 %vm3515_vm9, %v3497_v5 }
0x255b   : > { %4271 = vmatpush3.msk.msra.mxu0 %vm3515_vm9, %v3497_v5 }
0x255c   : > { %4273 = vmatmul.mubr.msk.f32.vlgmr.msra.gmra.mxu0 %vm3502_vm8, %v3499_v7 }
0x255d   : > { %4275 = vmatprep.mubr.msk.f32.mxu0 %vm3502_vm8, %v3500_v8 }
0x2560   : > { %4276 = vmatmul.mubr.msk.f32.gmra.mxu0 %vm3502_vm8, %v3501_v9 }
0x261c   : > { %v4274_v10 = vpop.f32.mrf.mxu0 }
0x261d   : > { %3605 = vst.msk [vmem:[%s5564_s16 + $0x8] sm:$0xff] %vm3188_vm7, %v4274_v10 }
0x261e   : > { %v3585_v11 = vpop.f32.mrf.mxu0 }
0x261f   : > { %3604 = vst.msk [vmem:[%s5564_s16] sm:$0xff] %vm3188_vm7, %v3585_v11 }
0x2620   : > { %v4277_v12 = vpop.f32.mrf.mxu0 }
0x2621   : > { %3607 = vst.msk [vmem:[%s5564_s16 + $0x18] sm:$0xff] %vm3188_vm7, %v4277_v12 }
0x2622   : > { %v3595_v13 = vpop.f32.mrf.mxu0 }
0x2623   : > { %3606 = vst.msk [vmem:[%s5564_s16 + $0x10] sm:$0xff] %vm3188_vm7, %v3595_v13 }
0x2624 PF: > { %s31_s21 = sadd.s32 1, %s4823_s21  }
0x2625   : > { %p28_p2 = scmp.ge.s32.totalorder %s31_s21, 4  }
0x2627   :  { %30 = sbr.rel (!%p28_p2) target bundleno = 8 (0x8), region = 158 }
0x262c   :  { %3619 = vsyncpa [#allocation4], 1 }
0x262d   :  { %3621 = vsyncpa [#allocation4 + $0x1], 1 }
0x262e   :  { %3622 = vsyncpa [#allocation6], 1 }
0x262f   :  { %3623 = vsyncpa [#allocation9], 1 }
0x2630   :  { %3624 = vsyncpa [#allocation12], 1 }
0x2631   :  { %3625 = vsyncpa [#allocation15], 1 }

// kernel: detm_forward_eval.3
= control target key start
LH: loop header
LB: loop body
LE: loop exit
PB: predicated region body
PF: predicated region fallthrough
CT: control target
= control target key end

     0   :  { %s6703_s0 = inlined_call_operand.vmem [shape: bf16[32,2560], index: 0, kind: input, shape index: {}]   ;;  %s6704_s1 = inlined_call_operand.vmem [shape: bf16[64,2560], index: 1, kind: input, shape index: {}]   ;;  %s6705_s2 = inlined_call_operand.vmem [shape: bf16[2560,64], index: 2, kind: input, shape index: {}]   ;;  %s6706_s3 = inlined_call_operand.hbm [shape: bf16[32,64], index: 3, kind: input, shape index: {}]   ;;  %s6707_s4 = inlined_call_operand.vmem [shape: f32[32,8], index: 4, kind: input, shape index: {}]   ;;  %s6708_s5 = inlined_call_operand.vmem [shape: s32[32,1], index: 5, kind: input, shape index: {}]   ;;  %s6709_s6 = inlined_call_operand.hbm [shape: f32[8,64], index: 6, kind: input, shape index: {}]   ;;  %s6710_s7 = inlined_call_operand.vmem [shape: f32[1,64], index: 7, kind: input, shape index: {}]   ;;  %s6711_s8 = inlined_call_operand.vmem [shape: f32[64,64], index: 8, kind: input, shape index: {}]   ;;  %s6712_s9 = inlined_call_operand.hbm [shape: f32[1,64], index: 9, kind: input, shape index: {}]   ;;  %s6713_s10 = inlined_call_operand.vmem [shape: f32[64,8], index: 10, kind: input, shape index: {}]   ;;  %s6714_s11 = inlined_call_operand.hbm [shape: f32[1,8], index: 11, kind: input, shape index: {}]   ;;  %s6715_s12 = inlined_call_operand.vmem [shape: f32[2,8,128], index: 12, kind: output, shape index: {}]  }
   0x1   :  { %6744 = sst [smem:[#allocation33_spill]] %s6705_s2 }
   0x2   :  { %6745 = sst [smem:[#allocation34_spill]] %s6707_s4 }
   0x3   :  { %6746 = sst [smem:[#allocation35_spill]] %s6708_s5 }
   0x4   :  { %6747 = sst [smem:[#allocation36_spill]] %s6709_s6 }
   0x5   :  { %6748 = sst [smem:[#allocation37_spill]] %s6710_s7 }
   0x6   :  { %6749 = sst [smem:[#allocation38_spill]] %s6711_s8 }
   0x7   :  { %6750 = sst [smem:[#allocation39_spill]] %s6713_s10 }
   0x8   :  { %6751 = sst [smem:[#allocation40_spill]] %s6715_s12 }
   0x9   :  { %17 = vsyncpa [#allocation10], 0 }
   0xa   :  { %18 = vsyncpa [#allocation12], 0 }
   0xb   :  { %19 = vsyncpa [#allocation15], 0  ;;  %s5517_s21 = smov 0   ;;  %s5519_s22 = smov 0  }
   0xc   :  { %s5521_s23 = smov 0   ;;  %s5523_s24 = smov 0  }
   0xd   :  { %s5525_s25 = smov 0   ;;  %s5527_s26 = smov 0  }
   0xe   :  { %s5529_s27 = smov 0   ;;  %s5531_s28 = smov 0  }
   0xf   :  { %s5533_s29 = smov 0   ;;  %s5535_s30 = smov 0  }
  0x10   :  { %s5537_s13 = smov 0  }
  0x11 LB: > { %6752 = sst [smem:[#allocation19_spill]] %s5428_s29  ;;  %s4236_s14 = sadd.s32 4294967295, %s5436_s13   ;;  %s5436_s13 = sphi %s5537_s13, %s25_s13   ;;  %s5432_s30 = sphi %s5535_s30, %s6822_s30   ;;  %s5428_s29 = sphi %s5533_s29, %s6813_s29   ;;  %s5424_s28 = sphi %s5531_s28, %s6821_s28   ;;  %s5420_s27 = sphi %s5529_s27, %s6820_s27   ;;  %s5416_s26 = sphi %s5527_s26, %s6811_s26   ;;  %s5412_s25 = sphi %s5525_s25, %s6819_s25   ;;  %s5408_s24 = sphi %s5523_s24, %s6818_s24   ;;  %s5404_s23 = sphi %s5521_s23, %s6817_s23   ;;  %s5400_s22 = sphi %s5519_s22, %s6816_s22   ;;  %s5396_s21 = sphi %s5517_s21, %s6815_s21  }
  0x12   : > { %s37_s15 = sadd.s32 1, %s5424_s28  ;;  %s40_s16 = sadd.s32 1, %s5428_s29 }
  0x13   : > { %p38_p0 = scmp.ge.s32.totalorder %s37_s15, 2  ;;  %s44_s17 = sadd.s32 1, %s5432_s30 }
  0x14   : > { %s53_s18 = sadd.s32 1, %s5408_s24  ;;  %p60_p1 = scmp.ne.s32.totalorder %s5408_s24, %s5404_s23 }
  0x15   : > { %s6824_s15 = smov (%p38_p0, %s37_s15), 0  ;;  %s6826_s16 = smov (!%p38_p0, %s40_s16), %s5428_s29 }
  0x16   : > { %6753 = sst [smem:[#allocation20_spill]] %s6824_s15  ;;  %s49_s19 = ssub.s32 %s5424_s28, %s6824_s15 }
  0x17   : > { %p42_p2 = scmp.ge.s32.totalorder %s6826_s16, 2  ;;  %p61_p3 = scmp.eq.s32.totalorder %s5436_s13, 0 }
  0x18   : > { %p77_p4 = scmp.eq.s32.totalorder %s49_s19, 0  ;;  %s79_s20 = sadd.s32 1, %s5400_s22 }
  0x19   : > { %s6828_s16 = smov (%p42_p2, %s6826_s16), 0  ;;  %s6830_s17 = smov (!%p42_p2, %s44_s17), %s5432_s30 }
  0x1a   : > { %6754 = sst [smem:[#allocation21_spill]] %s6828_s16  ;;  %p5589_p5 = por %p61_p3, %p60_p1 }
  0x1b   : > { %p86_p6 = scmp.ne.s32.totalorder %s5400_s22, %s5396_s21  ;;  %p46_p7 = scmp.ge.s32.totalorder %s6830_s17, 2 }
  0x1c   : > { %p4238_p8 = scmp.ge.s32.totalorder %s5436_s13, 1  ;;  %p358_p10 = scmp.lt.s32.totalorder %s5436_s13, 9 }
  0x1d   : > { %s5597_s29 = scalar_select %p77_p4, %s5400_s22, %s79_s20  }
  0x1e   : > { %s6832_s17 = smov (%p46_p7, %s6830_s17), 0  ;;  %p5601_p9 = por %p86_p6, %p61_p3 }
  0x1f   : > { %6756 = sst [smem:[#allocation22_spill]] %s5597_s29  ;;  %s48_s16 = ssub.s32 %s5432_s30, %s6832_s17 }
  0x20   : > { %6757 = sst [smem:[#allocation23_spill]] %s6832_s17  ;;  %s50_s10 = sor.u32 %s49_s19, %s48_s16 }
  0x21   : > { %p5608_p11 = pnand %p4238_p8, %p358_p10  ;;  %p51_p12 = scmp.eq.s32.totalorder %s50_s10, 0 }
  0x22   : > { %p5612_p13 = scmp.eq.s32.totalorder %s4236_s14, 0  ;;  %s5438_s16 = smov [#allocation11]  }
  0x23   : > { %s6759_s8 = scalar_select %p5608_p11, 1, 0 }
  0x24   : > { %s6760_s12 = scalar_select %p5612_p13, 1, 0 }
  0x25   : > { %p4686_p0 = pneg %p5608_p11  ;;  %s384_s19 = sshll.u32 %s5438_s16, 4  ;;  %s385_s19 = int_to_ptr.vmem [resolvable:$true] %s384_s19 }
  0x26   : > { %s5619_s20 = scalar_select %p51_p12, %s5408_s24, %s53_s18  }
  0x27   : > { %p5623_p1 = pnand %p5612_p13, %p4686_p0  ;;  %s5245_s10 = scalar_lea.vmem %s385_s19, 128 }
  0x28   : > { %6761 = sst [smem:[#allocation24_spill]] %s5619_s20  ;;  %p5246_p3 = scmp.ne.s32.totalorder %s385_s19, %s5245_s10 }
  0x29   : > { %p5236_p2 = pneg %p5623_p1  ;;  %p5253_p7 = scmp.lt.s32.totalorder %s385_s19, %s385_s19 }
  0x2a   : > { %p5254_p8 = scmp.lt.s32.totalorder %s5245_s10, %s5245_s10 }
  0x2b   : > { %p5248_p4 = pnand %p5246_p3, %p5236_p2 }
  0x2c   : > { %p5255_p10 = por %p5254_p8, %p5253_p7 }
  0x2d   : > { %p5249_p6 = pneg %p5248_p4 }
  0x2f   : > { %p5256_p12 = pnand %p5255_p10, %p5249_p6 }
  0x31   : > { %5259 = shalt.err (!%p5256_p12)
}
  0x32   : > { %s6763_s6 = sld [smem:[#allocation36_spill]]  ;;  %s5439_s16 = smov [#allocation9]  }
  0x33   : > { %s370_s17 = sshll.u32 %s5439_s16, 4  ;;  %s371_s17 = int_to_ptr.vmem [resolvable:$true] %s370_s17 }
  0x34   : > { %s5271_s20 = scalar_lea.vmem %s371_s17, 256  ;;  %p5279_p13 = scmp.lt.s32.totalorder %s371_s17, %s371_s17 }
  0x35   : > { %p5272_p0 = scmp.ne.s32.totalorder %s371_s17, %s5271_s20  ;;  %p5280_p7 = scmp.lt.s32.totalorder %s5271_s20, %s5271_s20 }
  0x37   : > { %p5274_p3 = pnand %p5272_p0, %p5236_p2  ;;  %p5281_p6 = por %p5280_p7, %p5279_p13 }
  0x38   : > { %4692 = dma.hbm_to_vmem [thread:$0]  (!%p5623_p1), %s6763_s6, 128, %s385_s19, [#allocation12]  }
  0x39   : > { %p5275_p4 = pneg %p5274_p3 }
  0x3b   : > { %p5282_p8 = pnand %p5281_p6, %p5275_p4 }
  0x3d   : > { %5285 = shalt.err (!%p5282_p8)
}
  0x3e   : > { %s5440_s10 = smov 64   ;;  %s5441_s14 = smov 4  }
  0x3f   : > { %4689 = dma.hbm_to_vmem [thread:$0]  (!%p5623_p1), %s6706_s3, 256, %s371_s17, [#allocation10], %s5440_s10, %s5440_s10, %s5441_s14  }
  0x40   : > { %s5442_s16 = smov [#allocation13]   ;;  %s5443_s2 = smov [#allocation14]  }
  0x41   : > { %s401_s6 = sshll.u32 %s5442_s16, 4  ;;  %s415_s5 = sshll.u32 %s5443_s2, 4  ;;  %s402_s6 = int_to_ptr.vmem [resolvable:$true] %s401_s6  ;;  %s416_s5 = int_to_ptr.vmem [resolvable:$true] %s415_s5 }
  0x42   : > { %s5297_s4 = scalar_lea.vmem %s402_s6, 16  ;;  %s5304_s20 = scalar_lea.vmem %s402_s6, 32 }
  0x43   : > { %p5298_p10 = scmp.ne.s32.totalorder %s402_s6, %s5297_s4  ;;  %p5305_p0 = scmp.lt.s32.totalorder %s402_s6, %s402_s6 }
  0x44   : > { %p5306_p3 = scmp.lt.s32.totalorder %s5304_s20, %s5297_s4 }
  0x45   : > { %p5300_p13 = pnand %p5298_p10, %p5236_p2 }
  0x46   : > { %p5307_p4 = por %p5306_p3, %p5305_p0 }
  0x47   : > { %p5301_p12 = pneg %p5300_p13 }
  0x49   : > { %p5308_p7 = pnand %p5307_p4, %p5301_p12 }
  0x4b   : > { %5311 = shalt.err (!%p5308_p7)
}
  0x4c   : > { %4695 = dma.hbm_to_vmem [thread:$0]  (!%p5623_p1), %s6712_s9, 16, %s402_s6, [#allocation12]  }
  0x4d   : > { %s5323_s2 = scalar_lea.vmem %s416_s5, 16  ;;  %s5330_s14 = scalar_lea.vmem %s416_s5, 32 }
  0x4e   : > { %p5324_p6 = scmp.ne.s32.totalorder %s416_s5, %s5323_s2  ;;  %p5331_p13 = scmp.lt.s32.totalorder %s416_s5, %s416_s5 }
  0x4f   : > { %p5332_p11 = scmp.lt.s32.totalorder %s5330_s14, %s5323_s2 }
  0x50   : > { %p5326_p8 = pnand %p5324_p6, %p5236_p2 }
  0x51   : > { %p5333_p0 = por %p5332_p11, %p5331_p13 }
  0x52   : > { %p5327_p10 = pneg %p5326_p8 }
  0x54   : > { %p5334_p12 = pnand %p5333_p0, %p5327_p10 }
  0x56   : > { %5337 = shalt.err (!%p5334_p12)
}
  0x57   : > { %4698 = dma.hbm_to_vmem [thread:$0]  (!%p5623_p1), %s6714_s11, 16, %s416_s5, [#allocation15]  }
  0x58   : > { %p4243_p3 = scmp.ge.s32.totalorder %s5436_s13, 8 }
  0x5a   : > { %422 = sbr.rel (%p4243_p3) target bundleno = 134 (0x86), region = 44 }
  0x5f   : > { %425 = sbr.rel (!%p5589_p5) target bundleno = 109 (0x6d), region = 48  ;;  %s427_s6 = sand.u32 (%p5589_p5), 1, %s5408_s24  }
  0x60   : > { %s431_s18 = smul.u32 (%p5589_p5), 10, %s5424_s28 }
  0x61   : > { %s4663_s16 = smul.u32 (%p5589_p5), 80, %s427_s6 }
  0x62   : > { %s4664_s20 = smul.u32 (%p5589_p5), 40, %s5432_s30 }
  0x63   : > { %s429_s5 = scalar_lea.vmem (%p5589_p5), [#allocation7], %s4663_s16 }
  0x64   : > { %s433_s17 = sadd.s32 %s4664_s20, %s431_s18 }
  0x65   : > { %s4246_s10 = sshll.u32 %s433_s17, 2 }
  0x66   : > { %s435_s14 = scalar_lea.vmem %s6703_s0, %s4246_s10 }
  0x67   : > { %v448_v0 = vld [vmem:[%s435_s14] sm:$0xff]  ;;  %v450_v1 = vld [vmem:[%s435_s14 + $0x8] sm:$0xff]  ;;  %v452_v2 = vld [vmem:[%s435_s14 + $0x10] sm:$0xff] }
  0x68   : > { %449 = vst [vmem:[%s429_s5] sm:$0xff] %v448_v0  ;;  %451 = vst [vmem:[%s429_s5 + $0x8] sm:$0xff] %v450_v1  ;;  %v454_v3 = vld [vmem:[%s435_s14 + $0x18] sm:$0xff]  ;;  %v456_v4 = vld [vmem:[%s435_s14 + $0x20] sm:$0xff] }
  0x69   : > { %453 = vst [vmem:[%s429_s5 + $0x10] sm:$0xff] %v452_v2  ;;  %v458_v5 = vld [vmem:[%s435_s14 + $0x50] sm:$0xff]  ;;  %455 = vst [vmem:[%s429_s5 + $0x18] sm:$0xff] %v454_v3  ;;  %v460_v6 = vld [vmem:[%s435_s14 + $0x58] sm:$0xff] }
  0x6a   : > { %457 = vst [vmem:[%s429_s5 + $0x20] sm:$0xff] %v456_v4  ;;  %459 = vst [vmem:[%s429_s5 + $0x28] sm:$0xff] %v458_v5  ;;  %v462_v7 = vld [vmem:[%s435_s14 + $0x60] sm:$0xff]  ;;  %v464_v8 = vld [vmem:[%s435_s14 + $0x68] sm:$0xff] }
  0x6b   : > { %461 = vst [vmem:[%s429_s5 + $0x30] sm:$0xff] %v460_v6  ;;  %463 = vst [vmem:[%s429_s5 + $0x38] sm:$0xff] %v462_v7  ;;  %v466_v9 = vld [vmem:[%s435_s14 + $0x70] sm:$0xff] }
  0x6c   : > { %465 = vst [vmem:[%s429_s5 + $0x40] sm:$0xff] %v464_v8  ;;  %467 = vst [vmem:[%s429_s5 + $0x48] sm:$0xff] %v466_v9 }
  0x6d PF: > { %473 = sbr.rel (!%p5601_p9) target bundleno = 134 (0x86), region = 71  ;;  %s475_s7 = sand.u32 (%p5601_p9), 1, %s5400_s22  }
  0x6e   : > { %s4476_s4 = smul.u32 (%p5601_p9), 40, %s5424_s28 }
  0x6f   : > { %s4665_s19 = smul.u32 (%p5601_p9), 320, %s475_s7 }
  0x70   : > { %s5677_s16 = scalar_lea.vmem (%p5601_p9), %s6704_s1, %s4476_s4 }
  0x71   : > { %v493_v10 = vld [vmem:[%s5677_s16] sm:$0xff] (%p5601_p9)  ;;  %v495_v11 = vld [vmem:[%s5677_s16 + $0x8] sm:$0xff] (%p5601_p9)  ;;  %v497_v12 = vld [vmem:[%s5677_s16 + $0x10] sm:$0xff] (%p5601_p9)  ;;  %s5682_s15 = scalar_lea.vmem (%p5601_p9), [#allocation8], %s4665_s19 }
  0x72   : > { %494 = vst [vmem:[%s5682_s15] sm:$0xff] %v493_v10  ;;  %496 = vst [vmem:[%s5682_s15 + $0x8] sm:$0xff] %v495_v11  ;;  %v499_v13 = vld [vmem:[%s5677_s16 + $0x18] sm:$0xff]  ;;  %v501_v14 = vld [vmem:[%s5677_s16 + $0x20] sm:$0xff] }
  0x73   : > { %498 = vst [vmem:[%s5682_s15 + $0x10] sm:$0xff] %v497_v12  ;;  %v503_v15 = vld [vmem:[%s5677_s16 + $0x50] sm:$0xff]  ;;  %500 = vst [vmem:[%s5682_s15 + $0x18] sm:$0xff] %v499_v13  ;;  %v505_v16 = vld [vmem:[%s5677_s16 + $0x58] sm:$0xff] }
  0x74   : > { %502 = vst [vmem:[%s5682_s15 + $0x20] sm:$0xff] %v501_v14  ;;  %504 = vst [vmem:[%s5682_s15 + $0x28] sm:$0xff] %v503_v15  ;;  %v507_v17 = vld [vmem:[%s5677_s16 + $0x60] sm:$0xff]  ;;  %v509_v18 = vld [vmem:[%s5677_s16 + $0x68] sm:$0xff] }
  0x75   : > { %506 = vst [vmem:[%s5682_s15 + $0x30] sm:$0xff] %v505_v16  ;;  %508 = vst [vmem:[%s5682_s15 + $0x38] sm:$0xff] %v507_v17  ;;  %v511_v19 = vld [vmem:[%s5677_s16 + $0x70] sm:$0xff]  ;;  %v513_v20 = vld [vmem:[%s5677_s16 + $0xa0] sm:$0xff] }
  0x76   : > { %510 = vst [vmem:[%s5682_s15 + $0x40] sm:$0xff] %v509_v18  ;;  %v515_v21 = vld [vmem:[%s5677_s16 + $0xa8] sm:$0xff]  ;;  %512 = vst [vmem:[%s5682_s15 + $0x48] sm:$0xff] %v511_v19  ;;  %v517_v22 = vld [vmem:[%s5677_s16 + $0xb0] sm:$0xff] }
  0x77   : > { %514 = vst [vmem:[%s5682_s15 + $0x50] sm:$0xff] %v513_v20  ;;  %516 = vst [vmem:[%s5682_s15 + $0x58] sm:$0xff] %v515_v21  ;;  %v519_v23 = vld [vmem:[%s5677_s16 + $0xb8] sm:$0xff]  ;;  %v521_v24 = vld [vmem:[%s5677_s16 + $0xc0] sm:$0xff] }
  0x78   : > { %518 = vst [vmem:[%s5682_s15 + $0x60] sm:$0xff] %v517_v22  ;;  %520 = vst [vmem:[%s5682_s15 + $0x68] sm:$0xff] %v519_v23  ;;  %v523_v25 = vld [vmem:[%s5677_s16 + $0xf0] sm:$0xff]  ;;  %v525_v26 = vld [vmem:[%s5677_s16 + $0xf8] sm:$0xff] }
  0x79   : > { %522 = vst [vmem:[%s5682_s15 + $0x70] sm:$0xff] %v521_v24  ;;  %v527_v27 = vld [vmem:[%s5677_s16 + $0x100] sm:$0xff]  ;;  %524 = vst [vmem:[%s5682_s15 + $0x78] sm:$0xff] %v523_v25  ;;  %v529_v28 = vld [vmem:[%s5677_s16 + $0x108] sm:$0xff] }
  0x7a   : > { %526 = vst [vmem:[%s5682_s15 + $0x80] sm:$0xff] %v525_v26  ;;  %528 = vst [vmem:[%s5682_s15 + $0x88] sm:$0xff] %v527_v27  ;;  %v531_v29 = vld [vmem:[%s5677_s16 + $0x110] sm:$0xff]  ;;  %v533_v30 = vld [vmem:[%s5677_s16 + $0x140] sm:$0xff] }
  0x7b   : > { %530 = vst [vmem:[%s5682_s15 + $0x90] sm:$0xff] %v529_v28  ;;  %532 = vst [vmem:[%s5682_s15 + $0x98] sm:$0xff] %v531_v29  ;;  %v535_v31 = vld [vmem:[%s5677_s16 + $0x148] sm:$0xff]  ;;  %v537_v32 = vld [vmem:[%s5677_s16 + $0x150] sm:$0xff] }
  0x7c   : > { %534 = vst [vmem:[%s5682_s15 + $0xa0] sm:$0xff] %v533_v30  ;;  %v539_v33 = vld [vmem:[%s5677_s16 + $0x158] sm:$0xff]  ;;  %536 = vst [vmem:[%s5682_s15 + $0xa8] sm:$0xff] %v535_v31  ;;  %v541_v34 = vld [vmem:[%s5677_s16 + $0x160] sm:$0xff] }
  0x7d   : > { %538 = vst [vmem:[%s5682_s15 + $0xb0] sm:$0xff] %v537_v32  ;;  %540 = vst [vmem:[%s5682_s15 + $0xb8] sm:$0xff] %v539_v33  ;;  %v543_v35 = vld [vmem:[%s5677_s16 + $0x190] sm:$0xff]  ;;  %v545_v36 = vld [vmem:[%s5677_s16 + $0x198] sm:$0xff] }
  0x7e   : > { %542 = vst [vmem:[%s5682_s15 + $0xc0] sm:$0xff] %v541_v34  ;;  %544 = vst [vmem:[%s5682_s15 + $0xc8] sm:$0xff] %v543_v35  ;;  %v547_v37 = vld [vmem:[%s5677_s16 + $0x1a0] sm:$0xff]  ;;  %v549_v38 = vld [vmem:[%s5677_s16 + $0x1a8] sm:$0xff] }
  0x7f   : > { %546 = vst [vmem:[%s5682_s15 + $0xd0] sm:$0xff] %v545_v36  ;;  %v551_v39 = vld [vmem:[%s5677_s16 + $0x1b0] sm:$0xff]  ;;  %548 = vst [vmem:[%s5682_s15 + $0xd8] sm:$0xff] %v547_v37  ;;  %v553_v40 = vld [vmem:[%s5677_s16 + $0x1e0] sm:$0xff] }
  0x80   : > { %550 = vst [vmem:[%s5682_s15 + $0xe0] sm:$0xff] %v549_v38  ;;  %552 = vst [vmem:[%s5682_s15 + $0xe8] sm:$0xff] %v551_v39  ;;  %v555_v41 = vld [vmem:[%s5677_s16 + $0x1e8] sm:$0xff]  ;;  %v557_v42 = vld [vmem:[%s5677_s16 + $0x1f0] sm:$0xff] }
  0x81   : > { %554 = vst [vmem:[%s5682_s15 + $0xf0] sm:$0xff] %v553_v40  ;;  %556 = vst [vmem:[%s5682_s15 + $0xf8] sm:$0xff] %v555_v41  ;;  %v559_v43 = vld [vmem:[%s5677_s16 + $0x1f8] sm:$0xff]  ;;  %v561_v44 = vld [vmem:[%s5677_s16 + $0x200] sm:$0xff] }
  0x82   : > { %558 = vst [vmem:[%s5682_s15 + $0x100] sm:$0xff] %v557_v42  ;;  %v563_v45 = vld [vmem:[%s5677_s16 + $0x230] sm:$0xff]  ;;  %560 = vst [vmem:[%s5682_s15 + $0x108] sm:$0xff] %v559_v43  ;;  %v565_v46 = vld [vmem:[%s5677_s16 + $0x238] sm:$0xff] }
  0x83   : > { %562 = vst [vmem:[%s5682_s15 + $0x110] sm:$0xff] %v561_v44  ;;  %564 = vst [vmem:[%s5682_s15 + $0x118] sm:$0xff] %v563_v45  ;;  %v567_v47 = vld [vmem:[%s5677_s16 + $0x240] sm:$0xff]  ;;  %v569_v48 = vld [vmem:[%s5677_s16 + $0x248] sm:$0xff] }
  0x84   : > { %566 = vst [vmem:[%s5682_s15 + $0x120] sm:$0xff] %v565_v46  ;;  %568 = vst [vmem:[%s5682_s15 + $0x128] sm:$0xff] %v567_v47  ;;  %v571_v49 = vld [vmem:[%s5677_s16 + $0x250] sm:$0xff] }
  0x85   : > { %570 = vst [vmem:[%s5682_s15 + $0x130] sm:$0xff] %v569_v48  ;;  %572 = vst [vmem:[%s5682_s15 + $0x138] sm:$0xff] %v571_v49 }
  0x86 PF: > { %p6764_p5 = scmp.ne.s32.totalorder %s6759_s8, 0 }
  0x88   : > { %612 = sbr.rel (%p6764_p5) target bundleno = 2902 (0xb56), region = 106 }
  0x8d   : > { %s615_s20 = sand.u32 1, %s5404_s23   ;;  %s622_s17 = sand.u32 1, %s5396_s21  }
  0x8e   : > { %s4666_s10 = smul.u32 80, %s615_s20  ;;  %p6765_p9 = scmp.ne.s32.totalorder %s6760_s12, 0 }
  0x8f   : > { %s4667_s29 = smul.u32 320, %s622_s17 }
  0x90   : > { %s5765_s2 = scalar_lea.vmem [#allocation7], %s4666_s10 }
  0x91   : > { %s5767_s14 = scalar_lea.vmem [#allocation8], %s4667_s29 }
  0x92   : > { %5383 = dma.done.wait (%p6765_p9), [#allocation10], 256  }
  0x93   : > { %5385 = vsyncadd (%p6765_p9), [#allocation10], 4294967040 }
  0x94   : > { %5387 = dma.done.wait (%p6765_p9), [#allocation12], 144  }
  0x95   : > { %5389 = vsyncadd (%p6765_p9), [#allocation12], 4294967152 }
  0x96   : > { %5391 = dma.done.wait (%p6765_p9), [#allocation15], 16  }
  0x97   : > { %5393 = vsyncadd (%p6765_p9), [#allocation15], 4294967280  ;;  %s702_s8 = ssub.s32 1, %s5416_s26  ;;  %s4254_s21 = sshll.u32 %s5420_s27, 1  ;;  %v730_v50 = vlaneseq }
  0x98   : > { %s703_s23 = smul.u32 %s5412_s25, %s702_s8  ;;  %p713_p11 = scmp.lt.s32.totalorder %s4254_s21, 3 }
  0x99   : > { %s729_s5 = smul.u32 1280, %s5412_s25  ;;  %v5785_v51 = vand.u32 127, %v730_v50  ;;  %p762_p1 = scmp.eq.s32.totalorder %s5416_s26, 0 }
  0x9a   : > { %s704_s7 = smul.u32 160, %s703_s23  ;;  %s6834_s21 = smov (!%p713_p11, %s4254_s21), 3 }
  0x9b   : > { %v732_v52 = vadd.s32 128, %v5785_v51  ;;  %v733_v53 = vadd.s32 256, %v5785_v51  ;;  %v734_v54 = vadd.s32 384, %v5785_v51  ;;  %v735_v55 = vadd.s32 512, %v5785_v51  ;;  %p763_p4 = scmp.eq.s32.totalorder %s5412_s25, 0  ;;  %s4255_s12 = sshll.u32 %s6834_s21, 3 }
  0x9c   : > { %p705_p2 = scmp.lt.s32.totalorder %s704_s7, 319  ;;  %v736_v56 = vadd.s32 640, %v5785_v51  ;;  %v737_v57 = vadd.s32 768, %v5785_v51  ;;  %v738_v58 = vadd.s32 896, %v5785_v51  ;;  %v739_v59 = vadd.s32 1024, %v5785_v51  ;;  %p724_p7 = scmp.lt.s32.totalorder %s5420_s27, 1 }
  0x9d   : > { %v740_v60 = vadd.s32 1152, %v5785_v51  ;;  %v741_v61 = vstv %s729_s5  ;;  %s6768_s6 = sld [smem:[#allocation34_spill]]  ;;  %p764_p6 = pnand %p763_p4, %p762_p1 }
  0x9e   : > { %s6836_s7 = smov (!%p705_p2, %s704_s7), 319  ;;  %v5800_v62 = vadd.s32 %v741_v61, %v5785_v51  ;;  %v5802_v63 = vadd.s32 %v741_v61, %v732_v52  ;;  %v5804_v0 = vadd.s32 %v741_v61, %v733_v53  ;;  %v5806_v1 = vadd.s32 %v741_v61, %v734_v54  ;;  %s6769_s20 = sld [smem:[#allocation35_spill]] }
  0x9f   : > { %v5818_v2 = vadd.s32 %v741_v61, %v735_v55  ;;  %v5820_v3 = vadd.s32 %v741_v61, %v736_v56  ;;  %v5822_v4 = vadd.s32 %v741_v61, %v737_v57  ;;  %v5824_v5 = vadd.s32 %v741_v61, %v738_v58  ;;  %s4253_s10 = sshll.u32 %s6836_s7, 2  ;;  %s6776_s21 = sld [smem:[#allocation33_spill]] }
  0xa0   : > { %6766 = vst [vmem:[#allocation25_spill] sm:$0xff] %v5804_v0  ;;  %6767 = vst [vmem:[#allocation26_spill] sm:$0xff] %v5806_v1  ;;  %v5826_v6 = vadd.s32 %v741_v61, %v739_v59  ;;  %v5828_v7 = vadd.s32 %v741_v61, %v740_v60  ;;  %vm752_vm0 = vcmp.lt.s32.totalorder %v5800_v62, 2500  ;;  %vm753_vm1 = vcmp.lt.s32.totalorder %v5802_v63, 2500  ;;  %s6838_s27 = smov (!%p724_p7, %s5420_s27), 1  ;;  %s6777_s4 = sld [smem:[#allocation40_spill]] }
  0xa1   : > { %6770 = vst [vmem:[#allocation27_spill] sm:$0xff] %v5818_v2  ;;  %6771 = vst [vmem:[#allocation28_spill] sm:$0xff] %v5820_v3  ;;  %vm754_vm2 = vcmp.lt.s32.totalorder %v5804_v0, 2500  ;;  %vm755_vm3 = vcmp.lt.s32.totalorder %v5806_v1, 2500  ;;  %vm6742_vm4 = vcmp.lt.s32.totalorder %v5818_v2, 2500  ;;  %vm757_vm5 = vcmp.lt.s32.totalorder %v5820_v3, 2500 }
  0xa2   : > { %6772 = vst [vmem:[#allocation29_spill] sm:$0xff] %v5822_v4  ;;  %6773 = vst [vmem:[#allocation30_spill] sm:$0xff] %v5824_v5  ;;  %vm758_vm6 = vcmp.lt.s32.totalorder %v5822_v4, 2500  ;;  %vm6743_vm7 = vcmp.lt.s32.totalorder %v5824_v5, 2500  ;;  %vm6740_vm8 = vcmp.lt.s32.totalorder %v5826_v6, 2500  ;;  %vm6741_vm9 = vcmp.lt.s32.totalorder %v5828_v7, 2500 }
  0xa3   : > { %s5811_s18 = scalar_lea.vmem %s6768_s6, %s4255_s12  ;;  %6774 = vst [vmem:[#allocation31_spill] sm:$0xff] %v5826_v6  ;;  %6775 = vst [vmem:[#allocation32_spill] sm:$0xff] %v5828_v7  ;;  %s4258_s5 = sshll.u32 %s6838_s27, 3 }
  0xa4   : > { %s5816_s17 = scalar_lea.vmem %s6769_s20, %s4255_s12  ;;  %767 = sbr.rel (%p764_p6) target bundleno = 176 (0xb0), region = 134 }
  0xa5   : > { %s5839_s23 = scalar_lea.vmem %s6776_s21, %s4253_s10 }
  0xa6   : > { %s5855_s19 = scalar_lea.vmem %s6777_s4, %s4258_s5 }
  0xa9   : > { %vm768_vm10 = vcmask 523264   ;;  %vm771_vm11 = vcmask 7168   ;;  %v5444_v8 = vmov 0.0   ;;  %v5445_v9 = vmov -inf  }
  0xaa   : > { %769 = vst.msk [vmem:[#allocation2] sm:$0xff] %vm768_vm10, %v5444_v8  ;;  %770 = vst.msk [vmem:[#allocation2 + $0x8] sm:$0xff] %vm768_vm10, %v5444_v8 }
  0xab   : > { %772 = vst.msk [vmem:[#allocation4] sm:$0xff] %vm771_vm11, %v5445_v9  ;;  %773 = vst.msk [vmem:[#allocation4 + $0x8] sm:$0xff] %vm771_vm11, %v5445_v9 }
  0xac   : > { %774 = vst.msk [vmem:[#allocation4 + $0x10] sm:$0xff] %vm771_vm11, %v5445_v9  ;;  %775 = vst.msk [vmem:[#allocation4 + $0x18] sm:$0xff] %vm771_vm11, %v5445_v9 }
  0xad   : > { %776 = vst.msk [vmem:[#allocation5] sm:$0xff] %vm771_vm11, %v5444_v8  ;;  %777 = vst.msk [vmem:[#allocation5 + $0x8] sm:$0xff] %vm771_vm11, %v5444_v8 }
  0xae   : > { %778 = vst.msk [vmem:[#allocation5 + $0x10] sm:$0xff] %vm771_vm11, %v5444_v8  ;;  %779 = vst.msk [vmem:[#allocation5 + $0x18] sm:$0xff] %vm771_vm11, %v5444_v8 }
  0xaf   : > { %780 = vst.msk [vmem:[#allocation6] sm:$0xff] %vm771_vm11, %v5444_v8  ;;  %781 = vst.msk [vmem:[#allocation6 + $0x8] sm:$0xff] %vm771_vm11, %v5444_v8 }
  0xb0 PF: > { %p4259_p8 = scmp.ne.s32.totalorder %s5416_s26, 0 }
  0xb1   : > { %p4402_p10 = scmp.ne.s32.totalorder (!%p4259_p8), %s5412_s25, 1 }
  0xb2   : > { %784 = sbr.rel (%p4259_p8) target bundleno = 2031 (0x7ef), region = 138 }
  0xb7   : > { %v4811_v10 = vld [vmem:[%s5839_s23 + $0x78] sm:$0xff]   ;;  %v5446_v12 = vmov 0   ;;  %v4815_v15 = vld [vmem:[%s5839_s23 + $0x70] sm:$0xff]   ;;  %v4819_v19 = vld [vmem:[%s5839_s23 + $0x68] sm:$0xff]   ;;  %vm1694_vm12 = vcmask 523264   ;;  %vm2542_vm13 = vcmask 7168  }
  0xb8   : > { %v4812_v11 = vld [vmem:[%s5839_s23 + $0xf8] sm:$0xff]   ;;  %4810 = vset.pattern.permute.xlu1 %v5446_v12  ;;  %4809 = vset.pattern.permute.xlu0 %v5446_v12  ;;  %v4816_v16 = vld [vmem:[%s5839_s23 + $0xf0] sm:$0xff]   ;;  %v4820_v20 = vld [vmem:[%s5839_s23 + $0xe8] sm:$0xff]   ;;  %s6782_s16 = sld [smem:[#allocation38_spill]] (!%p4402_p10)  ;;  %s5449_s5 = smov (!%p4402_p10), 16  }
  0xb9   : > { %4479 = vmatprep.subr.bf16.mxu0 %v4811_v10  ;;  %v4813_v13 = vld [vmem:[%s5839_s23 + $0x38] sm:$0xff]   ;;  %4501 = vmatprep.subr.bf16.mxu1 %v4812_v11  ;;  %v4817_v17 = vld [vmem:[%s5839_s23 + $0x30] sm:$0xff]   ;;  %v4821_v21 = vld [vmem:[%s5839_s23 + $0x28] sm:$0xff]   ;;  %s6783_s10 = sld [smem:[#allocation39_spill]] (!%p4402_p10) }
  0xba   : > { %v4814_v14 = vld [vmem:[%s5839_s23 + $0xb8] sm:$0xff]   ;;  %4480 = vmatpush3.bf16.msra.mxu0 %v4813_v13  ;;  %v4818_v18 = vld [vmem:[%s5839_s23 + $0xb0] sm:$0xff]   ;;  %v4822_v22 = vld [vmem:[%s5839_s23 + $0xa8] sm:$0xff]   ;;  %s6784_s4 = sld [smem:[#allocation37_spill]] (!%p4402_p10) }
  0xbb   : > { %4502 = vmatpush3.bf16.msra.mxu1 %v4814_v14  ;;  %4481 = vmatprep.subr.bf16.mxu0 %v4815_v15  ;;  %v4823_v23 = vld [vmem:[%s5839_s23 + $0x60] sm:$0xff]   ;;  %v4827_v27 = vld [vmem:[%s5839_s23 + $0x58] sm:$0xff]   ;;  %v4831_v31 = vld [vmem:[%s5839_s23 + $0x50] sm:$0xff]  }
  0xbc   : > { %4503 = vmatprep.subr.bf16.mxu1 %v4816_v16  ;;  %v4824_v24 = vld [vmem:[%s5839_s23 + $0xe0] sm:$0xff]   ;;  %v4828_v28 = vld [vmem:[%s5839_s23 + $0xd8] sm:$0xff]   ;;  %v4832_v32 = vld [vmem:[%s5839_s23 + $0xd0] sm:$0xff]  }
  0xbd   : > { %v4825_v25 = vld [vmem:[%s5839_s23 + $0x20] sm:$0xff]   ;;  %v4829_v29 = vld [vmem:[%s5839_s23 + $0x18] sm:$0xff]   ;;  %v4833_v33 = vld [vmem:[%s5839_s23 + $0x10] sm:$0xff]  }
  0xbe   : > { %4482 = vmatpush3.bf16.msra.mxu0 %v4817_v17  ;;  %v4826_v26 = vld [vmem:[%s5839_s23 + $0xa0] sm:$0xff]   ;;  %v4830_v30 = vld [vmem:[%s5839_s23 + $0x98] sm:$0xff]   ;;  %v4834_v34 = vld [vmem:[%s5839_s23 + $0x90] sm:$0xff]  }
  0xbf   : > { %4504 = vmatpush3.bf16.msra.mxu1 %v4818_v18  ;;  %4483 = vmatprep.subr.bf16.mxu0 %v4819_v19  ;;  %v4835_v35 = vld [vmem:[%s5839_s23 + $0x48] sm:$0xff]   ;;  %v4839_v39 = vld [vmem:[%s5839_s23 + $0x40] sm:$0xff]   ;;  %v4849_v47 = vld [vmem:[%s5839_s23 + $0x178] sm:$0xff]  }
  0xc0   : > { %4505 = vmatprep.subr.bf16.mxu1 %v4820_v20  ;;  %v4836_v36 = vld [vmem:[%s5839_s23 + $0xc8] sm:$0xff]   ;;  %v4840_v40 = vld [vmem:[%s5839_s23 + $0xc0] sm:$0xff]   ;;  %v4850_v48 = vld [vmem:[%s5839_s23 + $0x1f8] sm:$0xff]  }
  0xc1   : > { %v4837_v37 = vld [vmem:[%s5839_s23 + $0x8] sm:$0xff]   ;;  %v4841_v41 = vld [vmem:[%s5839_s23] sm:$0xff]   ;;  %v4851_v49 = vld [vmem:[%s5839_s23 + $0x138] sm:$0xff]  }
  0xc2   : > { %4484 = vmatpush3.bf16.msra.mxu0 %v4821_v21  ;;  %v4838_v38 = vld [vmem:[%s5839_s23 + $0x88] sm:$0xff]   ;;  %v4842_v42 = vld [vmem:[%s5839_s23 + $0x80] sm:$0xff]   ;;  %v4852_v50 = vld [vmem:[%s5839_s23 + $0x1b8] sm:$0xff]  }
  0xc3   : > { %4506 = vmatpush3.bf16.msra.mxu1 %v4822_v22  ;;  %4485 = vmatprep.subr.bf16.mxu0 %v4823_v23  ;;  %v4843_v43 = vld [vmem:[%s5765_s2] ss:$40 sps:$4 sm:$0xff]   ;;  %v4845_v44 = vld [vmem:[%s5765_s2 + $0x4] ss:$40 sps:$4 sm:$0xff]  }
  0xc4   : > { %4507 = vmatprep.subr.bf16.mxu1 %v4824_v24  ;;  %v4846_v45 = vld [vmem:[%s5765_s2 + $0x8] ss:$40 sps:$4 sm:$0xff]   ;;  %v4848_v46 = vld [vmem:[%s5765_s2 + $0xc] ss:$40 sps:$4 sm:$0xff]   ;;  %1519 = vmatprep.mubr.bf16.mxu0 %v4845_v44 }
  0xc5   : > { %1560 = vmatprep.mubr.bf16.mxu1 %v4848_v46  ;;  %v4853_v52 = vld [vmem:[%s5839_s23 + $0x170] sm:$0xff]   ;;  %v4857_v56 = vld [vmem:[%s5839_s23 + $0x168] sm:$0xff]   ;;  %v4861_v60 = vld [vmem:[%s5839_s23 + $0x160] sm:$0xff]  }
  0xc6   : > { %4486 = vmatpush3.bf16.msra.mxu0 %v4825_v25  ;;  %v4854_v53 = vld [vmem:[%s5839_s23 + $0x1f0] sm:$0xff]   ;;  %v4858_v57 = vld [vmem:[%s5839_s23 + $0x1e8] sm:$0xff]   ;;  %v4862_v61 = vld [vmem:[%s5839_s23 + $0x1e0] sm:$0xff]  }
  0xc7   : > { %4508 = vmatpush3.bf16.msra.mxu1 %v4826_v26  ;;  %4487 = vmatprep.subr.bf16.mxu0 %v4827_v27  ;;  %v4855_v54 = vld [vmem:[%s5839_s23 + $0x130] sm:$0xff]   ;;  %v4859_v58 = vld [vmem:[%s5839_s23 + $0x128] sm:$0xff]   ;;  %v4863_v8 = vld [vmem:[%s5839_s23 + $0x120] sm:$0xff]  }
  0xc8   : > { %4509 = vmatprep.subr.bf16.mxu1 %v4828_v28  ;;  %v4856_v55 = vld [vmem:[%s5839_s23 + $0x1b0] sm:$0xff]   ;;  %v4860_v59 = vld [vmem:[%s5839_s23 + $0x1a8] sm:$0xff]   ;;  %v4864_v9 = vld [vmem:[%s5839_s23 + $0x1a0] sm:$0xff]  }
  0xc9   : > { %v4865_v10 = vld [vmem:[%s5839_s23 + $0x158] sm:$0xff]   ;;  %v4869_v15 = vld [vmem:[%s5839_s23 + $0x150] sm:$0xff]   ;;  %v4873_v19 = vld [vmem:[%s5839_s23 + $0x148] sm:$0xff]  }
  0xca   : > { %4488 = vmatpush3.bf16.msra.mxu0 %v4829_v29  ;;  %v4866_v11 = vld [vmem:[%s5839_s23 + $0x1d8] sm:$0xff]   ;;  %v4870_v16 = vld [vmem:[%s5839_s23 + $0x1d0] sm:$0xff]   ;;  %v4874_v20 = vld [vmem:[%s5839_s23 + $0x1c8] sm:$0xff]  }
  0xcb   : > { %4510 = vmatpush3.bf16.msra.mxu1 %v4830_v30  ;;  %4489 = vmatprep.subr.bf16.mxu0 %v4831_v31  ;;  %v4867_v13 = vld [vmem:[%s5839_s23 + $0x118] sm:$0xff]   ;;  %v4871_v17 = vld [vmem:[%s5839_s23 + $0x110] sm:$0xff]   ;;  %v4875_v21 = vld [vmem:[%s5839_s23 + $0x108] sm:$0xff]  }
  0xcc   : > { %4511 = vmatprep.subr.bf16.mxu1 %v4832_v32  ;;  %v4868_v14 = vld [vmem:[%s5839_s23 + $0x198] sm:$0xff]   ;;  %v4872_v18 = vld [vmem:[%s5839_s23 + $0x190] sm:$0xff]   ;;  %v4876_v22 = vld [vmem:[%s5839_s23 + $0x188] sm:$0xff]  }
  0xcd   : > { %v4877_v23 = vld [vmem:[%s5839_s23 + $0x140] sm:$0xff]   ;;  %v4887_v31 = vld [vmem:[%s5839_s23 + $0x278] sm:$0xff]   ;;  %v4903_v44 = vld [vmem:[%s5767_s14] ss:$40 sps:$4 sm:$0xff]  }
  0xce   : > { %4490 = vmatpush3.bf16.msra.mxu0 %v4833_v33  ;;  %v4878_v24 = vld [vmem:[%s5839_s23 + $0x1c0] sm:$0xff]  }
  0xcf   : > { %4512 = vmatpush3.bf16.msra.mxu1 %v4834_v34  ;;  %4491 = vmatprep.subr.bf16.mxu0 %v4835_v35  ;;  %v4879_v25 = vld [vmem:[%s5839_s23 + $0x100] sm:$0xff]   ;;  %v4891_v34 = vld [vmem:[%s5839_s23 + $0x238] sm:$0xff]   ;;  %v4892_v35 = vld [vmem:[%s5839_s23 + $0x270] sm:$0xff]  }
  0xd0   : > { %4513 = vmatprep.subr.bf16.mxu1 %v4836_v36  ;;  %v4880_v26 = vld [vmem:[%s5839_s23 + $0x180] sm:$0xff]   ;;  %v4893_v36 = vld [vmem:[%s5767_s14 + $0xa0] ss:$40 sps:$4 sm:$0xff]  }
  0xd1   : > { %v4881_v27 = vld [vmem:[%s5765_s2 + $0x10] ss:$40 sps:$4 sm:$0xff]   ;;  %v4883_v28 = vld [vmem:[%s5765_s2 + $0x14] ss:$40 sps:$4 sm:$0xff]  }
  0xd2   : > { %4492 = vmatpush3.bf16.msra.mxu0 %v4837_v37  ;;  %v4884_v29 = vld [vmem:[%s5765_s2 + $0x18] ss:$40 sps:$4 sm:$0xff]   ;;  %v4886_v30 = vld [vmem:[%s5765_s2 + $0x1c] ss:$40 sps:$4 sm:$0xff]  }
  0xd3   : > { %4514 = vmatpush3.bf16.msra.mxu1 %v4838_v38  ;;  %4493 = vmatprep.subr.bf16.mxu0 %v4839_v39  ;;  %v4888_v32 = vld [vmem:[%s5767_s14 + $0xf0] ss:$40 sps:$4 sm:$0xff]   ;;  %v4890_v33 = vld [vmem:[%s5767_s14 + $0xf4] ss:$40 sps:$4 sm:$0xff]   ;;  %v4895_v37 = vld [vmem:[%s5767_s14 + $0xa4] ss:$40 sps:$4 sm:$0xff]  }
  0xd4   : > { %4515 = vmatprep.subr.bf16.mxu1 %v4840_v40  ;;  %v4896_v38 = vld [vmem:[%s5839_s23 + $0x230] sm:$0xff]   ;;  %v4897_v39 = vld [vmem:[%s5839_s23 + $0x268] sm:$0xff]   ;;  %v4898_v40 = vld [vmem:[%s5767_s14 + $0x50] ss:$40 sps:$4 sm:$0xff]  }
  0xd5   : > { %v4906_v46 = vld [vmem:[%s5839_s23 + $0x220] sm:$0xff]  }
  0xd6   : > { %4494 = vmatpush3.bf16.msra.mxu0 %v4841_v41  ;;  %v4900_v41 = vld [vmem:[%s5767_s14 + $0x54] ss:$40 sps:$4 sm:$0xff]  }
  0xd7   : > { %4516 = vmatpush3.bf16.msra.mxu1 %v4842_v42  ;;  %4523 = vmatprep.subr.bf16.mxu0 %v4849_v47  ;;  %v4901_v42 = vld [vmem:[%s5839_s23 + $0x228] sm:$0xff]   ;;  %v4907_v47 = vld [vmem:[%s5839_s23 + $0x258] sm:$0xff]  }
  0xd8   : > { %4545 = vmatprep.subr.bf16.mxu1 %v4850_v48  ;;  %v5950_v48 = vld [vmem:[#allocation9] sm:$0xff]  }
  0xd9   : > { %1520 = vmatmul.mubr.bf16.vlgmr.msra.gmra.mxu0 %v4843_v43  ;;  %v4902_v43 = vld [vmem:[%s5839_s23 + $0x260] sm:$0xff]  }
  0xda   : > { %1561 = vmatmul.mubr.bf16.vlgmr.msra.gmra.mxu1 %v4846_v45  ;;  %4524 = vmatpush3.bf16.msra.mxu0 %v4851_v49  ;;  %v4905_v45 = vld [vmem:[%s5767_s14 + $0x4] ss:$40 sps:$4 sm:$0xff]   ;;  %v4909_v49 = vld [vmem:[%s5767_s14 + $0xf8] ss:$40 sps:$4 sm:$0xff]  }
  0xdb   : > { %4546 = vmatpush3.bf16.msra.mxu1 %v4852_v50  ;;  %4525 = vmatprep.subr.bf16.mxu0 %v4853_v52  ;;  %v4911_v50 = vld [vmem:[%s5767_s14 + $0xfc] ss:$40 sps:$4 sm:$0xff]   ;;  %v4912_v52 = vld [vmem:[%s5839_s23 + $0x218] sm:$0xff]  }
  0xdc   : > { %4547 = vmatprep.subr.bf16.mxu1 %v4854_v53  ;;  %1601 = vmatprep.mubr.bf16.mxu0 %v4883_v28  ;;  %v4913_v53 = vld [vmem:[%s5839_s23 + $0x250] sm:$0xff]   ;;  %v4955_v28 = vld [vmem:[%s5767_s14 + $0x1c] ss:$40 sps:$4 sm:$0xff]  }
  0xdd   : > { %1642 = vmatprep.mubr.bf16.mxu1 %v4886_v30  ;;  %v4953_v30 = vld [vmem:[%s5767_s14 + $0x18] ss:$40 sps:$4 sm:$0xff]  }
  0xde   : > { %4526 = vmatpush3.bf16.msra.mxu0 %v4855_v54  ;;  %v4914_v54 = vld [vmem:[%s5767_s14 + $0xa8] ss:$40 sps:$4 sm:$0xff]  }
  0xdf   : > { %4548 = vmatpush3.bf16.msra.mxu1 %v4856_v55  ;;  %4527 = vmatprep.subr.bf16.mxu0 %v4857_v56  ;;  %v4916_v55 = vld [vmem:[%s5767_s14 + $0xac] ss:$40 sps:$4 sm:$0xff]  }
  0xe0   : > { %4549 = vmatprep.subr.bf16.mxu1 %v4858_v57  ;;  %v4917_v56 = vld [vmem:[%s5839_s23 + $0x210] sm:$0xff]   ;;  %v4918_v57 = vld [vmem:[%s5839_s23 + $0x248] sm:$0xff]  }
  0xe2   : > { %4528 = vmatpush3.bf16.msra.mxu0 %v4859_v58  ;;  %v5963_v58 = vld [vmem:[#allocation9 + $0x8] sm:$0xff]  }
  0xe3   : > { %4550 = vmatpush3.bf16.msra.mxu1 %v4860_v59  ;;  %4529 = vmatprep.subr.bf16.mxu0 %v4861_v60  ;;  %v4920_v59 = vld [vmem:[%s5767_s14 + $0x58] ss:$40 sps:$4 sm:$0xff]   ;;  %v4922_v60 = vld [vmem:[%s5767_s14 + $0x5c] ss:$40 sps:$4 sm:$0xff]  }
  0xe4   : > { %4551 = vmatprep.subr.bf16.mxu1 %v4862_v61  ;;  %v4923_v61 = vld [vmem:[%s5839_s23 + $0x208] sm:$0xff]  }
  0xe6   : > { %4530 = vmatpush3.bf16.msra.mxu0 %v4863_v8  ;;  %v4924_v8 = vld [vmem:[%s5839_s23 + $0x240] sm:$0xff]  }
  0xe7   : > { %4552 = vmatpush3.bf16.msra.mxu1 %v4864_v9  ;;  %4531 = vmatprep.subr.bf16.mxu0 %v4865_v10  ;;  %v4927_v9 = vld [vmem:[%s5767_s14 + $0xc] ss:$40 sps:$4 sm:$0xff]   ;;  %v4925_v10 = vld [vmem:[%s5767_s14 + $0x8] ss:$40 sps:$4 sm:$0xff]  }
  0xe8   : > { %4553 = vmatprep.subr.bf16.mxu1 %v4866_v11  ;;  %v4928_v11 = vld [vmem:[%s5839_s23 + $0x200] sm:$0xff]   ;;  %s5448_s23 = smov (!%p4402_p10), 8  }
  0xea   : > { %4532 = vmatpush3.bf16.msra.mxu0 %v4867_v13  ;;  %v4931_v13 = vld [vmem:[%s5765_s2 + $0x24] ss:$40 sps:$4 sm:$0xff]  }
  0xeb   : > { %4554 = vmatpush3.bf16.msra.mxu1 %v4868_v14  ;;  %4533 = vmatprep.subr.bf16.mxu0 %v4869_v15  ;;  %v4929_v14 = vld [vmem:[%s5765_s2 + $0x20] ss:$40 sps:$4 sm:$0xff]   ;;  %v4934_v15 = vld [vmem:[%s5767_s14 + $0x104] ss:$40 sps:$4 sm:$0xff]  }
  0xec   : > { %4555 = vmatprep.subr.bf16.mxu1 %v4870_v16  ;;  %v4932_v16 = vld [vmem:[%s5767_s14 + $0x100] ss:$40 sps:$4 sm:$0xff]  }
  0xee   : > { %4534 = vmatpush3.bf16.msra.mxu0 %v4871_v17  ;;  %v4937_v17 = vld [vmem:[%s5767_s14 + $0x10c] ss:$40 sps:$4 sm:$0xff]  }
  0xef   : > { %4556 = vmatpush3.bf16.msra.mxu1 %v4872_v18  ;;  %4535 = vmatprep.subr.bf16.mxu0 %v4873_v19  ;;  %v4935_v18 = vld [vmem:[%s5767_s14 + $0x108] ss:$40 sps:$4 sm:$0xff]   ;;  %v4940_v19 = vld [vmem:[%s5767_s14 + $0xb4] ss:$40 sps:$4 sm:$0xff]  }
  0xf0   : > { %4557 = vmatprep.subr.bf16.mxu1 %v4874_v20  ;;  %v4943_v20 = vld [vmem:[%s5767_s14 + $0xbc] ss:$40 sps:$4 sm:$0xff]  }
  0xf2   : > { %4536 = vmatpush3.bf16.msra.mxu0 %v4875_v21  ;;  %v4938_v21 = vld [vmem:[%s5767_s14 + $0xb0] ss:$40 sps:$4 sm:$0xff]  }
  0xf3   : > { %4558 = vmatpush3.bf16.msra.mxu1 %v4876_v22  ;;  %4537 = vmatprep.subr.bf16.mxu0 %v4877_v23  ;;  %v4941_v22 = vld [vmem:[%s5767_s14 + $0xb8] ss:$40 sps:$4 sm:$0xff]   ;;  %v4946_v23 = vld [vmem:[%s5767_s14 + $0x64] ss:$40 sps:$4 sm:$0xff]  }
  0xf4   : > { %4559 = vmatprep.subr.bf16.mxu1 %v4878_v24  ;;  %v4949_v24 = vld [vmem:[%s5767_s14 + $0x6c] ss:$40 sps:$4 sm:$0xff]  }
  0xf6   : > { %4538 = vmatpush3.bf16.msra.mxu0 %v4879_v25  ;;  %v4944_v25 = vld [vmem:[%s5767_s14 + $0x60] ss:$40 sps:$4 sm:$0xff]  }
  0xf7   : > { %4560 = vmatpush3.bf16.msra.mxu1 %v4880_v26  ;;  %4567 = vmatprep.subr.bf16.mxu0 %v4887_v31  ;;  %v4947_v26 = vld [vmem:[%s5767_s14 + $0x68] ss:$40 sps:$4 sm:$0xff]   ;;  %v4958_v31 = vld [vmem:[%s5767_s14 + $0x114] ss:$40 sps:$4 sm:$0xff]  }
  0xf8   : > { %1965 = vmatprep.subr.bf16.mxu1 %v4890_v33  ;;  %v4961_v33 = vld [vmem:[%s5767_s14 + $0xc4] ss:$40 sps:$4 sm:$0xff]  }
  0xf9   : > { %1602 = vmatmul.mubr.bf16.vlgmr.msra.gmra.mxu0 %v4881_v27  ;;  %v4952_v27 = vld [vmem:[%s5767_s14 + $0x14] ss:$40 sps:$4 sm:$0xff]  }
  0xfa   : > { %1643 = vmatmul.mubr.bf16.vlgmr.msra.gmra.mxu1 %v4884_v29  ;;  %4568 = vmatpush3.bf16.msra.mxu0 %v4891_v34  ;;  %v4950_v29 = vld [vmem:[%s5767_s14 + $0x10] ss:$40 sps:$4 sm:$0xff]   ;;  %v4959_v34 = vld [vmem:[%s5767_s14 + $0xc0] ss:$40 sps:$4 sm:$0xff]  }
  0xfb   : > { %1989 = vmatprep.mubr.bf16.mxu1 %v5446_v12  ;;  %1966 = vmatpush1.bf16.msra.mxu1 %v4888_v32  ;;  %v4956_v32 = vld [vmem:[%s5767_s14 + $0x110] ss:$40 sps:$4 sm:$0xff]  }
  0xfc   : > { %4569 = vmatprep.subr.bf16.mxu0 %v4892_v35  ;;  %1967 = vmatprep.subr.bf16.mxu1 %v4895_v37  ;;  %v4964_v35 = vld [vmem:[%s5767_s14 + $0x74] ss:$40 sps:$4 sm:$0xff]   ;;  %v4967_v37 = vld [vmem:[%s5767_s14 + $0x24] ss:$40 sps:$4 sm:$0xff]  }
  0xfd   : > { %1683 = vmatprep.mubr.bf16.mxu0 %v4931_v13 }
  0xfe   : > { %4570 = vmatpush3.bf16.msra.mxu0 %v4896_v38  ;;  %v4965_v38 = vld [vmem:[%s5767_s14 + $0x20] ss:$40 sps:$4 sm:$0xff]  }
  0xff   : > { %1968 = vmatpush1.bf16.msra.mxu1 %v4893_v36  ;;  %4571 = vmatprep.subr.bf16.mxu0 %v4897_v39  ;;  %v4962_v36 = vld [vmem:[%s5767_s14 + $0x70] ss:$40 sps:$4 sm:$0xff]  }
 0x100   : > { %1969 = vmatprep.subr.bf16.mxu1 %v4900_v41 }
 0x102   : > { %4572 = vmatpush3.bf16.msra.mxu0 %v4901_v42 }
 0x103   : > { %1970 = vmatpush1.bf16.msra.mxu1 %v4898_v40  ;;  %4573 = vmatprep.subr.bf16.mxu0 %v4902_v43 }
 0x104   : > { %1971 = vmatprep.subr.bf16.mxu1 %v4905_v45 }
 0x106   : > { %4574 = vmatpush3.bf16.msra.mxu0 %v4906_v46 }
 0x107   : > { %1972 = vmatpush1.bf16.msra.mxu1 %v4903_v44  ;;  %4575 = vmatprep.subr.bf16.mxu0 %v4907_v47 }
 0x108   : > { %2018 = vmatprep.subr.bf16.mxu1 %v4911_v50 }
 0x10a   : > { %4392 = vmatmul.mubr.msk.bf16.vlgmr.msra.gmra.mxu1 %vm1694_vm12, %v5950_v48  ;;  %4576 = vmatpush3.bf16.msra.mxu0 %v4912_v52 }
 0x10b   : > { %2019 = vmatpush1.bf16.msra.mxu1 %v4909_v49  ;;  %4577 = vmatprep.subr.bf16.mxu0 %v4913_v53 }
 0x10c   : > { %2020 = vmatprep.subr.bf16.mxu1 %v4916_v55  ;;  %1999 = vmatprep.mubr.bf16.mxu1 %v5446_v12 }
 0x10e   : > { %4578 = vmatpush3.bf16.msra.mxu0 %v4917_v56 }
 0x10f   : > { %2021 = vmatpush1.bf16.msra.mxu1 %v4914_v54  ;;  %4579 = vmatprep.subr.bf16.mxu0 %v4918_v57 }
 0x110   : > { %2022 = vmatprep.subr.bf16.mxu1 %v4922_v60 }
 0x112   : > { %4393 = vmatmul.mubr.msk.bf16.gmra.mxu1 %vm1694_vm12, %v5963_v58  ;;  %4580 = vmatpush3.bf16.msra.mxu0 %v4923_v61 }
 0x113   : > { %2023 = vmatpush1.bf16.msra.mxu1 %v4920_v59  ;;  %4581 = vmatprep.subr.bf16.mxu0 %v4924_v8 }
 0x114   : > { %2024 = vmatprep.subr.bf16.mxu1 %v4927_v9  ;;  %2042 = vmatprep.mubr.bf16.mxu1 %v5446_v12 }
 0x116   : > { %4582 = vmatpush3.bf16.msra.mxu0 %v4928_v11 }
 0x117   : > { %2025 = vmatpush1.bf16.msra.mxu1 %v4925_v10  ;;  %2071 = vmatprep.subr.bf16.mxu0 %v4934_v15 }
 0x118   : > { %2124 = vmatprep.subr.bf16.mxu1 %v4937_v17 }
 0x119   : > { %1684 = vmatmul.mubr.bf16.vlgmr.msra.gmra.mxu0 %v4929_v14 }
 0x11a   : > { %4394 = vmatmul.mubr.msk.bf16.vlgmr.msra.gmra.mxu1 %vm1694_vm12, %v5950_v48  ;;  %2072 = vmatpush1.bf16.msra.mxu0 %v4932_v16 }
 0x11b   : > { %2125 = vmatpush1.bf16.msra.mxu1 %v4935_v18  ;;  %2073 = vmatprep.subr.bf16.mxu0 %v4940_v19 }
 0x11c   : > { %2126 = vmatprep.subr.bf16.mxu1 %v4943_v20  ;;  %2052 = vmatprep.mubr.bf16.mxu1 %v5446_v12 }
 0x11d   : > { %2095 = vmatprep.mubr.bf16.mxu0 %v5446_v12 }
 0x11e   : > { %2074 = vmatpush1.bf16.msra.mxu0 %v4938_v21 }
 0x11f   : > { %2127 = vmatpush1.bf16.msra.mxu1 %v4941_v22  ;;  %2075 = vmatprep.subr.bf16.mxu0 %v4946_v23 }
 0x120   : > { %2128 = vmatprep.subr.bf16.mxu1 %v4949_v24 }
 0x122   : > { %4395 = vmatmul.mubr.msk.bf16.gmra.mxu1 %vm1694_vm12, %v5963_v58  ;;  %2076 = vmatpush1.bf16.msra.mxu0 %v4944_v25 }
 0x123   : > { %2129 = vmatpush1.bf16.msra.mxu1 %v4947_v26  ;;  %2077 = vmatprep.subr.bf16.mxu0 %v4952_v27  ;;  %v785_v27 = vld [vmem:[#allocation2] sm:$0xff] }
 0x124   : > { %2130 = vmatprep.subr.bf16.mxu1 %v4955_v28  ;;  %2148 = vmatprep.mubr.bf16.mxu1 %v5446_v12 }
 0x126   : > { %2078 = vmatpush1.bf16.msra.mxu0 %v4950_v29 }
 0x127   : > { %2131 = vmatpush1.bf16.msra.mxu1 %v4953_v30  ;;  %2177 = vmatprep.subr.bf16.mxu0 %v4958_v31 }
 0x128   : > { %4655 = vmatprep.subr.bf16.mxu1 %v4958_v31 }
 0x129   : > { %4396 = vmatmul.mubr.msk.bf16.vlgmr.msra.gmra.mxu0 %vm1694_vm12, %v5950_v48 }
 0x12a   : > { %4398 = vmatmul.mubr.msk.bf16.vlgmr.msra.gmra.mxu1 %vm1694_vm12, %v5950_v48  ;;  %2178 = vmatpush1.bf16.msra.mxu0 %v4956_v32 }
 0x12b   : > { %4659 = vmatpush1.bf16.msra.mxu1 %v4956_v32  ;;  %2179 = vmatprep.subr.bf16.mxu0 %v4961_v33 }
 0x12c   : > { %4656 = vmatprep.subr.bf16.mxu1 %v4961_v33  ;;  %2105 = vmatprep.mubr.bf16.mxu0 %v5446_v12 }
 0x12d   : > { %2158 = vmatprep.mubr.bf16.mxu1 %v5446_v12 }
 0x12e   : > { %2180 = vmatpush1.bf16.msra.mxu0 %v4959_v34 }
 0x12f   : > { %4660 = vmatpush1.bf16.msra.mxu1 %v4959_v34  ;;  %2181 = vmatprep.subr.bf16.mxu0 %v4964_v35 }
 0x130   : > { %4657 = vmatprep.subr.bf16.mxu1 %v4964_v35 }
 0x131   : > { %4397 = vmatmul.mubr.msk.bf16.gmra.mxu0 %vm1694_vm12, %v5963_v58 }
 0x132   : > { %4399 = vmatmul.mubr.msk.bf16.gmra.mxu1 %vm1694_vm12, %v5963_v58  ;;  %2182 = vmatpush1.bf16.msra.mxu0 %v4962_v36 }
 0x133   : > { %4661 = vmatpush1.bf16.msra.mxu1 %v4962_v36  ;;  %2183 = vmatprep.subr.bf16.mxu0 %v4967_v37 }
 0x134   : > { %4658 = vmatprep.subr.bf16.mxu1 %v4967_v37  ;;  %2201 = vmatprep.mubr.bf16.mxu0 %v5446_v12  ;;  %v786_v37 = vld [vmem:[#allocation2 + $0x8] sm:$0xff] }
 0x135   : > { %2211 = vmatprep.mubr.bf16.mxu1 %v5446_v12 }
 0x136   : > { %2184 = vmatpush1.bf16.msra.mxu0 %v4965_v38 }
 0x137   : > { %4662 = vmatpush1.bf16.msra.mxu1 %v4965_v38 }
 0x139   : > { %4400 = vmatmul.mubr.msk.bf16.vlgmr.msra.gmra.mxu0 %vm1694_vm12, %v5950_v48 }
 0x13a   : > { %4401 = vmatmul.mubr.msk.bf16.vlgmr.msra.gmra.mxu1 %vm1694_vm12, %v5963_v58 }
 0x199   : > { %v4495_v43 = vpop.f32.mrf.mxu0 }
 0x19a   : > { %v4517_v39 = vpop.f32.mrf.mxu1 }
 0x19b   : > { %v4496_v45 = vpop.f32.mrf.mxu0 }
 0x19c   : > { %v4518_v40 = vpop.f32.mrf.mxu1  ;;  %v4497_v59 = vadd.f32 %v4496_v45, %v4495_v43 }
 0x19d   : > { %v4498_v47 = vpop.f32.mrf.mxu0  ;;  %v4519_v60 = vadd.f32 %v4518_v40, %v4517_v39 }
 0x19e   : > { %v4520_v41 = vpop.f32.mrf.mxu1 }
 0x19f   : > { %v4499_v50 = vpop.f32.mrf.mxu0  ;;  %v1563_v11 = vadd.f32 %v4519_v60, %v4497_v59 }
 0x1a0   : > { %v4521_v42 = vpop.f32.mrf.mxu1  ;;  %v4500_v13 = vadd.f32 %v4499_v50, %v4498_v47 }
 0x1a1   : > { %v4522_v14 = vadd.f32 %v4521_v42, %v4520_v41 }
 0x1a3   : > { %v1566_v20 = vadd.f32 %v4522_v14, %v4500_v13 }
 0x1b9   : > { %v4539_v52 = vpop.f32.mrf.mxu0 }
 0x1ba   : > { %v4561_v44 = vpop.f32.mrf.mxu1 }
 0x1bb   : > { %v4540_v55 = vpop.f32.mrf.mxu0 }
 0x1bc   : > { %v4562_v46 = vpop.f32.mrf.mxu1  ;;  %v4541_v8 = vadd.f32 %v4540_v55, %v4539_v52 }
 0x1bd   : > { %v4542_v57 = vpop.f32.mrf.mxu0  ;;  %v4563_v21 = vadd.f32 %v4562_v46, %v4561_v44 }
 0x1be   : > { %v4564_v49 = vpop.f32.mrf.mxu1  ;;  %v1604_v16 = vadd.f32 %v4541_v8, %v1563_v11 }
 0x1bf   : > { %v4543_v9 = vpop.f32.mrf.mxu0 }
 0x1c0   : > { %v4565_v12 = vpop.f32.mrf.mxu1  ;;  %v4544_v17 = vadd.f32 %v4543_v9, %v4542_v57  ;;  %v1645_v24 = vadd.f32 %v4563_v21, %v1604_v16 }
 0x1c1   : > { %v4566_v30 = vadd.f32 %v4565_v12, %v4564_v49 }
 0x1c2   : > { %v1607_v25 = vadd.f32 %v4544_v17, %v1566_v20 }
 0x1c4   : > { %v1648_v34 = vadd.f32 %v4566_v30, %v1607_v25 }
 0x1ca   : > { %v1991_v53 = vpop.f32.mrf.mxu1 }
 0x1cb   : > { %v6031_v42 = vsel %vm752_vm0, %v1991_v53, -1e+30 }
 0x1cc   : > { %v1993_v54 = vpop.f32.mrf.mxu1 }
 0x1cd   : > { %v6026_v39 = vsel %vm753_vm1, %v1993_v54, -1e+30 }
 0x1ce   : > { %v1995_v48 = vpop.f32.mrf.mxu1  ;;  %v2282_v45 = vmax.f32 %v6031_v42, %v6026_v39 }
 0x1cf   : > { %v6046_v49 = vsel %vm752_vm0, %v1995_v48, -1e+30 }
 0x1d0   : > { %v1997_v56 = vpop.f32.mrf.mxu1 }
 0x1d1   : > { %v6041_v47 = vsel %vm753_vm1, %v1997_v56, -1e+30 }
 0x1d2   : > { %v2001_v58 = vpop.f32.mrf.mxu1  ;;  %v2293_v55 = vmax.f32 %v6046_v49, %v6041_v47 }
 0x1d3   : > { %v6065_v57 = vsel %vm752_vm0, %v2001_v58, -1e+30 }
 0x1d4   : > { %v2003_v61 = vpop.f32.mrf.mxu1 }
 0x1d5   : > { %v6051_v52 = vsel %vm753_vm1, %v2003_v61, -1e+30 }
 0x1d6   : > { %v2005_v10 = vpop.f32.mrf.mxu1  ;;  %v2304_v61 = vmax.f32 %v6065_v57, %v6051_v52 }
 0x1d7   : > { %v6089_v16 = vsel %vm752_vm0, %v2005_v10, -1e+30 }
 0x1d8   : > { %v2007_v15 = vpop.f32.mrf.mxu1 }
 0x1d9   : > { %v4583_v18 = vpop.f32.mrf.mxu0  ;;  %v6081_v58 = vsel %vm753_vm1, %v2007_v15, -1e+30 }
 0x1da   : > { %v2044_v19 = vpop.f32.mrf.mxu1 }
 0x1db   : > { %v4584_v22 = vpop.f32.mrf.mxu0  ;;  %v6035_v43 = vsel %vm754_vm2, %v2044_v19, -1e+30 }
 0x1dc   : > { %v2046_v23 = vpop.f32.mrf.mxu1  ;;  %v4585_v26 = vadd.f32 %v4584_v22, %v4583_v18  ;;  %v2283_v50 = vmax.f32 %v2282_v45, %v6035_v43 }
 0x1dd   : > { %v4586_v28 = vpop.f32.mrf.mxu0  ;;  %v6055_v53 = vsel %vm755_vm3, %v2046_v23, -1e+30  ;;  %v2315_v23 = vmax.f32 %v6089_v16, %v6081_v58 }
 0x1de   : > { %v2048_v29 = vpop.f32.mrf.mxu1  ;;  %v1686_v31 = vadd.f32 %v4585_v26, %v1645_v24  ;;  %v2284_v8 = vmax.f32 %v2283_v50, %v6055_v53 }
 0x1df   : > { %v4587_v32 = vpop.f32.mrf.mxu0  ;;  %v6059_v54 = vsel %vm754_vm2, %v2048_v29, -1e+30 }
 0x1e0   : > { %v2050_v33 = vpop.f32.mrf.mxu1  ;;  %v1692_v35 = vadd.f32 %v1686_v31, %v785_v27  ;;  %v4588_v36 = vadd.f32 %v4587_v32, %v4586_v28  ;;  %v2294_v9 = vmax.f32 %v2293_v55, %v6059_v54 }
 0x1e1   : > { %v6085_v14 = vsel %vm755_vm3, %v2050_v33, -1e+30 }
 0x1e2   : > { %v2054_v38 = vpop.f32.mrf.mxu1  ;;  %1695 = vst.msk [vmem:[#allocation2] sm:$0xff] %vm1694_vm12, %v1692_v35  ;;  %v1689_v40 = vadd.f32 %v4588_v36, %v1648_v34  ;;  %v2295_v24 = vmax.f32 %v2294_v9, %v6085_v14 }
 0x1e3   : > { %v6069_v59 = vsel %vm754_vm2, %v2054_v38, -1e+30 }
 0x1e4   : > { %v2056_v41 = vpop.f32.mrf.mxu1  ;;  %v1693_v44 = vadd.f32 %v1689_v40, %v786_v37  ;;  %v2305_v17 = vmax.f32 %v2304_v61, %v6069_v59 }
 0x1e5   : > { %v6094_v18 = vsel %vm755_vm3, %v2056_v41, -1e+30 }
 0x1e6   : > { %v2058_v46 = vpop.f32.mrf.mxu1  ;;  %1696 = vst.msk [vmem:[#allocation2 + $0x8] sm:$0xff] %vm1694_vm12, %v1693_v44  ;;  %v2306_v27 = vmax.f32 %v2305_v17, %v6094_v18 }
 0x1e7   : > { %v6099_v15 = vsel %vm754_vm2, %v2058_v46, -1e+30 }
 0x1e8   : > { %v2060_v12 = vpop.f32.mrf.mxu1  ;;  %v2316_v28 = vmax.f32 %v2315_v23, %v6099_v15 }
 0x1e9   : > { %v2097_v48 = vpop.f32.mrf.mxu0  ;;  %v6118_v33 = vsel %vm755_vm3, %v2060_v12, -1e+30 }
 0x1ea   : > { %v2150_v56 = vpop.f32.mrf.mxu1  ;;  %v6073_v60 = vsel %vm6742_vm4, %v2097_v48, -1e+30  ;;  %v2317_v44 = vmax.f32 %v2316_v28, %v6118_v33 }
 0x1eb   : > { %v2099_v11 = vpop.f32.mrf.mxu0  ;;  %v2285_v19 = vmax.f32 %v2284_v8, %v6073_v60  ;;  %v6131_v40 = vsel %vm758_vm6, %v2150_v56, -1e+30 }
 0x1ec   : > { %v2152_v13 = vpop.f32.mrf.mxu1  ;;  %v6103_v22 = vsel %vm757_vm5, %v2099_v11, -1e+30 }
 0x1ed   : > { %v2101_v20 = vpop.f32.mrf.mxu0  ;;  %v2286_v29 = vmax.f32 %v2285_v19, %v6103_v22  ;;  %v6151_v61 = vsel %vm6743_vm7, %v2152_v13, -1e+30 }
 0x1ee   : > { %v2154_v21 = vpop.f32.mrf.mxu1  ;;  %v6107_v10 = vsel %vm6742_vm4, %v2101_v20, -1e+30 }
 0x1ef   : > { %v2103_v25 = vpop.f32.mrf.mxu0  ;;  %v2296_v30 = vmax.f32 %v2295_v24, %v6107_v10  ;;  %v2287_v45 = vmax.f32 %v2286_v29, %v6131_v40  ;;  %v6157_v19 = vsel %vm758_vm6, %v2154_v21, -1e+30 }
 0x1f0   : > { %v2156_v26 = vpop.f32.mrf.mxu1  ;;  %v6122_v34 = vsel %vm757_vm5, %v2103_v25, -1e+30 }
 0x1f1   : > { %v2107_v31 = vpop.f32.mrf.mxu0  ;;  %v2297_v46 = vmax.f32 %v2296_v30, %v6122_v34  ;;  %v2288_v13 = vmax.f32 %v2287_v45, %v6151_v61 }
 0x1f2   : > { %v2160_v32 = vpop.f32.mrf.mxu1  ;;  %v6126_v35 = vsel %vm6742_vm4, %v2107_v31, -1e+30 }
 0x1f3   : > { %v2307_v36 = vmax.f32 %v2306_v27, %v6126_v35  ;;  %v2109_v37 = vpop.f32.mrf.mxu0  ;;  %v6143_v48 = vsel %vm758_vm6, %v2160_v32, -1e+30  ;;  %v2298_v24 = vmax.f32 %v2297_v46, %v6157_v19  ;;  %v6185_v32 = vsel %vm6743_vm7, %v2156_v26, -1e+30 }
 0x1f4   : > { %v2162_v38 = vpop.f32.mrf.mxu1  ;;  %v6135_v41 = vsel %vm757_vm5, %v2109_v37, -1e+30 }
 0x1f5   : > { %v2308_v50 = vmax.f32 %v2307_v36, %v6135_v41  ;;  %v2111_v12 = vpop.f32.mrf.mxu0  ;;  %v6161_v20 = vsel %vm6743_vm7, %v2162_v38, -1e+30 }
 0x1f6   : > { %v2164_v55 = vpop.f32.mrf.mxu1  ;;  %v6147_v56 = vsel %vm6742_vm4, %v2111_v12, -1e+30  ;;  %v2299_v12 = vmax.f32 %v2298_v24, %v6185_v32 }
 0x1f7   : > { %v2309_v8 = vmax.f32 %v2308_v50, %v6143_v48  ;;  %v2318_v9 = vmax.f32 %v2317_v44, %v6147_v56  ;;  %v2113_v11 = vpop.f32.mrf.mxu0  ;;  %v6173_v21 = vsel %vm758_vm6, %v2164_v55, -1e+30 }
 0x1f8   : > { %v2166_v17 = vpop.f32.mrf.mxu1  ;;  %v6165_v23 = vsel %vm757_vm5, %v2113_v11, -1e+30 }
 0x1f9   : > { %v2310_v25 = vmax.f32 %v2309_v8, %v6161_v20  ;;  %v2319_v27 = vmax.f32 %v2318_v9, %v6165_v23  ;;  %v2203_v28 = vpop.f32.mrf.mxu0  ;;  %v6192_v46 = vsel %vm6743_vm7, %v2166_v17, -1e+30 }
 0x1fa   : > { %v2213_v29 = vpop.f32.mrf.mxu1  ;;  %v6177_v30 = vsel %vm6740_vm8, %v2203_v28, -1e+30 }
 0x1fb   : > { %v6181_v31 = vsel %vm6740_vm8, %v2213_v29, -1e+30  ;;  %v2320_v36 = vmax.f32 %v2319_v27, %v6173_v21  ;;  %v2289_v37 = vmax.f32 %v2288_v13, %v6177_v30  ;;  %v2205_v44 = vpop.f32.mrf.mxu0 }
 0x1fc   : > { %v2311_v38 = vmax.f32 %v2310_v25, %v6181_v31  ;;  %v2215_v45 = vpop.f32.mrf.mxu1  ;;  %v6196_v50 = vsel %vm6741_vm9, %v2205_v44, -1e+30 }
 0x1fd   : > { %v6200_v26 = vsel %vm6741_vm9, %v2215_v45, -1e+30  ;;  %v2321_v55 = vmax.f32 %v2320_v36, %v6192_v46  ;;  %v2207_v8 = vpop.f32.mrf.mxu0  ;;  %v2290_v13 = vmax.f32 %v2289_v37, %v6196_v50  ;;  %v6226_v45 = vld [vmem:[#allocation4 + $0x10] sm:$0xff] }
 0x1fe   : > { %v2217_v9 = vpop.f32.mrf.mxu1  ;;  %v2312_v11 = vmax.f32 %v2311_v38, %v6200_v26  ;;  %v6208_v17 = vsel %vm6740_vm8, %v2207_v8, -1e+30 }
 0x1ff   : > { %v6212_v25 = vsel %vm6740_vm8, %v2217_v9, -1e+30  ;;  %v2300_v27 = vmax.f32 %v2299_v12, %v6208_v17  ;;  %2291 = vmax.xlane.f32.xlu0 %v2290_v13  ;;  %v2209_v29 = vpop.f32.mrf.mxu0  ;;  %v6228_v12 = vld [vmem:[#allocation4] sm:$0xff]  ;;  %v6236_v13 = vld [vmem:[#allocation4 + $0x18] sm:$0xff] }
 0x200   : > { %v2322_v24 = vmax.f32 %v2321_v55, %v6212_v25  ;;  %v2219_v28 = vpop.f32.mrf.mxu1  ;;  %2313 = vmax.xlane.f32.xlu1 %v2312_v11  ;;  %v6222_v37 = vsel %vm6741_vm9, %v2209_v29, -1e+30 }
 0x201   : > { %v6218_v36 = vsel %vm6741_vm9, %v2219_v28, -1e+30  ;;  %v2301_v44 = vmax.f32 %v2300_v27, %v6222_v37 }
 0x202   : > { %v2323_v38 = vmax.f32 %v2322_v24, %v6218_v36  ;;  %v6238_v24 = vld [vmem:[#allocation4 + $0x8] sm:$0xff] }
 0x203   : > { %2302 = vmax.xlane.f32.xlu0 %v2301_v44 }
 0x204   : > { %2324 = vmax.xlane.f32.xlu1 %v2323_v38 }
 0x288   : > { %v2292_v8 = vpop.xlane.xlu0 %2291 }
 0x289   : > { %v2314_v55 = vpop.xlane.xlu1 %2313  ;;  %v6234_v11 = vmax.f32 %v6228_v12, %v2292_v8 }
 0x28a   : > { %v6231_v9 = vmax.f32 %v6226_v45, %v2314_v55 }
 0x28b   : > { %2547 = vst.msk [vmem:[#allocation4] sm:$0xff] %vm2542_vm13, %v6234_v11  ;;  %2356 = vperm.xlu0 %4809, %v6234_v11  }
 0x28c   : > { %2549 = vst.msk [vmem:[#allocation4 + $0x10] sm:$0xff] %vm2542_vm13, %v6231_v9  ;;  %2366 = vperm.xlu1 %4810, %v6231_v9   ;;  %v2303_v38 = vpop.xlane.xlu0 %2302 }
 0x28d   : > { %v2325_v29 = vpop.xlane.xlu1 %2324  ;;  %v6254_v55 = vmax.f32 %v6238_v24, %v2303_v38 }
 0x28e   : > { %v6251_v44 = vmax.f32 %v6236_v13, %v2325_v29 }
 0x28f   : > { %2548 = vst.msk [vmem:[#allocation4 + $0x8] sm:$0xff] %vm2542_vm13, %v6254_v55 }
 0x290   : > { %2550 = vst.msk [vmem:[#allocation4 + $0x18] sm:$0xff] %vm2542_vm13, %v6251_v44  ;;  %2361 = vperm.xlu1 %4810, %v6254_v55  }
 0x294   : > { %2371 = vperm.xlu1 %4810, %v6251_v44  }
 0x306   : > { %v2357_v38 = vpop.permute.xlu0 %2356 }
 0x307   : > { %v6266_v29 = vpop.permute.xlu1 %2366  ;;  %v2374_v28 = vsub.f32 %v6031_v42, %v2357_v38  ;;  %v2375_v6 = vsub.f32 %v6026_v39, %v2357_v38  ;;  %v2376_v7 = vsub.f32 %v6035_v43, %v2357_v38  ;;  %v2377_v3 = vsub.f32 %v6055_v53, %v2357_v38 }
 0x308   : > { %v2394_v8 = vsub.f32 %v6065_v57, %v6266_v29  ;;  %v2378_v57 = vsub.f32 %v6073_v60, %v2357_v38  ;;  %v2395_v39 = vsub.f32 %v6051_v52, %v6266_v29  ;;  %v2381_v52 = vsub.f32 %v6151_v61, %v2357_v38 }
 0x309   : > { %v2414_v27 = vmul.f32 1.442695, %v2374_v28  ;;  %v2416_v2 = vmul.f32 1.442695, %v2375_v6  ;;  %v2418_v0 = vmul.f32 1.442695, %v2376_v7  ;;  %v2379_v28 = vsub.f32 %v6103_v22, %v2357_v38 }
 0x30a   : > { %v2454_v1 = vmul.f32 1.442695, %v2394_v8  ;;  %v2422_v60 = vmul.f32 1.442695, %v2378_v57  ;;  %v2456_v7 = vmul.f32 1.442695, %v2395_v39 }
 0x30b   : > { %v6273_v5 = vpop.permute.xlu1 %2361  ;;  %4968 = vpow2.f32 %v2414_v27 }
 0x30c   : > { %v2384_v4 = vsub.f32 %v6046_v49, %v6273_v5  ;;  %v2385_v42 = vsub.f32 %v6041_v47, %v6273_v5  ;;  %4970 = vpow2.f32 %v2416_v2  ;;  %v2420_v49 = vmul.f32 1.442695, %v2377_v3 }
 0x30d   : > { %4972 = vpow2.f32 %v2454_v1  ;;  %v2380_v47 = vsub.f32 %v6131_v40, %v2357_v38  ;;  %v2386_v2 = vsub.f32 %v6059_v54, %v6273_v5  ;;  %v2382_v1 = vsub.f32 %v6177_v30, %v2357_v38 }
 0x30e   : > { %v2434_v6 = vmul.f32 1.442695, %v2384_v4  ;;  %v2436_v53 = vmul.f32 1.442695, %v2385_v42  ;;  %4974 = vpow2.f32 %v2418_v0  ;;  %v2424_v4 = vmul.f32 1.442695, %v2379_v28 }
 0x30f   : > { %v6283_v43 = vpop.permute.xlu1 %2371  ;;  %v2426_v22 = vmul.f32 1.442695, %v2380_v47  ;;  %v2383_v0 = vsub.f32 %v6196_v50, %v2357_v38  ;;  %v2428_v40 = vmul.f32 1.442695, %v2381_v52  ;;  %v2388_v61 = vsub.f32 %v6107_v10, %v6273_v5 }
 0x310   : > { %v2404_v8 = vsub.f32 %v6089_v16, %v6283_v43  ;;  %4976 = vpow2.f32 %v2434_v6  ;;  %v2387_v16 = vsub.f32 %v6085_v14, %v6273_v5  ;;  %v2438_v54 = vmul.f32 1.442695, %v2386_v2 }
 0x311   : > { %4978 = vpow2.f32 %v2420_v49  ;;  %v2405_v27 = vsub.f32 %v6081_v58, %v6283_v43  ;;  %v2430_v42 = vmul.f32 1.442695, %v2382_v1  ;;  %v2389_v30 = vsub.f32 %v6122_v34, %v6273_v5 }
 0x312   : > { %4980 = vpow2.f32 %v2436_v53  ;;  %v2474_v3 = vmul.f32 1.442695, %v2404_v8  ;;  %v2440_v57 = vmul.f32 1.442695, %v2387_v16  ;;  %v2432_v39 = vmul.f32 1.442695, %v2383_v0 }
 0x313   : > { %4982 = vpow2.f32 %v2422_v60  ;;  %v2390_v50 = vsub.f32 %v6157_v19, %v6273_v5  ;;  %v2396_v10 = vsub.f32 %v6069_v59, %v6266_v29  ;;  %v2442_v6 = vmul.f32 1.442695, %v2388_v61 }
 0x314   : > { %4984 = vpow2.f32 %v2456_v7  ;;  %v2476_v58 = vmul.f32 1.442695, %v2405_v27  ;;  %v2391_v49 = vsub.f32 %v6185_v32, %v6273_v5  ;;  %v2444_v53 = vmul.f32 1.442695, %v2389_v30 }
 0x315   : > { %4986 = vpow2.f32 %v2424_v4  ;;  %v2397_v8 = vsub.f32 %v6094_v18, %v6266_v29  ;;  %v2392_v59 = vsub.f32 %v6208_v17, %v6273_v5  ;;  %v2446_v47 = vmul.f32 1.442695, %v2390_v50 }
 0x316   : > { %4988 = vpow2.f32 %v2474_v3  ;;  %v2398_v52 = vsub.f32 %v6126_v35, %v6266_v29  ;;  %v2458_v32 = vmul.f32 1.442695, %v2396_v10  ;;  %v2393_v4 = vsub.f32 %v6222_v37, %v6273_v5 }
 0x317   : > { %4990 = vpow2.f32 %v2426_v22  ;;  %v2448_v3 = vmul.f32 1.442695, %v2391_v49  ;;  %v2399_v18 = vsub.f32 %v6135_v41, %v6266_v29  ;;  %v2460_v17 = vmul.f32 1.442695, %v2397_v8 }
 0x318   : > { %v4969_v14 = vpop.eup %4968  ;;  %4992 = vpow2.f32 %v2428_v40  ;;  %v2450_v0 = vmul.f32 1.442695, %v2392_v59  ;;  %v2400_v35 = vsub.f32 %v6143_v48, %v6266_v29  ;;  %v2406_v61 = vsub.f32 %v6099_v15, %v6283_v43 }
 0x319   : > { %v4971_v38 = vpop.eup %4970  ;;  %4994 = vpow2.f32 %v2438_v54  ;;  %v2462_v5 = vmul.f32 1.442695, %v2398_v52  ;;  %v2452_v41 = vmul.f32 1.442695, %v2393_v4  ;;  %v2401_v27 = vsub.f32 %v6161_v20, %v6266_v29 }
 0x31a   : > { %4996 = vpow2.f32 %v2430_v42  ;;  %v2494_v28 = vadd.f32 %v4971_v38, %v4969_v14  ;;  %v6308_v34 = vpop.eup %4972  ;;  %v2464_v42 = vmul.f32 1.442695, %v2399_v18  ;;  %v2407_v48 = vsub.f32 %v6118_v33, %v6283_v43 }
 0x31b   : > { %4998 = vpow2.f32 %v2440_v57  ;;  %v4975_v19 = vpop.eup %4974  ;;  %v2402_v15 = vsub.f32 %v6181_v31, %v6266_v29  ;;  %v2466_v50 = vmul.f32 1.442695, %v2400_v35  ;;  %v2408_v20 = vsub.f32 %v6147_v56, %v6283_v43 }
 0x31c   : > { %5000 = vpow2.f32 %v2432_v39  ;;  %v2495_v7 = vadd.f32 %v4975_v19, %v2494_v28  ;;  %v2403_v28 = vsub.f32 %v6200_v26, %v6266_v29  ;;  %v2468_v49 = vmul.f32 1.442695, %v2401_v27 }
 0x31d   : > { %v4977_v60 = vpop.eup %4976  ;;  %5002 = vpow2.f32 %v2442_v6  ;;  %v2478_v6 = vmul.f32 1.442695, %v2406_v61  ;;  %v2409_v33 = vsub.f32 %v6165_v23, %v6283_v43  ;;  %v2480_v19 = vmul.f32 1.442695, %v2407_v48 }
 0x31e   : > { %v4979_v2 = vpop.eup %4978  ;;  %5004 = vpow2.f32 %v2476_v58  ;;  %v2410_v56 = vsub.f32 %v6173_v21, %v6283_v43  ;;  %v2482_v26 = vmul.f32 1.442695, %v2408_v20 }
 0x31f   : > { %v4981_v1 = vpop.eup %4980  ;;  %v2496_v22 = vadd.f32 %v4979_v2, %v2495_v7  ;;  %5006 = vpow2.f32 %v2444_v53  ;;  %v2411_v2 = vsub.f32 %v6192_v46, %v6283_v43  ;;  %v2413_v46 = vsub.f32 %v6218_v36, %v6283_v43 }
 0x320   : > { %v4983_v16 = vpop.eup %4982  ;;  %5008 = vpow2.f32 %v2446_v47  ;;  %v2505_v14 = vadd.f32 %v4981_v1, %v4977_v60  ;;  %v2470_v47 = vmul.f32 1.442695, %v2402_v15  ;;  %v2484_v1 = vmul.f32 1.442695, %v2409_v33 }
 0x321   : > { %v4985_v40 = vpop.eup %4984  ;;  %v2497_v54 = vadd.f32 %v4983_v16, %v2496_v22  ;;  %5010 = vpow2.f32 %v2458_v32  ;;  %v2472_v32 = vmul.f32 1.442695, %v2403_v28  ;;  %v2412_v16 = vsub.f32 %v6212_v25, %v6283_v43 }
 0x322   : > { %v4987_v37 = vpop.eup %4986  ;;  %5012 = vpow2.f32 %v2448_v3  ;;  %v2516_v23 = vadd.f32 %v4985_v40, %v6308_v34  ;;  %v2492_v25 = vmul.f32 1.442695, %v2413_v46 }
 0x323   : > { %v6326_v30 = vpop.eup %4988  ;;  %v2498_v57 = vadd.f32 %v4987_v37, %v2497_v54  ;;  %5014 = vpow2.f32 %v2460_v17  ;;  %v2488_v54 = vmul.f32 1.442695, %v2411_v2 }
 0x324   : > { %v4991_v39 = vpop.eup %4990  ;;  %5016 = vpow2.f32 %v2450_v0  ;;  %v2486_v0 = vmul.f32 1.442695, %v2410_v56 }
 0x325   : > { %v4993_v38 = vpop.eup %4992  ;;  %v2499_v10 = vadd.f32 %v4991_v39, %v2498_v57  ;;  %5018 = vpow2.f32 %v2462_v5 }
 0x326   : > { %v4995_v58 = vpop.eup %4994  ;;  %5020 = vpow2.f32 %v2452_v41 }
 0x327   : > { %v4997_v53 = vpop.eup %4996  ;;  %v2500_v8 = vadd.f32 %v4993_v38, %v2499_v10  ;;  %v2506_v31 = vadd.f32 %v4995_v58, %v2505_v14  ;;  %5022 = vpow2.f32 %v2464_v42  ;;  %v2490_v42 = vmul.f32 1.442695, %v2412_v16 }
 0x328   : > { %v4999_v59 = vpop.eup %4998  ;;  %5024 = vpow2.f32 %v2466_v50 }
 0x329   : > { %v5001_v60 = vpop.eup %5000  ;;  %v2501_v7 = vadd.f32 %v4997_v53, %v2500_v8  ;;  %v2507_v52 = vadd.f32 %v4999_v59, %v2506_v31  ;;  %5026 = vpow2.f32 %v2478_v6 }
 0x32a   : > { %v5003_v29 = vpop.eup %5002  ;;  %5028 = vpow2.f32 %v2468_v49 }
 0x32b   : > { %v5005_v4 = vpop.eup %5004  ;;  %v2502_v3 = vadd.f32 %v5001_v60, %v2501_v7  ;;  %v2508_v18 = vadd.f32 %v5003_v29, %v2507_v52  ;;  %5030 = vpow2.f32 %v2480_v19 }
 0x32c   : > { %v5007_v22 = vpop.eup %5006  ;;  %5032 = vpow2.f32 %v2470_v47  ;;  %v2527_v15 = vadd.f32 %v5005_v4, %v6326_v30  ;;  %v6778_v4 = vsub.f32 %v6228_v12, %v6234_v11  ;;  %v6781_v12 = vsub.f32 %v6236_v13, %v6251_v44 }
 0x32d   : > { %v5009_v21 = vpop.eup %5008  ;;  %2503 = vadd.xlane.f32.xlu1 %v2502_v3  ;;  %v2509_v17 = vadd.f32 %v5007_v22, %v2508_v18  ;;  %5034 = vpow2.f32 %v2482_v26  ;;  %v6779_v18 = vsub.f32 %v6238_v24, %v6254_v55  ;;  %v2335_v24 = vld [vmem:[#allocation5 + $0x8] sm:$0xff] }
 0x32e   : > { %v5011_v35 = vpop.eup %5010  ;;  %5036 = vpow2.f32 %v2472_v32  ;;  %v2342_v3 = vmul.f32 1.442695, %v6778_v4  ;;  %v2348_v11 = vmul.f32 1.442695, %v6781_v12 }
 0x32f   : > { %v5013_v34 = vpop.eup %5012  ;;  %v2510_v40 = vadd.f32 %v5009_v21, %v2509_v17  ;;  %v2517_v61 = vadd.f32 %v5011_v35, %v2516_v23  ;;  %5038 = vpow2.f32 %v2484_v1  ;;  %v2344_v1 = vmul.f32 1.442695, %v6779_v18  ;;  %v2334_v21 = vld [vmem:[#allocation5] sm:$0xff] }
 0x330   : > { %v5015_v5 = vpop.eup %5014  ;;  %5040 = vpow2.f32 %v2486_v0  ;;  %v6780_v17 = vsub.f32 %v6226_v45, %v6231_v9  ;;  %v2336_v9 = vld [vmem:[#allocation5 + $0x10] sm:$0xff] }
 0x331   : > { %v5017_v37 = vpop.eup %5016  ;;  %v2511_v41 = vadd.f32 %v5013_v34, %v2510_v40  ;;  %v2518_v27 = vadd.f32 %v5015_v5, %v2517_v61  ;;  %5042 = vpow2.f32 %v2488_v54 }
 0x332   : > { %v5019_v57 = vpop.eup %5018  ;;  %5044 = vpow2.f32 %v2490_v42  ;;  %v2346_v16 = vmul.f32 1.442695, %v6780_v17 }
 0x333   : > { %v5021_v14 = vpop.eup %5020  ;;  %v2512_v48 = vadd.f32 %v5017_v37, %v2511_v41  ;;  %v2519_v39 = vadd.f32 %v5019_v57, %v2518_v27  ;;  %5046 = vpow2.f32 %v2492_v25  ;;  %v2337_v27 = vld [vmem:[#allocation5 + $0x18] sm:$0xff] }
 0x334   : > { %v5023_v36 = vpop.eup %5022  ;;  %5048 = vpow2.f32 %v2342_v3 }
 0x335   : > { %v5025_v43 = vpop.eup %5024  ;;  %v2513_v50 = vadd.f32 %v5021_v14, %v2512_v48  ;;  %v2520_v38 = vadd.f32 %v5023_v36, %v2519_v39  ;;  %5050 = vpow2.f32 %v2344_v1 }
 0x336   : > { %v5027_v10 = vpop.eup %5026  ;;  %5052 = vpow2.f32 %v2346_v16 }
 0x337   : > { %v5029_v20 = vpop.eup %5028  ;;  %2514 = vadd.xlane.f32.xlu0 %v2513_v50  ;;  %v2521_v6 = vadd.f32 %v5025_v43, %v2520_v38  ;;  %v2528_v58 = vadd.f32 %v5027_v10, %v2527_v15  ;;  %5054 = vpow2.f32 %v2348_v11 }
 0x338   : > { %v5031_v28 = vpop.eup %5030 }
 0x339   : > { %v5033_v49 = vpop.eup %5032  ;;  %v2522_v33 = vadd.f32 %v5029_v20, %v2521_v6  ;;  %v2529_v53 = vadd.f32 %v5031_v28, %v2528_v58 }
 0x33a   : > { %v5035_v8 = vpop.eup %5034 }
 0x33b   : > { %v5037_v31 = vpop.eup %5036  ;;  %v2523_v19 = vadd.f32 %v5033_v49, %v2522_v33  ;;  %v2530_v59 = vadd.f32 %v5035_v8, %v2529_v53 }
 0x33c   : > { %v5039_v30 = vpop.eup %5038 }
 0x33d   : > { %v2524_v47 = vadd.f32 %v5037_v31, %v2523_v19  ;;  %v2531_v56 = vadd.f32 %v5039_v30, %v2530_v59  ;;  %v5041_v60 = vpop.eup %5040 }
 0x33e   : > { %v5043_v52 = vpop.eup %5042 }
 0x33f   : > { %2525 = vadd.xlane.f32.xlu1 %v2524_v47  ;;  %v2532_v7 = vadd.f32 %v5041_v60, %v2531_v56  ;;  %v5045_v29 = vpop.eup %5044 }
 0x340   : > { %v5047_v23 = vpop.eup %5046 }
 0x341   : > { %v2533_v26 = vadd.f32 %v5043_v52, %v2532_v7  ;;  %v5049_v22 = vpop.eup %5048 }
 0x342   : > { %v2350_v0 = vmul.f32 %v5049_v22, %v2334_v21  ;;  %v5051_v34 = vpop.eup %5050 }
 0x343   : > { %v2534_v32 = vadd.f32 %v5045_v29, %v2533_v26  ;;  %v2351_v55 = vmul.f32 %v5051_v34, %v2335_v24  ;;  %v5053_v45 = vpop.eup %5052 }
 0x344   : > { %v2352_v54 = vmul.f32 %v5053_v45, %v2336_v9  ;;  %v5055_v41 = vpop.eup %5054 }
 0x345   : > { %v2535_v2 = vadd.f32 %v5047_v23, %v2534_v32  ;;  %v2353_v42 = vmul.f32 %v5055_v41, %v2337_v27 }
 0x347   : > { %2536 = vadd.xlane.f32.xlu1 %v2535_v2 }
 0x3b6   : > { %v2504_v35 = vpop.xlane.xlu1 %2503 }
 0x3b7   : > { %v2538_v46 = vadd.f32 %v2504_v35, %v2350_v0 }
 0x3b9   : > { %2543 = vst.msk [vmem:[#allocation5] sm:$0xff] %vm2542_vm13, %v2538_v46 }
 0x3c0   : > { %v2515_v40 = vpop.xlane.xlu0 %2514 }
 0x3c1   : > { %v2539_v61 = vadd.f32 %v2515_v40, %v2351_v55 }
 0x3c3   : > { %2544 = vst.msk [vmem:[#allocation5 + $0x8] sm:$0xff] %vm2542_vm13, %v2539_v61 }
 0x3c8   : > { %v2526_v5 = vpop.xlane.xlu1 %2525 }
 0x3c9   : > { %v2540_v37 = vadd.f32 %v2526_v5, %v2352_v54 }
 0x3cb   : > { %2545 = vst.msk [vmem:[#allocation5 + $0x10] sm:$0xff] %vm2542_vm13, %v2540_v37 }
 0x3cf   : > { %2554 = sbr.rel (%p4402_p10) target bundleno = 2031 (0x7ef), region = 142 }
 0x3d0   : > { %v2537_v13 = vpop.xlane.xlu1 %2536 }
 0x3d1   : > { %v2541_v44 = vadd.f32 %v2537_v13, %v2353_v42 }
 0x3d3   : > { %2546 = vst.msk [vmem:[#allocation5 + $0x18] sm:$0xff] %vm2542_vm13, %v2541_v44 }
 0x3d4   : > { %v2559_v57 = vld [vmem:[#allocation5] sm:$0xff]  ;;  %v2560_v25 = vld [vmem:[#allocation5 + $0x8] sm:$0xff]  ;;  %vm2584_vm14 = vcmask 64512   ;;  %v2561_v14 = vld [vmem:[#allocation5 + $0x10] sm:$0xff]  ;;  %vm2917_vm11 = vcmask 130048   ;;  %vm2920_vm8 = vcmask 195584  }
 0x3d5   : > { %5073 = vlog2.f32 %v2559_v57  ;;  %v2583_v39 = vld [vmem:[#allocation11] sm:$0xff]  ;;  %v2581_v15 = vld [vmem:[%s5811_s18] sm:$0xff]  ;;  %v2582_v36 = vld [vmem:[%s5811_s18 + $0x8] sm:$0xff]  ;;  %vm2957_vm7 = vcmask 257024  }
 0x3d6   : > { %5075 = vlog2.f32 %v2560_v25  ;;  %4612 = vmatprep.subr.mxu0 %v2583_v39  ;;  %v2686_v43 = vld [vmem:[%s6782_s16 + $0x38] sm:$0xff]  ;;  %4614 = vmatprep.mubr.msk.f32.mxu0 %vm2584_vm14, %v2581_v15  ;;  %v2685_v50 = vld [vmem:[%s6782_s16 + $0x30] sm:$0xff]  ;;  %v2684_v38 = vld [vmem:[%s6782_s16 + $0x28] sm:$0xff] }
 0x3d7   : > { %5077 = vlog2.f32 %v2561_v14  ;;  %4613 = vmatpush3.msra.mxu0 %v2583_v39  ;;  %4617 = vmatprep.subr.mxu1 %v2686_v43  ;;  %v2555_v20 = vld [vmem:[#allocation4] sm:$0xff]  ;;  %v2556_v58 = vld [vmem:[#allocation4 + $0x8] sm:$0xff]  ;;  %v2557_v33 = vld [vmem:[#allocation4 + $0x10] sm:$0xff] }
 0x3d8   : > { %4615 = vmatmul.mubr.msk.f32.vlgmr.msra.gmra.mxu0 %vm2584_vm14, %v2582_v36  ;;  %4618 = vmatpush3.msra.mxu1 %v2686_v43  ;;  %v2558_v31 = vld [vmem:[#allocation4 + $0x18] sm:$0xff]  ;;  %v2683_v7 = vld [vmem:[%s6782_s16 + $0x20] sm:$0xff]  ;;  %v2682_v52 = vld [vmem:[%s6782_s16 + $0x18] sm:$0xff] }
 0x3d9   : > { %4619 = vmatprep.subr.mxu1 %v2685_v50  ;;  %v2681_v26 = vld [vmem:[%s6782_s16 + $0x10] sm:$0xff]  ;;  %v2680_v29 = vld [vmem:[%s6782_s16 + $0x8] sm:$0xff]  ;;  %v2679_v32 = vld [vmem:[%s6782_s16] sm:$0xff] }
 0x3da   : > { %v2562_v48 = vld [vmem:[#allocation5 + $0x18] sm:$0xff]  ;;  %4620 = vmatpush3.msra.mxu1 %v2685_v50  ;;  %v2784_v23 = vld [vmem:[%s6783_s10 + $0x38] sm:$0xff]  ;;  %v2782_v4 = vld [vmem:[%s6783_s10 + $0x28] sm:$0xff] }
 0x3db   : > { %5079 = vlog2.f32 %v2562_v48  ;;  %4621 = vmatprep.subr.mxu1 %v2684_v38  ;;  %v2783_v2 = vld [vmem:[%s6783_s10 + $0x30] sm:$0xff]  ;;  %4636 = vmatprep.subr.mxu0 %v2784_v23  ;;  %v2781_v3 = vld [vmem:[%s6783_s10 + $0x20] sm:$0xff]  ;;  %v2580_v18 = vld [vmem:[#allocation2 + $0x8] sm:$0xff]  ;;  %v5447_v48 = vmov 0  }
 0x3dc   : > { %4622 = vmatpush3.msra.mxu1 %v2684_v38  ;;  %4637 = vmatpush3.msra.mxu0 %v2784_v23  ;;  %v2579_v22 = vld [vmem:[#allocation2] sm:$0xff]  ;;  %v2780_v34 = vld [vmem:[%s6783_s10 + $0x18] sm:$0xff]  ;;  %v2779_v24 = vld [vmem:[%s6783_s10 + $0x10] sm:$0xff] }
 0x3dd   : > { %4623 = vmatprep.subr.mxu1 %v2683_v7  ;;  %4638 = vmatprep.subr.mxu0 %v2783_v2  ;;  %v4405_v17 = vld [vmem:[%s6784_s4] ss:$0 sm:$0xff]  ;;  %v2778_v55 = vld [vmem:[%s6783_s10 + $0x8] sm:$0xff]  ;;  %v4409_v42 = vld [vmem:[#allocation14] ss:$0 sm:$0xff] }
 0x3de   : > { %4624 = vmatpush3.msra.mxu1 %v2683_v7  ;;  %4639 = vmatpush3.msra.mxu0 %v2783_v2  ;;  %v2777_v40 = vld [vmem:[%s6783_s10] sm:$0xff] }
 0x3df   : > { %4625 = vmatprep.subr.mxu1 %v2682_v52  ;;  %4640 = vmatprep.subr.mxu0 %v2782_v4  ;;  %v4406_v61 = vld [vmem:[#allocation13] ss:$0 sm:$0xff] }
 0x3e0   : > { %4626 = vmatpush3.msra.mxu1 %v2682_v52  ;;  %4641 = vmatpush3.msra.mxu0 %v2782_v4  ;;  %v2923_v39 = vld [vmem:[%s5816_s17] sm:$0xff] }
 0x3e1   : > { %4627 = vmatprep.subr.mxu1 %v2681_v26  ;;  %4642 = vmatprep.subr.mxu0 %v2781_v3  ;;  %v2925_v15 = vmul.u32 8, %v2923_v39 }
 0x3e2   : > { %v5074_v10 = vpop.eup %5073  ;;  %4628 = vmatpush3.msra.mxu1 %v2681_v26  ;;  %4643 = vmatpush3.msra.mxu0 %v2781_v3 }
 0x3e3   : > { %v5076_v6 = vpop.eup %5075  ;;  %v2564_v28 = vmul.f32 0.6931472, %v5074_v10  ;;  %4629 = vmatprep.subr.mxu1 %v2680_v29  ;;  %4644 = vmatprep.subr.mxu0 %v2780_v34 }
 0x3e4   : > { %v5078_v49 = vpop.eup %5077  ;;  %v2566_v53 = vmul.f32 0.6931472, %v5076_v6  ;;  %4630 = vmatpush3.msra.mxu1 %v2680_v29  ;;  %4645 = vmatpush3.msra.mxu0 %v2780_v34 }
 0x3e5   : > { %v2568_v19 = vmul.f32 0.6931472, %v5078_v49  ;;  %v2571_v59 = vadd.f32 %v2564_v28, %v2555_v20  ;;  %4631 = vmatprep.subr.mxu1 %v2679_v32  ;;  %4646 = vmatprep.subr.mxu0 %v2779_v24 }
 0x3e6   : > { %v2572_v47 = vadd.f32 %v2566_v53, %v2556_v58  ;;  %4632 = vmatpush3.msra.mxu1 %v2679_v32  ;;  %4647 = vmatpush3.msra.mxu0 %v2779_v24 }
 0x3e7   : > { %v2573_v56 = vadd.f32 %v2568_v19, %v2557_v33  ;;  %2575 = vst.msk [vmem:[#allocation4] sm:$0xff] %vm2542_vm13, %v2571_v59  ;;  %4648 = vmatprep.subr.mxu0 %v2778_v55  ;;  %5057 = vset.pattern.permute.xlu1 %v5447_v48  ;;  %v2924_v33 = vld [vmem:[%s5816_s17 + $0x8] sm:$0xff]  ;;  %s5450_s17 = smov 24  }
 0x3e8   : > { %v5080_v8 = vpop.eup %5079  ;;  %2576 = vst.msk [vmem:[#allocation4 + $0x8] sm:$0xff] %vm2542_vm13, %v2572_v47  ;;  %4649 = vmatpush3.msra.mxu0 %v2778_v55  ;;  %5056 = vset.pattern.permute.xlu0 %v5447_v48  ;;  %v2926_v53 = vmul.u32 8, %v2924_v33 }
 0x3e9   : > { %v2570_v30 = vmul.f32 0.6931472, %v5080_v8  ;;  %2577 = vst.msk [vmem:[#allocation4 + $0x10] sm:$0xff] %vm2542_vm13, %v2573_v56  ;;  %4650 = vmatprep.subr.mxu0 %v2777_v40  ;;  %v2935_v8 = vadd.s32 8, %v2925_v15 }
 0x3ea   : > { %4651 = vmatpush3.msra.mxu0 %v2777_v40 }
 0x3eb   : > { %v2574_v60 = vadd.f32 %v2570_v30, %v2558_v31  ;;  %v2936_v31 = vadd.s32 8, %v2926_v53 }
 0x3ed   : > { %2578 = vst.msk [vmem:[#allocation4 + $0x18] sm:$0xff] %vm2542_vm13, %v2574_v60 }
 0x498   : > { %v4616_v1 = vpop.f32.mrf.mxu0 }
 0x499   : > { %v2667_v21 = vadd.f32 %v4616_v1, %v2580_v18 }
 0x49a   : > { %v2657_v16 = vpop.f32.mrf.mxu0 }
 0x49b   : > { %v2666_v0 = vadd.f32 %v2657_v16, %v2579_v22  ;;  %v2676_v35 = vadd.f32 %v4405_v17, %v2667_v21 }
 0x49d   : > { %v2675_v46 = vadd.f32 %v4405_v17, %v2666_v0  ;;  %v2678_v11 = vmax.f32 %v2676_v35, 0.0 }
 0x49f   : > { %v2677_v12 = vmax.f32 %v2675_v46, 0.0 }
 0x4a1   : > { %4633 = vmatprep.mubr.msk.f32.mxu1 %vm1694_vm12, %v2677_v12 }
 0x4a2   : > { %4634 = vmatmul.mubr.msk.f32.vlgmr.msra.gmra.mxu1 %vm1694_vm12, %v2678_v11 }
 0x562   : > { %v4635_v45 = vpop.f32.mrf.mxu1 }
 0x563   : > { %v2772_v9 = vadd.f32 %v4635_v45, %v4406_v61 }
 0x564   : > { %v2766_v54 = vpop.f32.mrf.mxu1 }
 0x565   : > { %v2767_v5 = vadd.f32 %v4406_v61, %v2766_v54  ;;  %v2776_v41 = vmax.f32 %v2772_v9, 0.0 }
 0x567   : > { %v2775_v37 = vmax.f32 %v2767_v5, 0.0 }
 0x569   : > { %4652 = vmatprep.mubr.msk.f32.mxu0 %vm1694_vm12, %v2775_v37 }
 0x56a   : > { %4653 = vmatmul.mubr.msk.f32.vlgmr.msra.gmra.mxu0 %vm1694_vm12, %v2776_v41 }
 0x62a   : > { %v4654_v27 = vpop.f32.mrf.mxu0 }
 0x62b   : > { %v2870_v57 = vadd.f32 %v4654_v27, %v4409_v42 }
 0x62c   : > { %v2864_v13 = vpop.f32.mrf.mxu0 }
 0x62d   : > { %v2865_v44 = vadd.f32 %v4409_v42, %v2864_v13  ;;  %v2876_v14 = vsel %vm2584_vm14, %v2870_v57, -inf }
 0x62f   : > { %v2873_v25 = vsel %vm2584_vm14, %v2865_v44, -inf }
 0x630   : > { %2874 = vmax.xlane.f32.xlu0 %v2873_v25 }
 0x634   : > { %2877 = vmax.xlane.f32.xlu0 %v2876_v14 }
 0x64a   : > { %2928 = vperm.xlu0 %5056, %v2925_v15  }
 0x6b9   : > { %v2875_v36 = vpop.xlane.xlu0 %2874 }
 0x6ba   : > { %v2879_v43 = vsub.f32 %v2865_v44, %v2875_v36 }
 0x6bc   : > { %v2881_v50 = vmul.f32 1.442695, %v2879_v43 }
 0x6bd   : > { %v2878_v38 = vpop.xlane.xlu0 %2877 }
 0x6be   : > { %5081 = vpow2.f32 %v2881_v50  ;;  %v2880_v10 = vsub.f32 %v2870_v57, %v2878_v38 }
 0x6c0   : > { %v2883_v20 = vmul.f32 1.442695, %v2880_v10 }
 0x6c2   : > { %5083 = vpow2.f32 %v2883_v20 }
 0x6c5   : > { %v2929_v23 = vpop.permute.xlu0 %2928 }
 0x6c6   : > { %vm2933_vm10 = vcmp.ge.s32.totalorder %v5785_v51, %v2929_v23 }
 0x6cb   : > { %v5082_v6 = vpop.eup %5081 }
 0x6cc   : > { %v2885_v58 = vsel %vm2584_vm14, %v5082_v6, 0.0 }
 0x6cd   : > { %2886 = vadd.xlane.f32.xlu1 %v2885_v58 }
 0x6cf   : > { %v5084_v28 = vpop.eup %5083 }
 0x6d0   : > { %v2888_v49 = vsel %vm2584_vm14, %v5084_v28, 0.0 }
 0x6d1   : > { %2889 = vadd.xlane.f32.xlu1 %v2888_v49 }
 0x6e2   : > { %2931 = vperm.xlu1 %5057, %v2926_v53  }
 0x6e6   : > { %2938 = vperm.xlu1 %5057, %v2935_v8  }
 0x6ea   : > { %2941 = vperm.xlu1 %5057, %v2936_v31  }
 0x756   : > { %v2887_v19 = vpop.xlane.xlu1 %2886 }
 0x757   : > { %5085 = vrcp.f32 %v2887_v19 }
 0x75a   : > { %v2890_v59 = vpop.xlane.xlu1 %2889 }
 0x75b   : > { %5087 = vrcp.f32 %v2890_v59 }
 0x75e   : > { %v2932_v52 = vpop.permute.xlu1 %2931 }
 0x75f   : > { %vm2934_vm12 = vcmp.ge.s32.totalorder %v5785_v51, %v2932_v52 }
 0x762   : > { %v2939_v26 = vpop.permute.xlu1 %2938 }
 0x763   : > { %vm2943_vm15 = vcmp.lt.s32.totalorder %v5785_v51, %v2939_v26 }
 0x764   : > { %v5086_v30 = vpop.eup %5085  ;;  %vm2945_vm9 = vmand %vm2933_vm10, %vm2943_vm15 }
 0x765   : > { %v2892_v56 = vmul.f32 %v5086_v30, %v5082_v6 }
 0x766   : > { %v2942_v29 = vpop.permute.xlu1 %2941 }
 0x767   : > { %vm2944_vm13 = vcmp.lt.s32.totalorder %v5785_v51, %v2942_v29 }
 0x768   : > { %v5088_v47 = vpop.eup %5087  ;;  %vm2946_vm4 = vmand %vm2934_vm12, %vm2944_vm13 }
 0x769   : > { %v2894_v60 = vmul.f32 %v5088_v47, %v5084_v28 }
 0x76b   : > { %v5058_v7 = vpack.i.bf16 %v2894_v60, %v2892_v56 }
 0x76d   : > { %5059 = vrot.lane.b32.xlu1 %v5058_v7, %s5448_s23 }
 0x771   : > { %5064 = vrot.lane.b32.xlu1 %v5058_v7, %s5449_s5 }
 0x775   : > { %5069 = vrot.lane.b32.xlu1 %v5058_v7, %s5450_s17 }
 0x7df   : > { %v5060_v32 = vpop.permute.xlu1 %5059 }
 0x7e0   : > { %v5062_v4 = vunpack.i.h.bf16 %v5060_v32  ;;  %v5061_v3 = vunpack.i.l.bf16 %v5060_v32 }
 0x7e2   : > { %v2916_v21 = vsel %vm2584_vm14, %v2894_v60, %v5062_v4  ;;  %v2915_v17 = vsel %vm2584_vm14, %v2892_v56, %v5061_v3 }
 0x7e3   : > { %v5065_v2 = vpop.permute.xlu1 %5064 }
 0x7e4   : > { %v5067_v18 = vunpack.i.h.bf16 %v5065_v2  ;;  %v5066_v1 = vunpack.i.l.bf16 %v5065_v2 }
 0x7e6   : > { %v2918_v35 = vsel %vm2917_vm11, %v2915_v17, %v5066_v1  ;;  %v2919_v46 = vsel %vm2917_vm11, %v2916_v21, %v5067_v18 }
 0x7e7   : > { %v5070_v22 = vpop.permute.xlu1 %5069 }
 0x7e8   : > { %v5072_v16 = vunpack.i.h.bf16 %v5070_v22  ;;  %v5071_v0 = vunpack.i.l.bf16 %v5070_v22 }
 0x7ea   : > { %v2921_v12 = vsel %vm2920_vm8, %v2918_v35, %v5071_v0  ;;  %v2922_v11 = vsel %vm2920_vm8, %v2919_v46, %v5072_v16 }
 0x7eb   : > { %v2947_v34 = vsel %vm2945_vm9, %v2921_v12, 0.0  ;;  %v2948_v24 = vsel %vm2946_vm4, %v2922_v11, 0.0 }
 0x7ec   : > { %v4477_v55 = vpack.c.bf16 %v2947_v34, %v2947_v34  ;;  %v4478_v40 = vpack.c.bf16 %v2948_v24, %v2948_v24 }
 0x7ee   : > { %2958 = vst.msk [vmem:[#allocation3] sm:$0xf] %vm2957_vm7, %v4477_v55  ;;  %2959 = vst.msk [vmem:[#allocation3 + $0x4] sm:$0xf] %vm2957_vm7, %v4478_v40 }
 0x7ef PF: > { %p4414_p13 = scmp.ne.s32.totalorder %s5416_s26, 1 }
 0x7f0   : > { %p4473_p0 = scmp.ne.s32.totalorder (!%p4414_p13), %s5412_s25, 1 }
 0x7f1   : > { %2963 = sbr.rel (%p4414_p13) target bundleno = 2902 (0xb56), region = 146 }
 0x7f6   : > { %v5091_v51 = vld [vmem:[%s5767_s14 + $0xf4] ss:$40 sps:$4 sm:$0xff]   ;;  %v5451_v45 = vmov 0   ;;  %v5095_v9 = vld [vmem:[%s5767_s14 + $0xf0] ss:$40 sps:$4 sm:$0xff]   ;;  %v6463_v43 = vld [vmem:[#allocation9] sm:$0xff]  }
 0x7f7   : > { %v5093_v61 = vld [vmem:[%s5767_s14 + $0xfc] ss:$40 sps:$4 sm:$0xff]   ;;  %3257 = vmatprep.mubr.bf16.mxu0 %v5451_v45  ;;  %3310 = vmatprep.mubr.bf16.mxu1 %v5451_v45  ;;  %v5096_v54 = vld [vmem:[%s5767_s14 + $0xf8] ss:$40 sps:$4 sm:$0xff]   ;;  %v5099_v37 = vld [vmem:[%s5767_s14 + $0xac] ss:$40 sps:$4 sm:$0xff]  }
 0x7f8   : > { %3233 = vmatprep.subr.bf16.mxu0 %v5091_v51  ;;  %5090 = vset.pattern.permute.xlu1 %v5451_v45  ;;  %v5097_v5 = vld [vmem:[%s5767_s14 + $0xa4] ss:$40 sps:$4 sm:$0xff]   ;;  %v5101_v41 = vld [vmem:[%s5767_s14 + $0xa0] ss:$40 sps:$4 sm:$0xff]   ;;  %v5103_v42 = vld [vmem:[%s5767_s14 + $0x54] ss:$40 sps:$4 sm:$0xff]  }
 0x7f9   : > { %3286 = vmatprep.subr.bf16.mxu1 %v5093_v61  ;;  %5089 = vset.pattern.permute.xlu0 %v5451_v45  ;;  %v5102_v27 = vld [vmem:[%s5767_s14 + $0xa8] ss:$40 sps:$4 sm:$0xff]   ;;  %v5105_v13 = vld [vmem:[%s5767_s14 + $0x5c] ss:$40 sps:$4 sm:$0xff]   ;;  %v5108_v57 = vld [vmem:[%s5767_s14 + $0x58] ss:$40 sps:$4 sm:$0xff]  }
 0x7fa   : > { %3234 = vmatpush1.bf16.msra.mxu0 %v5095_v9  ;;  %3287 = vmatpush1.bf16.msra.mxu1 %v5096_v54  ;;  %v5107_v44 = vld [vmem:[%s5767_s14 + $0x50] ss:$40 sps:$4 sm:$0xff]   ;;  %v5109_v25 = vld [vmem:[%s5767_s14 + $0x4] ss:$40 sps:$4 sm:$0xff]   ;;  %v5113_v48 = vld [vmem:[%s5767_s14] ss:$40 sps:$4 sm:$0xff]  }
 0x7fb   : > { %3235 = vmatprep.subr.bf16.mxu0 %v5097_v5  ;;  %3288 = vmatprep.subr.bf16.mxu1 %v5099_v37  ;;  %v5111_v14 = vld [vmem:[%s5767_s14 + $0xc] ss:$40 sps:$4 sm:$0xff]   ;;  %v5114_v39 = vld [vmem:[%s5767_s14 + $0x8] ss:$40 sps:$4 sm:$0xff]   ;;  %vm3218_vm4 = vcmask 523264   ;;  %v3552_v60 = vld [vmem:[#allocation4 + $0x10] sm:$0xff] }
 0x7fc   : > { %v5118_v15 = vld [vmem:[%s5767_s14 + $0x104] ss:$40 sps:$4 sm:$0xff]   ;;  %v5116_v50 = vld [vmem:[%s5767_s14 + $0x100] ss:$40 sps:$4 sm:$0xff]   ;;  %v5124_v10 = vld [vmem:[%s5767_s14 + $0xb4] ss:$40 sps:$4 sm:$0xff]   ;;  %3566 = vperm.xlu0 %5089, %v3552_v60  }
 0x7fd   : > { %v5121_v36 = vld [vmem:[%s5767_s14 + $0x10c] ss:$40 sps:$4 sm:$0xff]   ;;  %v5119_v38 = vld [vmem:[%s5767_s14 + $0x108] ss:$40 sps:$4 sm:$0xff]   ;;  %v5127_v20 = vld [vmem:[%s5767_s14 + $0xbc] ss:$40 sps:$4 sm:$0xff]  }
 0x7fe   : > { %3236 = vmatpush1.bf16.msra.mxu0 %v5101_v41  ;;  %3289 = vmatpush1.bf16.msra.mxu1 %v5102_v27  ;;  %v5122_v6 = vld [vmem:[%s5767_s14 + $0xb0] ss:$40 sps:$4 sm:$0xff]   ;;  %v5131_v28 = vld [vmem:[%s5767_s14 + $0x64] ss:$40 sps:$4 sm:$0xff]   ;;  %v5129_v53 = vld [vmem:[%s5767_s14 + $0x60] ss:$40 sps:$4 sm:$0xff]  }
 0x7ff   : > { %3237 = vmatprep.subr.bf16.mxu0 %v5103_v42  ;;  %3290 = vmatprep.subr.bf16.mxu1 %v5105_v13  ;;  %v5125_v58 = vld [vmem:[%s5767_s14 + $0xb8] ss:$40 sps:$4 sm:$0xff]   ;;  %v5134_v49 = vld [vmem:[%s5767_s14 + $0x6c] ss:$40 sps:$4 sm:$0xff]   ;;  %v5132_v8 = vld [vmem:[%s5767_s14 + $0x68] ss:$40 sps:$4 sm:$0xff]  }
 0x800   : > { %v5128_v33 = vld [vmem:[#allocation9 + $0x8] sm:$0xff]   ;;  %v5137_v31 = vld [vmem:[%s5767_s14 + $0x14] ss:$40 sps:$4 sm:$0xff]   ;;  %v5135_v59 = vld [vmem:[%s5767_s14 + $0x10] ss:$40 sps:$4 sm:$0xff]  }
 0x801   : > { %v5140_v19 = vld [vmem:[%s5767_s14 + $0x1c] ss:$40 sps:$4 sm:$0xff]   ;;  %v5138_v30 = vld [vmem:[%s5767_s14 + $0x18] ss:$40 sps:$4 sm:$0xff]   ;;  %v3550_v47 = vld [vmem:[#allocation4] sm:$0xff] }
 0x802   : > { %3238 = vmatpush1.bf16.msra.mxu0 %v5107_v44  ;;  %3291 = vmatpush1.bf16.msra.mxu1 %v5108_v57  ;;  %v5143_v56 = vld [vmem:[%s5767_s14 + $0x114] ss:$40 sps:$4 sm:$0xff]   ;;  %v5141_v7 = vld [vmem:[%s5767_s14 + $0x110] ss:$40 sps:$4 sm:$0xff]   ;;  %v5146_v52 = vld [vmem:[%s5767_s14 + $0xc4] ss:$40 sps:$4 sm:$0xff]  }
 0x803   : > { %3239 = vmatprep.subr.bf16.mxu0 %v5109_v25  ;;  %3292 = vmatprep.subr.bf16.mxu1 %v5111_v14  ;;  %v3551_v26 = vld [vmem:[#allocation4 + $0x8] sm:$0xff]  ;;  %v3553_v29 = vld [vmem:[#allocation4 + $0x18] sm:$0xff] }
 0x804   : > { %3556 = vperm.xlu1 %5090, %v3550_v47   ;;  %v5144_v32 = vld [vmem:[%s5767_s14 + $0xc0] ss:$40 sps:$4 sm:$0xff]   ;;  %v5149_v23 = vld [vmem:[%s5767_s14 + $0x74] ss:$40 sps:$4 sm:$0xff]   ;;  %3571 = vperm.xlu0 %5089, %v3553_v29   ;;  %v5147_v2 = vld [vmem:[%s5767_s14 + $0x70] ss:$40 sps:$4 sm:$0xff]  }
 0x805   : > { %v5152_v4 = vld [vmem:[%s5767_s14 + $0x24] ss:$40 sps:$4 sm:$0xff]   ;;  %v5150_v3 = vld [vmem:[%s5767_s14 + $0x20] ss:$40 sps:$4 sm:$0xff]  }
 0x806   : > { %3240 = vmatpush1.bf16.msra.mxu0 %v5113_v48  ;;  %3293 = vmatpush1.bf16.msra.mxu1 %v5114_v39 }
 0x807   : > { %3339 = vmatprep.subr.bf16.mxu0 %v5118_v15  ;;  %3392 = vmatprep.subr.bf16.mxu1 %v5121_v36 }
 0x808   : > { %3561 = vperm.xlu1 %5090, %v3551_v26  }
 0x809   : > { %4457 = vmatmul.mubr.msk.bf16.vlgmr.msra.gmra.mxu0 %vm3218_vm4, %v6463_v43  ;;  %4459 = vmatmul.mubr.msk.bf16.vlgmr.msra.gmra.mxu1 %vm3218_vm4, %v6463_v43 }
 0x80a   : > { %3340 = vmatpush1.bf16.msra.mxu0 %v5116_v50  ;;  %3393 = vmatpush1.bf16.msra.mxu1 %v5119_v38 }
 0x80b   : > { %3341 = vmatprep.subr.bf16.mxu0 %v5124_v10  ;;  %3394 = vmatprep.subr.bf16.mxu1 %v5127_v20 }
 0x80c   : > { %3267 = vmatprep.mubr.bf16.mxu0 %v5451_v45  ;;  %3320 = vmatprep.mubr.bf16.mxu1 %v5451_v45 }
 0x80e   : > { %3342 = vmatpush1.bf16.msra.mxu0 %v5122_v6  ;;  %3395 = vmatpush1.bf16.msra.mxu1 %v5125_v58 }
 0x80f   : > { %3343 = vmatprep.subr.bf16.mxu0 %v5131_v28  ;;  %3396 = vmatprep.subr.bf16.mxu1 %v5134_v49 }
 0x811   : > { %4458 = vmatmul.mubr.msk.bf16.gmra.mxu0 %vm3218_vm4, %v5128_v33  ;;  %4460 = vmatmul.mubr.msk.bf16.gmra.mxu1 %vm3218_vm4, %v5128_v33 }
 0x812   : > { %3344 = vmatpush1.bf16.msra.mxu0 %v5129_v53  ;;  %3397 = vmatpush1.bf16.msra.mxu1 %v5132_v8 }
 0x813   : > { %3345 = vmatprep.subr.bf16.mxu0 %v5137_v31  ;;  %3398 = vmatprep.subr.bf16.mxu1 %v5140_v19 }
 0x814   : > { %3363 = vmatprep.mubr.bf16.mxu0 %v5451_v45  ;;  %3416 = vmatprep.mubr.bf16.mxu1 %v5451_v45 }
 0x816   : > { %3346 = vmatpush1.bf16.msra.mxu0 %v5135_v59  ;;  %3399 = vmatpush1.bf16.msra.mxu1 %v5138_v30 }
 0x817   : > { %3445 = vmatprep.subr.bf16.mxu0 %v5143_v56 }
 0x819   : > { %4461 = vmatmul.mubr.msk.bf16.vlgmr.msra.gmra.mxu0 %vm3218_vm4, %v6463_v43  ;;  %4463 = vmatmul.mubr.msk.bf16.vlgmr.msra.gmra.mxu1 %vm3218_vm4, %v6463_v43 }
 0x81a   : > { %3446 = vmatpush1.bf16.msra.mxu0 %v5141_v7  ;;  %3373 = vmatprep.mubr.bf16.mxu0 %v5451_v45 }
 0x81b   : > { %3447 = vmatprep.subr.bf16.mxu0 %v5146_v52  ;;  %3426 = vmatprep.mubr.bf16.mxu1 %v5451_v45 }
 0x81e   : > { %3448 = vmatpush1.bf16.msra.mxu0 %v5144_v32 }
 0x81f   : > { %3449 = vmatprep.subr.bf16.mxu0 %v5149_v23 }
 0x821   : > { %4462 = vmatmul.mubr.msk.bf16.gmra.mxu0 %vm3218_vm4, %v5128_v33  ;;  %4464 = vmatmul.mubr.msk.bf16.gmra.mxu1 %vm3218_vm4, %v5128_v33 }
 0x822   : > { %3450 = vmatpush1.bf16.msra.mxu0 %v5147_v2  ;;  %3469 = vmatprep.mubr.bf16.mxu0 %v5451_v45 }
 0x823   : > { %3451 = vmatprep.subr.bf16.mxu0 %v5152_v4  ;;  %3739 = vmatprep.mubr.bf16.mxu1 %v5451_v45 }
 0x826   : > { %3452 = vmatpush1.bf16.msra.mxu0 %v5150_v3 }
 0x829   : > { %4465 = vmatmul.mubr.msk.bf16.vlgmr.msra.gmra.mxu0 %vm3218_vm4, %v6463_v43 }
 0x82a   : > { %3479 = vmatprep.mubr.bf16.mxu0 %v5451_v45 }
 0x831   : > { %4466 = vmatmul.mubr.msk.bf16.gmra.mxu0 %vm3218_vm4, %v5128_v33 }
 0x832   : > { %3825 = vmatprep.mubr.bf16.mxu0 %v5451_v45 }
 0x877   : > { %v6520_v11 = vpop.permute.xlu0 %3566 }
 0x87f   : > { %v6512_v18 = vpop.permute.xlu1 %3556  ;;  %v6543_v43 = vpop.permute.xlu0 %3571 }
 0x883   : > { %v6514_v16 = vpop.permute.xlu1 %3561 }
 0x8c9   : > { %v3259_v1 = vpop.f32.mrf.mxu0  ;;  %v3312_v22 = vpop.f32.mrf.mxu1 }
 0x8ca   : > { %v3510_v46 = vsel %vm752_vm0, %v3259_v1, -1e+30  ;;  %v3512_v61 = vsel %vm754_vm2, %v3312_v22, -1e+30 }
 0x8cb   : > { %v3261_v21 = vpop.f32.mrf.mxu0  ;;  %v3314_v17 = vpop.f32.mrf.mxu1  ;;  %v3574_v9 = vsub.f32 %v3510_v46, %v6512_v18  ;;  %v3576_v48 = vsub.f32 %v3512_v61, %v6512_v18 }
 0x8cc   : > { %v3511_v54 = vsel %vm753_vm1, %v3261_v21, -1e+30  ;;  %v3513_v27 = vsel %vm755_vm3, %v3314_v17, -1e+30 }
 0x8cd   : > { %v3263_v0 = vpop.f32.mrf.mxu0  ;;  %v3316_v35 = vpop.f32.mrf.mxu1  ;;  %v3575_v39 = vsub.f32 %v3511_v54, %v6512_v18  ;;  %v3577_v50 = vsub.f32 %v3513_v27, %v6512_v18 }
 0x8ce   : > { %v3520_v12 = vsel %vm752_vm0, %v3263_v0, -1e+30  ;;  %v3522_v42 = vsel %vm754_vm2, %v3316_v35, -1e+30 }
 0x8cf   : > { %v3584_v34 = vsub.f32 %v3520_v12, %v6514_v16  ;;  %v3265_v24 = vpop.f32.mrf.mxu0  ;;  %v3318_v55 = vpop.f32.mrf.mxu1  ;;  %v3586_v38 = vsub.f32 %v3522_v42, %v6514_v16 }
 0x8d0   : > { %v3521_v40 = vsel %vm753_vm1, %v3265_v24, -1e+30  ;;  %v3523_v44 = vsel %vm755_vm3, %v3318_v55, -1e+30 }
 0x8d1   : > { %v3269_v5 = vpop.f32.mrf.mxu0  ;;  %v3322_v37 = vpop.f32.mrf.mxu1  ;;  %v3585_v13 = vsub.f32 %v3521_v40, %v6514_v16  ;;  %v3614_v57 = vpack.c.bf16 %v3584_v34, %v3574_v9  ;;  %v3587_v10 = vsub.f32 %v3523_v44, %v6514_v16  ;;  %v6568_v63 = vpack.c.bf16 %v3586_v38, %v3576_v48  ;;  %v6791_v48 = vld [vmem:[#allocation27_spill] sm:$0xff] }
 0x8d2   : > { %v3530_v15 = vsel %vm752_vm0, %v3269_v5, -1e+30  ;;  %v3532_v20 = vsel %vm754_vm2, %v3322_v37, -1e+30 }
 0x8d3   : > { %v3271_v25 = vpop.f32.mrf.mxu0  ;;  %v3324_v14 = vpop.f32.mrf.mxu1  ;;  %v3615_v28 = vpack.c.bf16 %v3585_v13, %v3575_v39  ;;  %v3635_v8 = vmul.bf16 1069105081, %v3614_v57  ;;  %v3594_v31 = vsub.f32 %v3530_v15, %v6520_v11  ;;  %v3596_v56 = vsub.f32 %v3532_v20, %v6520_v11  ;;  %v6789_v13 = vld [vmem:[#allocation30_spill] sm:$0xff] }
 0x8d4   : > { %v3533_v36 = vsel %vm755_vm3, %v3324_v14, -1e+30  ;;  %v3531_v49 = vsel %vm753_vm1, %v3271_v25, -1e+30  ;;  %v3617_v3 = vpack.c.bf16 %v3587_v10, %v3577_v50  ;;  %v3641_v54 = vmul.bf16 1069105081, %v6568_v63 }
 0x8d5   : > { %v3273_v6 = vpop.f32.mrf.mxu0  ;;  %v3326_v58 = vpop.f32.mrf.mxu1  ;;  %v3597_v19 = vsub.f32 %v3533_v36, %v6520_v11  ;;  %v3595_v52 = vsub.f32 %v3531_v49, %v6520_v11  ;;  %v3638_v4 = vmul.bf16 1069105081, %v3615_v28  ;;  %5154 = vpow.bf16 %v3635_v8 }
 0x8d6   : > { %v3540_v33 = vsel %vm752_vm0, %v3273_v6, -1e+30  ;;  %v3542_v53 = vsel %vm754_vm2, %v3326_v58, -1e+30  ;;  %v3644_v24 = vmul.bf16 1069105081, %v3617_v3 }
 0x8d7   : > { %v3604_v59 = vsub.f32 %v3540_v33, %v6543_v43  ;;  %v3275_v30 = vpop.f32.mrf.mxu0  ;;  %v3328_v47 = vpop.f32.mrf.mxu1  ;;  %v3606_v60 = vsub.f32 %v3542_v53, %v6543_v43  ;;  %5156 = vpow.bf16 %v3638_v4  ;;  %vm6790_vm0 = vcmp.lt.s32.totalorder %v6789_v13, 2500 }
 0x8d8   : > { %v3541_v62 = vsel %vm753_vm1, %v3275_v30, -1e+30  ;;  %v3543_v7 = vsel %vm755_vm3, %v3328_v47, -1e+30  ;;  %vm6792_vm1 = vcmp.lt.s32.totalorder %v6791_v48, 2500  ;;  %vm6794_vm3 = vmmov %vm6790_vm0 }
 0x8d9   : > { %v3624_v26 = vpack.c.bf16 %v3604_v59, %v3594_v31  ;;  %v3605_v29 = vsub.f32 %v3541_v62, %v6543_v43  ;;  %v3607_v32 = vsub.f32 %v3543_v7, %v6543_v43  ;;  %v3365_v23 = vpop.f32.mrf.mxu0  ;;  %v3418_v2 = vpop.f32.mrf.mxu1  ;;  %v3626_v0 = vpack.c.bf16 %v3606_v60, %v3596_v56  ;;  %vm6793_vm2 = vmmov %vm6792_vm1 }
 0x8da   : > { %v3516_v27 = vsel %vm758_vm6, %v3418_v2, -1e+30  ;;  %v3514_v39 = vsel %vm6792_vm1, %v3365_v23, -1e+30  ;;  %vm6795_vm7 = vmmov %vm6792_vm1 }
 0x8db   : > { %v3625_v1 = vpack.c.bf16 %v3605_v29, %v3595_v52  ;;  %v3627_v22 = vpack.c.bf16 %v3607_v32, %v3597_v19  ;;  %v3367_v21 = vpop.f32.mrf.mxu0  ;;  %v3420_v17 = vpop.f32.mrf.mxu1  ;;  %v3665_v35 = vmul.bf16 1069105081, %v3624_v26  ;;  %v3671_v5 = vmul.bf16 1069105081, %v3626_v0  ;;  %vm6796_vm8 = vmmov %vm6790_vm0 }
 0x8dc   : > { %v3515_v40 = vsel %vm757_vm5, %v3367_v21, -1e+30  ;;  %v3517_v44 = vsel %vm6790_vm0, %v3420_v17, -1e+30  ;;  %v3580_v58 = vsub.f32 %v3516_v27, %v6512_v18  ;;  %vm6797_vm9 = vmmov %vm6792_vm1  ;;  %v3578_v0 = vsub.f32 %v3514_v39, %v6512_v18 }
 0x8dd   : > { %v3668_v46 = vmul.bf16 1069105081, %v3625_v1  ;;  %v3369_v12 = vpop.f32.mrf.mxu0  ;;  %v3422_v34 = vpop.f32.mrf.mxu1  ;;  %v3674_v51 = vmul.bf16 1069105081, %v3627_v22  ;;  %v3579_v42 = vsub.f32 %v3515_v40, %v6512_v18  ;;  %v3581_v28 = vsub.f32 %v3517_v44, %v6512_v18  ;;  %vm6798_vm14 = vmmov %vm6790_vm0 }
 0x8de   : > { %v3524_v15 = vsel %vm6793_vm2, %v3369_v12, -1e+30  ;;  %v3526_v36 = vsel %vm758_vm6, %v3422_v34, -1e+30  ;;  %vm4038_vm1 = vcmask 7168  }
 0x8df   : > { %5158 = vpow.bf16 %v3668_v46  ;;  %v3371_v61 = vpop.f32.mrf.mxu0  ;;  %v3424_v9 = vpop.f32.mrf.mxu1  ;;  %v3588_v33 = vsub.f32 %v3524_v15, %v6514_v16  ;;  %v3590_v53 = vsub.f32 %v3526_v36, %v6514_v16  ;;  %v6799_v15 = vld [vmem:[#allocation32_spill] sm:$0xff] }
 0x8e0   : > { %5160 = vpow.bf16 %v3665_v35  ;;  %v3525_v37 = vsel %vm757_vm5, %v3371_v61, -1e+30  ;;  %v3527_v38 = vsel %vm6794_vm3, %v3424_v9, -1e+30 }
 0x8e1   : > { %v3589_v57 = vsub.f32 %v3525_v37, %v6514_v16  ;;  %v3375_v25 = vpop.f32.mrf.mxu0  ;;  %v3428_v14 = vpop.f32.mrf.mxu1  ;;  %5162 = vpow.bf16 %v3644_v24  ;;  %v3591_v30 = vsub.f32 %v3527_v38, %v6514_v16  ;;  %v3620_v61 = vpack.c.bf16 %v3590_v53, %v3580_v58 }
 0x8e2   : > { %5164 = vpow.bf16 %v3674_v51  ;;  %v3534_v10 = vsel %vm6795_vm7, %v3375_v25, -1e+30  ;;  %v3536_v49 = vsel %vm758_vm6, %v3428_v14, -1e+30  ;;  %v3618_v51 = vpack.c.bf16 %v3588_v33, %v3578_v0 }
 0x8e3   : > { %v3619_v50 = vpack.c.bf16 %v3589_v57, %v3579_v42  ;;  %v3377_v20 = vpop.f32.mrf.mxu0  ;;  %v3430_v6 = vpop.f32.mrf.mxu1  ;;  %5166 = vpow.bf16 %v3671_v5  ;;  %v3598_v47 = vsub.f32 %v3534_v10, %v6520_v11  ;;  %v3600_v7 = vsub.f32 %v3536_v49, %v6520_v11 }
 0x8e4   : > { %v3535_v8 = vsel %vm757_vm5, %v3377_v20, -1e+30  ;;  %v3537_v31 = vsel %vm6796_vm8, %v3430_v6, -1e+30  ;;  %v3621_v35 = vpack.c.bf16 %v3591_v30, %v3581_v28  ;;  %v5155_v46 = vpop.eup %5154  ;;  %5168 = vpow.bf16 %v3641_v54  ;;  %v6802_v20 = vld [vmem:[#allocation31_spill] sm:$0xff] }
 0x8e5   : > { %v3379_v19 = vpop.f32.mrf.mxu0  ;;  %v3432_v59 = vpop.f32.mrf.mxu1  ;;  %v3650_v62 = vmul.bf16 1069105081, %v3619_v50  ;;  %v3599_v23 = vsub.f32 %v3535_v8, %v6520_v11  ;;  %v3601_v2 = vsub.f32 %v3537_v31, %v6520_v11  ;;  %v3647_v25 = vmul.bf16 1069105081, %v3618_v51  ;;  %v6621_v50 = vld [vmem:[#allocation3] sm:$0xff]  }
 0x8e6   : > { %v3544_v56 = vsel %vm6797_vm9, %v3379_v19, -1e+30  ;;  %v3546_v60 = vsel %vm758_vm6, %v3432_v59, -1e+30  ;;  %v5157_v55 = vpop.eup %5156  ;;  %v3656_v13 = vmul.bf16 1069105081, %v3621_v35 }
 0x8e7   : > { %v3608_v52 = vsub.f32 %v3544_v56, %v6543_v43  ;;  %v3610_v26 = vsub.f32 %v3546_v60, %v6543_v43  ;;  %v3381_v29 = vpop.f32.mrf.mxu0  ;;  %v3434_v32 = vpop.f32.mrf.mxu1  ;;  %5170 = vpow.bf16 %v3650_v62  ;;  %v3653_v14 = vmul.bf16 1069105081, %v3620_v61 }
 0x8e8   : > { %v3545_v4 = vsel %vm757_vm5, %v3381_v29, -1e+30  ;;  %v3547_v3 = vsel %vm6798_vm14, %v3434_v32, -1e+30  ;;  %vm6800_vm5 = vcmp.lt.s32.totalorder %v6799_v15, 2500  ;;  %vm3703_vm6 = vcmask 261120  }
 0x8e9   : > { %v3628_v1 = vpack.c.bf16 %v3608_v52, %v3598_v47  ;;  %v3630_v22 = vpack.c.bf16 %v3610_v26, %v3600_v7  ;;  %v3609_v21 = vsub.f32 %v3545_v4, %v6543_v43  ;;  %v3611_v17 = vsub.f32 %v3547_v3, %v6543_v43  ;;  %v3471_v63 = vpop.f32.mrf.mxu0  ;;  %vm6801_vm15 = vmmov %vm6800_vm5 }
 0x8ea   : > { %vm6803_vm10 = vcmp.lt.s32.totalorder %v6802_v20, 2500  ;;  %vm6805_vm12 = vmmov %vm6800_vm5 }
 0x8eb   : > { %v3677_v12 = vmul.bf16 1069105081, %v3628_v1  ;;  %v3629_v34 = vpack.c.bf16 %v3609_v21, %v3599_v23  ;;  %v3631_v24 = vpack.c.bf16 %v3611_v17, %v3601_v2  ;;  %v3473_v40 = vpop.f32.mrf.mxu0  ;;  %v3683_v5 = vmul.bf16 1069105081, %v3630_v22  ;;  %vm6804_vm11 = vmmov %vm6803_vm10 }
 0x8ec   : > { %v3519_v10 = vsel %vm6801_vm15, %v3473_v40, -1e+30  ;;  %vm6806_vm13 = vmmov %vm6803_vm10 }
 0x8ed   : > { %v5159_v9 = vpop.eup %5158  ;;  %v3680_v37 = vmul.bf16 1069105081, %v3629_v34  ;;  %v3686_v41 = vmul.bf16 1069105081, %v3631_v24  ;;  %v3475_v27 = vpop.f32.mrf.mxu0  ;;  %5172 = vpow.bf16 %v3677_v12  ;;  %vm6807_vm4 = vmmov %vm6803_vm10  ;;  %v3583_v31 = vsub.f32 %v3519_v10, %v6512_v18 }
 0x8ee   : > { %v5161_v42 = vpop.eup %5160  ;;  %3719 = vmatprep.subr.bf16.mxu1 %v5159_v9  ;;  %v3528_v58 = vsel %vm6804_vm11, %v3475_v27, -1e+30  ;;  %v3518_v8 = vsel %vm6807_vm4, %v3471_v63, -1e+30  ;;  %vm6808_vm0 = vmmov %vm6800_vm5 }
 0x8ef   : > { %5174 = vpow.bf16 %v3680_v37  ;;  %v3477_v44 = vpop.f32.mrf.mxu0  ;;  %3720 = vmatpush1.bf16.msra.mxu1 %v5161_v42  ;;  %v5163_v57 = vpop.eup %5162  ;;  %v3592_v47 = vsub.f32 %v3528_v58, %v6514_v16  ;;  %v3582_v29 = vsub.f32 %v3518_v8, %v6512_v18 }
 0x8f0   : > { %5176 = vpow.bf16 %v3686_v41  ;;  %3721 = vmatprep.subr.bf16.mxu1 %v5157_v55  ;;  %v5165_v54 = vpop.eup %5164  ;;  %v3529_v36 = vsel %vm6800_vm5, %v3477_v44, -1e+30 }
 0x8f1   : > { %5178 = vpow.bf16 %v3683_v5  ;;  %v3481_v48 = vpop.f32.mrf.mxu0  ;;  %v5167_v39 = vpop.eup %5166  ;;  %v3593_v28 = vsub.f32 %v3529_v36, %v6514_v16  ;;  %v3622_v4 = vpack.c.bf16 %v3592_v47, %v3582_v29 }
 0x8f2   : > { %5180 = vpow.bf16 %v3656_v13  ;;  %v3538_v6 = vsel %vm6803_vm10, %v3481_v48, -1e+30  ;;  %v5169_v26 = vpop.eup %5168 }
 0x8f3   : > { %v3483_v38 = vpop.f32.mrf.mxu0  ;;  %3722 = vmatpush1.bf16.msra.mxu1 %v5155_v46  ;;  %5182 = vpow.bf16 %v3647_v25  ;;  %v3602_v19 = vsub.f32 %v3538_v6, %v6520_v11  ;;  %v3623_v60 = vpack.c.bf16 %v3593_v28, %v3583_v31  ;;  %v3659_v18 = vmul.bf16 1069105081, %v3622_v4 }
 0x8f4   : > { %3762 = vmatprep.subr.bf16.mxu1 %v5165_v54  ;;  %5184 = vpow.bf16 %v3653_v14  ;;  %v3539_v33 = vsel %vm6805_vm12, %v3483_v38, -1e+30 }
 0x8f5   : > { %v3485_v49 = vpop.f32.mrf.mxu0  ;;  %v3603_v62 = vsub.f32 %v3539_v33, %v6520_v11  ;;  %v5171_v32 = vpop.eup %5170  ;;  %v3662_v1 = vmul.bf16 1069105081, %v3623_v60  ;;  %v3963_v33 = vld [vmem:[%s5765_s2 + $0x8] sm:$0xff] }
 0x8f6   : > { %v3548_v53 = vsel %vm6806_vm13, %v3485_v49, -1e+30  ;;  %4468 = vmatmul.mubr.msk.bf16.vlgmr.msra.gmra.mxu1 %vm3703_vm6, %v6621_v50  ;;  %v3967_v49 = vld [vmem:[%s5765_s2 + $0x28] sm:$0xff] }
 0x8f7   : > { %v3612_v59 = vsub.f32 %v3548_v53, %v6543_v43  ;;  %v3487_v30 = vpop.f32.mrf.mxu0  ;;  %3763 = vmatpush1.bf16.msra.mxu1 %v5167_v39  ;;  %3782 = vmatprep.mubr.bf16.mxu1 %v5451_v45 }
 0x8f8   : > { %v3549_v56 = vsel %vm6808_vm0, %v3487_v30, -1e+30  ;;  %3764 = vmatprep.subr.bf16.mxu1 %v5163_v57  ;;  %v3962_v57 = vld [vmem:[%s5765_s2] sm:$0xff] }
 0x8f9   : > { %v3632_v7 = vpack.c.bf16 %v3612_v59, %v3602_v19  ;;  %v3613_v52 = vsub.f32 %v3549_v56, %v6543_v43  ;;  %v3973_v38 = vunpack.c.h.bf16 %v3962_v57 }
 0x8fb   : > { %v3633_v23 = vpack.c.bf16 %v3613_v52, %v3603_v62  ;;  %3765 = vmatpush1.bf16.msra.mxu1 %v5169_v26  ;;  %v5173_v2 = vpop.eup %5172  ;;  %v3689_v3 = vmul.bf16 1069105081, %v3632_v7  ;;  %v3982_v62 = vunpack.c.l.bf16 %v3967_v49  ;;  %v3974_v7 = vunpack.c.l.bf16 %v3963_v33 }
 0x8fd   : > { %v5175_v16 = vpop.eup %5174  ;;  %v3692_v22 = vmul.bf16 1069105081, %v3633_v23  ;;  %v3983_v23 = vunpack.c.h.bf16 %v3967_v49 }
 0x8fe   : > { %v5177_v21 = vpop.eup %5176  ;;  %3805 = vmatprep.subr.bf16.mxu0 %v5175_v16  ;;  %4469 = vmatmul.mubr.msk.bf16.vlgmr.msra.gmra.mxu1 %vm3703_vm6, %v6621_v50 }
 0x8ff   : > { %v5179_v11 = vpop.eup %5178  ;;  %5186 = vpow.bf16 %v3692_v22  ;;  %3848 = vmatprep.subr.bf16.mxu1 %v5177_v21  ;;  %3806 = vmatpush1.bf16.msra.mxu0 %v5173_v2  ;;  %v3975_v22 = vunpack.c.h.bf16 %v3963_v33  ;;  %v3968_v21 = vld [vmem:[%s5765_s2 + $0x30] sm:$0xff] }
 0x900   : > { %v5181_v43 = vpop.eup %5180  ;;  %5188 = vpow.bf16 %v3689_v3  ;;  %3849 = vmatpush1.bf16.msra.mxu1 %v5179_v11  ;;  %3807 = vmatprep.subr.bf16.mxu0 %v5171_v32 }
 0x901   : > { %5190 = vpow.bf16 %v3662_v1  ;;  %3850 = vmatprep.subr.bf16.mxu1 %v5181_v43  ;;  %3868 = vmatprep.mubr.bf16.mxu1 %v5451_v45  ;;  %v5183_v17 = vpop.eup %5182 }
 0x902   : > { %v5185_v63 = vpop.eup %5184  ;;  %5192 = vpow.bf16 %v3659_v18 }
 0x903   : > { %3808 = vmatpush1.bf16.msra.mxu0 %v5183_v17 }
 0x904   : > { %3851 = vmatpush1.bf16.msra.mxu1 %v5185_v63 }
 0x906   : > { %4470 = vmatmul.mubr.msk.bf16.vlgmr.msra.gmra.mxu0 %vm3703_vm6, %v6621_v50 }
 0x907   : > { %4471 = vmatmul.mubr.msk.bf16.vlgmr.msra.gmra.mxu1 %vm3703_vm6, %v6621_v50  ;;  %3911 = vmatprep.mubr.bf16.mxu0 %v5451_v45 }
 0x90d   : > { %v5187_v0 = vpop.eup %5186 }
 0x90e   : > { %v5189_v35 = vpop.eup %5188  ;;  %3891 = vmatprep.subr.bf16.mxu0 %v5187_v0 }
 0x90f   : > { %v5191_v46 = vpop.eup %5190  ;;  %3892 = vmatpush1.bf16.msra.mxu0 %v5189_v35  ;;  %v3964_v35 = vld [vmem:[%s5765_s2 + $0x10] sm:$0xff] }
 0x910   : > { %3893 = vmatprep.subr.bf16.mxu0 %v5191_v46  ;;  %v5193_v12 = vpop.eup %5192 }
 0x913   : > { %3894 = vmatpush1.bf16.msra.mxu0 %v5193_v12  ;;  %v3984_v12 = vunpack.c.l.bf16 %v3968_v21 }
 0x916   : > { %4472 = vmatmul.mubr.msk.bf16.vlgmr.msra.gmra.mxu0 %vm3703_vm6, %v6621_v50  ;;  %v3972_v50 = vunpack.c.l.bf16 %v3962_v57 }
 0x9b6   : > { %v3741_v34 = vpop.f32.mrf.mxu1 }
 0x9b7   : > { %v3742_v24 = vadd.f32 1e-06, %v3741_v34 }
 0x9b8   : > { %v3743_v40 = vpop.f32.mrf.mxu1 }
 0x9b9   : > { %5194 = vlog2.f32 %v3742_v24  ;;  %v3744_v55 = vadd.f32 1e-06, %v3743_v40 }
 0x9ba   : > { %v3745_v51 = vpop.f32.mrf.mxu1 }
 0x9bb   : > { %5196 = vlog2.f32 %v3744_v55  ;;  %v3746_v45 = vadd.f32 1e-06, %v3745_v51  ;;  %v3976_v55 = vunpack.c.l.bf16 %v3964_v35 }
 0x9bc   : > { %v3747_v61 = vpop.f32.mrf.mxu1 }
 0x9bd   : > { %v3748_v9 = vadd.f32 1e-06, %v3747_v61  ;;  %5198 = vlog2.f32 %v3746_v45  ;;  %v3985_v61 = vunpack.c.h.bf16 %v3968_v21 }
 0x9be   : > { %v3784_v5 = vpop.f32.mrf.mxu1 }
 0x9bf   : > { %5200 = vlog2.f32 %v3748_v9  ;;  %v3785_v37 = vadd.f32 1e-06, %v3784_v5  ;;  %v3969_v9 = vld [vmem:[%s5765_s2 + $0x38] sm:$0xff] }
 0x9c0   : > { %v3786_v41 = vpop.f32.mrf.mxu1  ;;  %v3965_v5 = vld [vmem:[%s5765_s2 + $0x18] sm:$0xff] }
 0x9c1   : > { %5202 = vlog2.f32 %v3785_v37  ;;  %v3787_v27 = vadd.f32 1e-06, %v3786_v41 }
 0x9c2   : > { %v3788_v42 = vpop.f32.mrf.mxu1 }
 0x9c3   : > { %5204 = vlog2.f32 %v3787_v27  ;;  %v3789_v13 = vadd.f32 1e-06, %v3788_v42 }
 0x9c4   : > { %v3790_v44 = vpop.f32.mrf.mxu1 }
 0x9c5   : > { %5206 = vlog2.f32 %v3789_v13  ;;  %v3791_v25 = vadd.f32 1e-06, %v3790_v44 }
 0x9c6   : > { %v5195_v54 = vpop.eup %5194  ;;  %v3827_v14 = vpop.f32.mrf.mxu0 }
 0x9c7   : > { %v3828_v48 = vadd.f32 1e-06, %v3827_v14  ;;  %5208 = vlog2.f32 %v3791_v25  ;;  %v3870_v39 = vpop.f32.mrf.mxu1  ;;  %v3923_v36 = vmul.f32 0.6931472, %v5195_v54  ;;  %v3977_v25 = vunpack.c.h.bf16 %v3964_v35 }
 0x9c8   : > { %v5197_v15 = vpop.eup %5196  ;;  %v3829_v10 = vpop.f32.mrf.mxu0  ;;  %v3871_v20 = vadd.f32 1e-06, %v3870_v39 }
 0x9c9   : > { %v3925_v6 = vmul.f32 0.6931472, %v5197_v15  ;;  %5210 = vlog2.f32 %v3828_v48  ;;  %v3830_v58 = vadd.f32 1e-06, %v3829_v10  ;;  %v3872_v28 = vpop.f32.mrf.mxu1  ;;  %v3992_v47 = vmul.f32 %v3972_v50, %v3923_v36 }
 0x9ca   : > { %v3831_v53 = vpop.f32.mrf.mxu0  ;;  %v5199_v8 = vpop.eup %5198  ;;  %v3873_v19 = vadd.f32 1e-06, %v3872_v28  ;;  %v3986_v15 = vunpack.c.l.bf16 %v3969_v9  ;;  %v3978_v50 = vunpack.c.l.bf16 %v3965_v5 }
 0x9cb   : > { %5212 = vlog2.f32 %v3830_v58  ;;  %v3832_v31 = vadd.f32 1e-06, %v3831_v53  ;;  %v3874_v59 = vpop.f32.mrf.mxu1  ;;  %v3993_v56 = vmul.f32 %v3973_v38, %v3925_v6  ;;  %v3943_v29 = vmul.f32 0.6931472, %v5199_v8 }
 0x9cc   : > { %v5201_v30 = vpop.eup %5200  ;;  %5214 = vlog2.f32 %v3871_v20  ;;  %v3833_v60 = vpop.f32.mrf.mxu0  ;;  %v3875_v52 = vadd.f32 1e-06, %v3874_v59  ;;  %v3987_v8 = vunpack.c.h.bf16 %v3969_v9 }
 0x9cd   : > { %5216 = vlog2.f32 %v3832_v31  ;;  %v3945_v32 = vmul.f32 0.6931472, %v5201_v30  ;;  %v3834_v2 = vadd.f32 1e-06, %v3833_v60  ;;  %v3876_v4 = vpop.f32.mrf.mxu1  ;;  %v4012_v1 = vadd.f32 %v3993_v56, %v3992_v47  ;;  %v3970_v47 = vld [vmem:[%s5765_s2 + $0x40] sm:$0xff] }
 0x9ce   : > { %v5203_v26 = vpop.eup %5202  ;;  %5218 = vlog2.f32 %v3873_v19  ;;  %v3877_v18 = vadd.f32 1e-06, %v3876_v4  ;;  %v4002_v63 = vmul.f32 %v3982_v62, %v3943_v29  ;;  %v3979_v29 = vunpack.c.h.bf16 %v3965_v5 }
 0x9cf   : > { %v3927_v3 = vmul.f32 0.6931472, %v5203_v26  ;;  %5220 = vlog2.f32 %v3834_v2  ;;  %v4003_v0 = vmul.f32 %v3983_v23, %v3945_v32  ;;  %v3988_v32 = vunpack.c.l.bf16 %v3970_v47 }
 0x9d0   : > { %v5205_v16 = vpop.eup %5204  ;;  %5222 = vlog2.f32 %v3875_v52  ;;  %v3989_v21 = vunpack.c.h.bf16 %v3970_v47 }
 0x9d1   : > { %v3994_v11 = vmul.f32 %v3974_v7, %v3927_v3  ;;  %v3929_v43 = vmul.f32 0.6931472, %v5205_v16  ;;  %5224 = vlog2.f32 %v3877_v18  ;;  %v4023_v45 = vadd.f32 %v4003_v0, %v4002_v63  ;;  %v3966_v16 = vld [vmem:[%s5765_s2 + $0x20] sm:$0xff]  ;;  %v3971_v0 = vld [vmem:[%s5765_s2 + $0x48] sm:$0xff] }
 0x9d2   : > { %v5207_v17 = vpop.eup %5206 }
 0x9d3   : > { %v3947_v46 = vmul.f32 0.6931472, %v5207_v17  ;;  %v4013_v24 = vadd.f32 %v4012_v1, %v3994_v11  ;;  %v3995_v40 = vmul.f32 %v3975_v22, %v3929_v43  ;;  %v3980_v11 = vunpack.c.l.bf16 %v3966_v16 }
 0x9d4   : > { %v5209_v34 = vpop.eup %5208 }
 0x9d5   : > { %v4004_v41 = vmul.f32 %v3984_v12, %v3947_v46  ;;  %v3949_v42 = vmul.f32 0.6931472, %v5209_v34  ;;  %v4014_v57 = vadd.f32 %v4013_v24, %v3995_v40  ;;  %v3981_v12 = vunpack.c.h.bf16 %v3966_v16 }
 0x9d6   : > { %v5211_v51 = vpop.eup %5210  ;;  %v3913_v37 = vpop.f32.mrf.mxu0  ;;  %v3990_v34 = vunpack.c.l.bf16 %v3971_v0 }
 0x9d7   : > { %v3931_v27 = vmul.f32 0.6931472, %v5211_v51  ;;  %v3914_v13 = vadd.f32 1e-06, %v3913_v37  ;;  %v4024_v20 = vadd.f32 %v4023_v45, %v4004_v41  ;;  %v4005_v6 = vmul.f32 %v3985_v61, %v3949_v42 }
 0x9d8   : > { %v5213_v44 = vpop.eup %5212  ;;  %v3915_v54 = vpop.f32.mrf.mxu0  ;;  %v3991_v41 = vunpack.c.h.bf16 %v3971_v0 }
 0x9d9   : > { %v5215_v14 = vpop.eup %5214  ;;  %v3996_v48 = vmul.f32 %v3976_v55, %v3931_v27  ;;  %v3933_v39 = vmul.f32 0.6931472, %v5213_v44  ;;  %5226 = vlog2.f32 %v3914_v13  ;;  %v3916_v38 = vadd.f32 1e-06, %v3915_v54 }
 0x9da   : > { %v5217_v36 = vpop.eup %5216  ;;  %v3917_v10 = vpop.f32.mrf.mxu0  ;;  %v3935_v53 = vmul.f32 0.6931472, %v5215_v14  ;;  %v4025_v7 = vadd.f32 %v4024_v20, %v4005_v6 }
 0x9db   : > { %v3951_v58 = vmul.f32 0.6931472, %v5217_v36  ;;  %v3918_v28 = vadd.f32 1e-06, %v3917_v10  ;;  %v5219_v49 = vpop.eup %5218  ;;  %v4015_v33 = vadd.f32 %v4014_v57, %v3996_v48  ;;  %5228 = vlog2.f32 %v3916_v38  ;;  %v3697_v38 = vld [vmem:[#allocation6 + $0x8] sm:$0xff] }
 0x9dc   : > { %v3919_v31 = vpop.f32.mrf.mxu0  ;;  %v5221_v19 = vpop.eup %5220  ;;  %v3997_v59 = vmul.f32 %v3977_v25, %v3933_v39  ;;  %v3998_v52 = vmul.f32 %v3978_v50, %v3935_v53  ;;  %v3937_v26 = vmul.f32 0.6931472, %v5219_v49  ;;  %v3696_v39 = vld [vmem:[#allocation6] sm:$0xff] }
 0x9dd   : > { %v4006_v30 = vmul.f32 %v3986_v15, %v3951_v58  ;;  %5230 = vlog2.f32 %v3918_v28  ;;  %v3920_v56 = vadd.f32 1e-06, %v3919_v31  ;;  %v5223_v60 = vpop.eup %5222  ;;  %v3953_v62 = vmul.f32 0.6931472, %v5221_v19 }
 0x9de   : > { %v4016_v23 = vadd.f32 %v4015_v33, %v3997_v59  ;;  %v3955_v3 = vmul.f32 0.6931472, %v5223_v60  ;;  %v5225_v1 = vpop.eup %5224  ;;  %v3999_v22 = vmul.f32 %v3979_v29, %v3937_v26 }
 0x9df   : > { %5232 = vlog2.f32 %v3920_v56  ;;  %v4026_v2 = vadd.f32 %v4025_v7, %v4006_v30  ;;  %v4007_v4 = vmul.f32 %v3987_v8, %v3953_v62  ;;  %v3957_v17 = vmul.f32 0.6931472, %v5225_v1 }
 0x9e0   : > { %v4008_v18 = vmul.f32 %v3988_v32, %v3955_v3  ;;  %v4017_v63 = vadd.f32 %v4016_v23, %v3998_v52 }
 0x9e1   : > { %v4027_v43 = vadd.f32 %v4026_v2, %v4007_v4  ;;  %v4009_v40 = vmul.f32 %v3989_v21, %v3957_v17 }
 0x9e2   : > { %v4018_v51 = vadd.f32 %v4017_v63, %v3999_v22 }
 0x9e3   : > { %v4028_v45 = vadd.f32 %v4027_v43, %v4008_v18 }
 0x9e5   : > { %v4029_v57 = vadd.f32 %v4028_v45, %v4009_v40 }
 0x9e6   : > { %v5227_v35 = vpop.eup %5226 }
 0x9e7   : > { %v3939_v46 = vmul.f32 0.6931472, %v5227_v35 }
 0x9e8   : > { %v5229_v24 = vpop.eup %5228 }
 0x9e9   : > { %v4000_v55 = vmul.f32 %v3980_v11, %v3939_v46  ;;  %v3941_v9 = vmul.f32 0.6931472, %v5229_v24 }
 0x9ea   : > { %v5231_v61 = vpop.eup %5230 }
 0x9eb   : > { %v3959_v5 = vmul.f32 0.6931472, %v5231_v61  ;;  %v4019_v37 = vadd.f32 %v4018_v51, %v4000_v55  ;;  %v4001_v42 = vmul.f32 %v3981_v12, %v3941_v9 }
 0x9ec   : > { %v5233_v27 = vpop.eup %5232 }
 0x9ed   : > { %v3961_v13 = vmul.f32 0.6931472, %v5233_v27  ;;  %v4010_v44 = vmul.f32 %v3990_v34, %v3959_v5  ;;  %v4020_v25 = vadd.f32 %v4019_v37, %v4001_v42 }
 0x9ef   : > { %v4011_v54 = vmul.f32 %v3991_v41, %v3961_v13  ;;  %v4030_v14 = vadd.f32 %v4029_v57, %v4010_v44  ;;  %4021 = vadd.xlane.f32.xlu0 %v4020_v25 }
 0x9f1   : > { %v4031_v48 = vadd.f32 %v4030_v14, %v4011_v54 }
 0x9f3   : > { %4032 = vadd.xlane.f32.xlu1 %v4031_v48 }
 0xa78   : > { %v4022_v15 = vpop.xlane.xlu0 %4021 }
 0xa79   : > { %v4034_v36 = vsub.f32 0.0, %v4022_v15 }
 0xa7b   : > { %v4036_v50 = vadd.f32 %v4034_v36, %v3696_v39 }
 0xa7c   : > { %v4033_v10 = vpop.xlane.xlu1 %4032 }
 0xa7d   : > { %v4035_v20 = vsub.f32 0.0, %v4033_v10  ;;  %4039 = vst.msk [vmem:[#allocation6] sm:$0xff] %vm4038_vm1, %v4036_v50  ;;  %4044 = sbr.rel (%p4473_p0) target bundleno = 2902 (0xb56), region = 150 }
 0xa7f   : > { %v4037_v6 = vadd.f32 %v4035_v20, %v3697_v38 }
 0xa81   : > { %4040 = vst.msk [vmem:[#allocation6 + $0x8] sm:$0xff] %vm4038_vm1, %v4037_v6 }
 0xa84   : > { %v4045_v58 = vld [vmem:[#allocation6] sm:$0xff] }
 0xa85   : > { %v4047_v49 = vsel %vm4038_vm1, %v4045_v58, 0.0 }
 0xa88   : > { %v4046_v28 = vld [vmem:[#allocation6 + $0x8] sm:$0xff] }
 0xa89   : > { %v4048_v33 = vsel %vm4038_vm1, %v4046_v28, 0.0 }
 0xa8a   : > { %v4049_v53 = vadd.f32 %v4048_v33, %v4047_v49 }
 0xa8c   : > { %4050 = vadd.xlane.f32.xlu0 %v4049_v53 }
 0xb15   : > { %v4051_v8 = vpop.xlane.xlu0 %4050 }
 0xb16   : > { %v4052_v31 = vrot.slane %v4051_v8, 4 }
 0xb18   : > { %v4053_v19 = vadd.f32 %v4052_v31, %v4051_v8 }
 0xb1a   : > { %v4054_v59 = vrot.slane %v4053_v19, 2 }
 0xb1c   : > { %v4055_v30 = vadd.f32 %v4054_v59, %v4053_v19 }
 0xb1e   : > { %v4056_v47 = vrot.slane %v4055_v30, 1 }
 0xb20   : > { %v4057_v56 = vadd.f32 %v4056_v47, %v4055_v30 }
 0xb22   : > { %4668 = vpush %v4057_v56 }
 0xb53   : > { %s4669_s26 = spop %4668 }
 0xb54   : > { %v4059_v60 = vstv %s4669_s26 }
 0xb55   : > { %4060 = vst [vmem:[%s5855_s19] sm:$0xff] %v4059_v60 }
 0xb56 PF: > { %s25_s13 = sadd.s32 1, %s5436_s13   ;;  %s6809_s25 = sld [smem:[#allocation22_spill]] }
 0xb57   : > { %p22_p12 = scmp.ge.s32.totalorder %s25_s13, 10   ;;  %s6810_s2 = sld [smem:[#allocation24_spill]] }
 0xb58   : > { %s6811_s26 = sld [smem:[#allocation19_spill]]  ;;  %s6815_s21 = smov %s5400_s22 }
 0xb59   : > { %s6812_s14 = sld [smem:[#allocation20_spill]]  ;;  %s6817_s23 = smov %s5408_s24 }
 0xb5a   : > { %s6813_s29 = sld [smem:[#allocation21_spill]]  ;;  %s6820_s27 = smov %s5432_s30 }
 0xb5b   : > { %s6814_s7 = sld [smem:[#allocation23_spill]] }
 0xb5c   : > { %s6816_s22 = smov %s6809_s25  ;;  %s6819_s25 = smov %s5424_s28 }
 0xb5d   : > { %s6818_s24 = smov %s6810_s2  ;;  %24 = sbr.rel (!%p22_p12) target bundleno = 17 (0x11), region = 203 }
 0xb5f   : > { %s6821_s28 = smov %s6812_s14 }
 0xb61   : > { %s6822_s30 = smov %s6814_s7 }
 0xb62   :  { %4080 = vsyncpa [#allocation10], 1 }
 0xb63   :  { %4082 = vsyncpa [#allocation10 + $0x1], 1 }
 0xb64   :  { %4083 = vsyncpa [#allocation12], 1 }
 0xb65   :  { %4084 = vsyncpa [#allocation15], 1 }

</bundles_post_ra>
